<compile_context>
chip_gen: v5e
topology: v5e:2x2
jax: 0.10.0
libtpu: 0.0.40
codegen_flags: <defaults>
</compile_context>

<pallas_src>
import functools

import jax
import jax.numpy as jnp
from jax.experimental import pallas as pl
from jax.experimental.pallas import tpu as pltpu


def _seg_encoder_kernel(seg_ref, w_ref, b_ref, out_ref, *, H, W, C, KH, KW, K,
                        zero_background):
    # seg_ref: (1, H+KH-1, Wp_lanes) int32 -- padded seg map, lane-expanded by C
    #          (seg[hp, wp*C + c] == original seg id at (hp, wp); pad id == -1)
    # w_ref:   (KH*KW, W*C) f32           -- conv weights, lane-tiled W times
    # b_ref:   (1, W*C)     f32           -- conv bias,    lane-tiled W times
    # out_ref: (1, K, H, W*C) f32         -- encoded features for batch b, all slots
    WC = W * C
    seg = seg_ref[0]                                       # (H+KH-1, Wp_lanes) int32
    bias_b = jnp.broadcast_to(b_ref[...], (H, WC))         # hoisted, shared by all slots

    k_start = 1 if zero_background else 0                  # bg slot mask is all-zero
    accs = [bias_b for _ in range(K)]

    # Outer loop over the KH*KW taps: each shifted window slice and each
    # lane-tiled weight row is materialized ONCE and shared across all K slots.
    for t in range(KH * KW):
        dy, dx = divmod(t, KW)
        tap = seg[dy:dy + H, dx * C: dx * C + WC]          # (H, WC) int32, lane-coherent
        w_b = jnp.broadcast_to(w_ref[pl.ds(t, 1), :], (H, WC))   # (H, WC) f32
        for k in range(k_start, K):
            # one-hot(seg == k) * w[dy, dx, :]  as a pure VPU select + add
            accs[k] = accs[k] + jnp.where(tap == k, w_b, 0.0)

    for k in range(K):
        out_ref[0, k] = jnp.maximum(accs[k], 0.0)          # backbone ReLU, 128-lane store


def segmentation_encoder_state_init(inputs, w, bias, *, max_num_slots,
                                    zero_background=False):
    """inputs: [B, T, H, W] int segmentation video -> slots [B, K, H*W*C]."""
    B, T, H, W = inputs.shape
    K = max_num_slots
    KH, KW, C = w.shape
    WC = W * C
    Hp = H + KH - 1
    Wp = W + KW - 1
    Wp_lanes = ((Wp * C + 127) // 128) * 128               # lane-align the seg input

    # ---- frame 0, 'same' zero-padding of the one-hot emulated with id = -1 ----
    ph_lo, pw_lo = (KH - 1) // 2, (KW - 1) // 2
    ph_hi, pw_hi = KH - 1 - ph_lo, KW - 1 - pw_lo
    seg0 = inputs[:, 0].astype(jnp.int32)                                   # [B, H, W]
    seg_pad = jnp.pad(seg0, ((0, 0), (ph_lo, ph_hi), (pw_lo, pw_hi)),
                      constant_values=-1)                                   # [B, Hp, Wp]
    # expand along C in the lane dim and pad lanes to a multiple of 128
    seg_exp = jnp.repeat(seg_pad, C, axis=-1)                               # [B, Hp, Wp*C]
    seg_exp = jnp.pad(seg_exp, ((0, 0), (0, 0), (0, Wp_lanes - Wp * C)),
                      constant_values=-1)                                   # [B, Hp, Wp_lanes]

    # ---- pre-tile weights / bias into (.., W*C) lane constants ----
    w_tiled = jnp.tile(w.reshape(KH * KW, 1, C).astype(jnp.float32),
                       (1, W, 1)).reshape(KH * KW, WC)                      # [9, W*C]
    b_tiled = jnp.tile(bias.reshape(1, C).astype(jnp.float32),
                       (1, W)).reshape(1, WC)                               # [1, W*C]

    kernel = functools.partial(_seg_encoder_kernel, H=H, W=W, C=C, KH=KH,
                               KW=KW, K=K, zero_background=zero_background)

    out = pl.pallas_call(
        kernel,
        out_shape=jax.ShapeDtypeStruct((B, K, H, WC), jnp.float32),
        grid_spec=pltpu.PrefetchScalarGridSpec(
            num_scalar_prefetch=0,
            grid=(B,),
            in_specs=[
                pl.BlockSpec((1, Hp, Wp_lanes), lambda b: (b, 0, 0)),
                pl.BlockSpec((KH * KW, WC), lambda b: (0, 0)),
                pl.BlockSpec((1, WC), lambda b: (0, 0)),
            ],
            out_specs=pl.BlockSpec((1, K, H, WC), lambda b: (b, 0, 0, 0)),
        ),
        compiler_params=pltpu.CompilerParams(
            dimension_semantics=("parallel",)),
    )(seg_exp, w_tiled, b_tiled)

    # pos_emb = Identity, output_transform = Identity, reduction = 'all_flatten'.
    # (H, W*C) -> H*W*C is a contiguous flatten, matching (h, w, c) c-fastest order.
    return out.reshape(B, K, H * WC)


def _reference(inputs, w, bias, max_num_slots, zero_background):
    """Pure-JAX reference of the same forward pass."""
    B, T, H, W = inputs.shape
    K = max_num_slots
    KH, KW, C = w.shape
    oh = jax.nn.one_hot(inputs[:, 0], K, dtype=jnp.float32)        # [B,H,W,K]
    if zero_background:
        oh = oh.at[..., 0].set(0.0)
    masks = jnp.transpose(oh, (0, 3, 1, 2))                        # [B,K,H,W]
    pad = jnp.pad(masks, ((0, 0), (0, 0), (1, 1), (1, 1)))
    out = jnp.zeros((B, K, H, W, C), jnp.float32) + bias
    for dy in range(KH):
        for dx in range(KW):
            out = out + pad[:, :, dy:dy + H, dx:dx + W][..., None] * w[dy, dx]
    out = jnp.maximum(out, 0.0)
    return out.reshape(B, K, H * W * C)


if __name__ == "__main__":
    key = jax.random.PRNGKey(0)
    k_seg, k_w, k_b = jax.random.split(key, 3)

    B, T, H, W = 2, 3, 16, 16     # batch, time, spatial
    K = 8                         # max_num_slots
    C = 8                         # backbone output channels (W*C = 128, lane-dense)

    inputs = jax.random.randint(k_seg, (B, T, H, W), 0, K, dtype=jnp.int32)
    w = (jax.random.normal(k_w, (3, 3, C), dtype=jnp.float32) * 0.1)
    bias = (jax.random.normal(k_b, (C,), dtype=jnp.float32) * 0.01)

    for zb in (False, True):
        slots = segmentation_encoder_state_init(
            inputs, w, bias, max_num_slots=K, zero_background=zb)
        slots = jax.block_until_ready(slots)
        ref = _reference(inputs, w, bias, K, zb)
        assert slots.shape == (B, K, H * W * C), slots.shape
        assert jnp.allclose(slots, ref, atol=1e-5, rtol=1e-5), \
            f"mismatch vs reference (zero_background={zb})"
    print("KERNEL_OK")
</pallas_src>

<mosaic_0001>
module attributes {stable_mosaic.version = 11 : i64} {
  func.func @_seg_encoder_kernel(%arg0: i32, %arg1: memref<1x18x256xi32, #tpu.memory_space<vmem>>, %arg2: memref<9x128xf32, #tpu.memory_space<vmem>>, %arg3: memref<1x128xf32, #tpu.memory_space<vmem>>, %arg4: memref<1x8x16x128xf32, #tpu.memory_space<vmem>>) attributes {dimension_semantics = [#tpu.dimension_semantics<parallel>], iteration_bounds = array<i64: 2>, scalar_prefetch = 0 : i64, scratch_operands = 0 : i64, tpu.core_type = #tpu.core_type<tc>, window_params = [{transform_indices = @transform_0, window_bounds = array<i64: 1, 18, 256>}, {pipeline_mode = #tpu.pipeline_mode<synchronous>, transform_indices = @transform_1, window_bounds = array<i64: 9, 128>}, {pipeline_mode = #tpu.pipeline_mode<synchronous>, transform_indices = @transform_2, window_bounds = array<i64: 1, 128>}, {transform_indices = @transform_3, window_bounds = array<i64: 1, 8, 16, 128>}]} {
    %c0 = arith.constant 0 : index
    %c0_0 = arith.constant 0 : index
    %c0_1 = arith.constant 0 : index
    %0 = vector.load %arg1[%c0, %c0_0, %c0_1] : memref<1x18x256xi32, #tpu.memory_space<vmem>>, vector<1x18x256xi32>
    %1 = vector.shape_cast %0 : vector<1x18x256xi32> to vector<18x256xi32>
    %c0_2 = arith.constant 0 : index
    %c0_3 = arith.constant 0 : index
    %2 = vector.load %arg3[%c0_2, %c0_3] : memref<1x128xf32, #tpu.memory_space<vmem>>, vector<1x128xf32>
    %3 = vector.shape_cast %2 : vector<1x128xf32> to vector<1x128xf32>
    %4 = vector.broadcast %3 : vector<1x128xf32> to vector<16x128xf32>
    %5 = vector.extract_strided_slice %1 {offsets = [0, 0], sizes = [16, 128], strides = [1, 1]} : vector<18x256xi32> to vector<16x128xi32>
    %c0_4 = arith.constant 0 : index
    %c0_5 = arith.constant 0 : index
    %6 = vector.load %arg2[%c0_4, %c0_5] : memref<9x128xf32, #tpu.memory_space<vmem>>, vector<1x128xf32>
    %7 = vector.shape_cast %6 : vector<1x128xf32> to vector<1x128xf32>
    %8 = vector.broadcast %7 : vector<1x128xf32> to vector<16x128xf32>
    %c0_i32 = arith.constant 0 : i32
    %9 = vector.broadcast %c0_i32 : i32 to vector<16x128xi32>
    %10 = arith.cmpi eq, %5, %9 : vector<16x128xi32>
    %cst = arith.constant 0.000000e+00 : f32
    %11 = vector.broadcast %cst : f32 to vector<16x128xf32>
    %12 = arith.select %10, %8, %11 : vector<16x128xi1>, vector<16x128xf32>
    %13 = arith.addf %4, %12 : vector<16x128xf32>
    %c1_i32 = arith.constant 1 : i32
    %14 = vector.broadcast %c1_i32 : i32 to vector<16x128xi32>
    %15 = arith.cmpi eq, %5, %14 : vector<16x128xi32>
    %cst_6 = arith.constant 0.000000e+00 : f32
    %16 = vector.broadcast %cst_6 : f32 to vector<16x128xf32>
    %17 = arith.select %15, %8, %16 : vector<16x128xi1>, vector<16x128xf32>
    %18 = arith.addf %4, %17 : vector<16x128xf32>
    %c2_i32 = arith.constant 2 : i32
    %19 = vector.broadcast %c2_i32 : i32 to vector<16x128xi32>
    %20 = arith.cmpi eq, %5, %19 : vector<16x128xi32>
    %cst_7 = arith.constant 0.000000e+00 : f32
    %21 = vector.broadcast %cst_7 : f32 to vector<16x128xf32>
    %22 = arith.select %20, %8, %21 : vector<16x128xi1>, vector<16x128xf32>
    %23 = arith.addf %4, %22 : vector<16x128xf32>
    %c3_i32 = arith.constant 3 : i32
    %24 = vector.broadcast %c3_i32 : i32 to vector<16x128xi32>
    %25 = arith.cmpi eq, %5, %24 : vector<16x128xi32>
    %cst_8 = arith.constant 0.000000e+00 : f32
    %26 = vector.broadcast %cst_8 : f32 to vector<16x128xf32>
    %27 = arith.select %25, %8, %26 : vector<16x128xi1>, vector<16x128xf32>
    %28 = arith.addf %4, %27 : vector<16x128xf32>
    %c4_i32 = arith.constant 4 : i32
    %29 = vector.broadcast %c4_i32 : i32 to vector<16x128xi32>
    %30 = arith.cmpi eq, %5, %29 : vector<16x128xi32>
    %cst_9 = arith.constant 0.000000e+00 : f32
    %31 = vector.broadcast %cst_9 : f32 to vector<16x128xf32>
    %32 = arith.select %30, %8, %31 : vector<16x128xi1>, vector<16x128xf32>
    %33 = arith.addf %4, %32 : vector<16x128xf32>
    %c5_i32 = arith.constant 5 : i32
    %34 = vector.broadcast %c5_i32 : i32 to vector<16x128xi32>
    %35 = arith.cmpi eq, %5, %34 : vector<16x128xi32>
    %cst_10 = arith.constant 0.000000e+00 : f32
    %36 = vector.broadcast %cst_10 : f32 to vector<16x128xf32>
    %37 = arith.select %35, %8, %36 : vector<16x128xi1>, vector<16x128xf32>
    %38 = arith.addf %4, %37 : vector<16x128xf32>
    %c6_i32 = arith.constant 6 : i32
    %39 = vector.broadcast %c6_i32 : i32 to vector<16x128xi32>
    %40 = arith.cmpi eq, %5, %39 : vector<16x128xi32>
    %cst_11 = arith.constant 0.000000e+00 : f32
    %41 = vector.broadcast %cst_11 : f32 to vector<16x128xf32>
    %42 = arith.select %40, %8, %41 : vector<16x128xi1>, vector<16x128xf32>
    %43 = arith.addf %4, %42 : vector<16x128xf32>
    %c7_i32 = arith.constant 7 : i32
    %44 = vector.broadcast %c7_i32 : i32 to vector<16x128xi32>
    %45 = arith.cmpi eq, %5, %44 : vector<16x128xi32>
    %cst_12 = arith.constant 0.000000e+00 : f32
    %46 = vector.broadcast %cst_12 : f32 to vector<16x128xf32>
    %47 = arith.select %45, %8, %46 : vector<16x128xi1>, vector<16x128xf32>
    %48 = arith.addf %4, %47 : vector<16x128xf32>
    %49 = vector.extract_strided_slice %1 {offsets = [0, 8], sizes = [16, 128], strides = [1, 1]} : vector<18x256xi32> to vector<16x128xi32>
    %c1 = arith.constant 1 : index
    %c0_13 = arith.constant 0 : index
    %50 = vector.load %arg2[%c1, %c0_13] : memref<9x128xf32, #tpu.memory_space<vmem>>, vector<1x128xf32>
    %51 = vector.shape_cast %50 : vector<1x128xf32> to vector<1x128xf32>
    %52 = vector.broadcast %51 : vector<1x128xf32> to vector<16x128xf32>
    %c0_i32_14 = arith.constant 0 : i32
    %53 = vector.broadcast %c0_i32_14 : i32 to vector<16x128xi32>
    %54 = arith.cmpi eq, %49, %53 : vector<16x128xi32>
    %cst_15 = arith.constant 0.000000e+00 : f32
    %55 = vector.broadcast %cst_15 : f32 to vector<16x128xf32>
    %56 = arith.select %54, %52, %55 : vector<16x128xi1>, vector<16x128xf32>
    %57 = arith.addf %13, %56 : vector<16x128xf32>
    %c1_i32_16 = arith.constant 1 : i32
    %58 = vector.broadcast %c1_i32_16 : i32 to vector<16x128xi32>
    %59 = arith.cmpi eq, %49, %58 : vector<16x128xi32>
    %cst_17 = arith.constant 0.000000e+00 : f32
    %60 = vector.broadcast %cst_17 : f32 to vector<16x128xf32>
    %61 = arith.select %59, %52, %60 : vector<16x128xi1>, vector<16x128xf32>
    %62 = arith.addf %18, %61 : vector<16x128xf32>
    %c2_i32_18 = arith.constant 2 : i32
    %63 = vector.broadcast %c2_i32_18 : i32 to vector<16x128xi32>
    %64 = arith.cmpi eq, %49, %63 : vector<16x128xi32>
    %cst_19 = arith.constant 0.000000e+00 : f32
    %65 = vector.broadcast %cst_19 : f32 to vector<16x128xf32>
    %66 = arith.select %64, %52, %65 : vector<16x128xi1>, vector<16x128xf32>
    %67 = arith.addf %23, %66 : vector<16x128xf32>
    %c3_i32_20 = arith.constant 3 : i32
    %68 = vector.broadcast %c3_i32_20 : i32 to vector<16x128xi32>
    %69 = arith.cmpi eq, %49, %68 : vector<16x128xi32>
    %cst_21 = arith.constant 0.000000e+00 : f32
    %70 = vector.broadcast %cst_21 : f32 to vector<16x128xf32>
    %71 = arith.select %69, %52, %70 : vector<16x128xi1>, vector<16x128xf32>
    %72 = arith.addf %28, %71 : vector<16x128xf32>
    %c4_i32_22 = arith.constant 4 : i32
    %73 = vector.broadcast %c4_i32_22 : i32 to vector<16x128xi32>
    %74 = arith.cmpi eq, %49, %73 : vector<16x128xi32>
    %cst_23 = arith.constant 0.000000e+00 : f32
    %75 = vector.broadcast %cst_23 : f32 to vector<16x128xf32>
    %76 = arith.select %74, %52, %75 : vector<16x128xi1>, vector<16x128xf32>
    %77 = arith.addf %33, %76 : vector<16x128xf32>
    %c5_i32_24 = arith.constant 5 : i32
    %78 = vector.broadcast %c5_i32_24 : i32 to vector<16x128xi32>
    %79 = arith.cmpi eq, %49, %78 : vector<16x128xi32>
    %cst_25 = arith.constant 0.000000e+00 : f32
    %80 = vector.broadcast %cst_25 : f32 to vector<16x128xf32>
    %81 = arith.select %79, %52, %80 : vector<16x128xi1>, vector<16x128xf32>
    %82 = arith.addf %38, %81 : vector<16x128xf32>
    %c6_i32_26 = arith.constant 6 : i32
    %83 = vector.broadcast %c6_i32_26 : i32 to vector<16x128xi32>
    %84 = arith.cmpi eq, %49, %83 : vector<16x128xi32>
    %cst_27 = arith.constant 0.000000e+00 : f32
    %85 = vector.broadcast %cst_27 : f32 to vector<16x128xf32>
    %86 = arith.select %84, %52, %85 : vector<16x128xi1>, vector<16x128xf32>
    %87 = arith.addf %43, %86 : vector<16x128xf32>
    %c7_i32_28 = arith.constant 7 : i32
    %88 = vector.broadcast %c7_i32_28 : i32 to vector<16x128xi32>
    %89 = arith.cmpi eq, %49, %88 : vector<16x128xi32>
    %cst_29 = arith.constant 0.000000e+00 : f32
    %90 = vector.broadcast %cst_29 : f32 to vector<16x128xf32>
    %91 = arith.select %89, %52, %90 : vector<16x128xi1>, vector<16x128xf32>
    %92 = arith.addf %48, %91 : vector<16x128xf32>
    %93 = vector.extract_strided_slice %1 {offsets = [0, 16], sizes = [16, 128], strides = [1, 1]} : vector<18x256xi32> to vector<16x128xi32>
    %c2 = arith.constant 2 : index
    %c0_30 = arith.constant 0 : index
    %94 = vector.load %arg2[%c2, %c0_30] : memref<9x128xf32, #tpu.memory_space<vmem>>, vector<1x128xf32>
    %95 = vector.shape_cast %94 : vector<1x128xf32> to vector<1x128xf32>
    %96 = vector.broadcast %95 : vector<1x128xf32> to vector<16x128xf32>
    %c0_i32_31 = arith.constant 0 : i32
    %97 = vector.broadcast %c0_i32_31 : i32 to vector<16x128xi32>
    %98 = arith.cmpi eq, %93, %97 : vector<16x128xi32>
    %cst_32 = arith.constant 0.000000e+00 : f32
    %99 = vector.broadcast %cst_32 : f32 to vector<16x128xf32>
    %100 = arith.select %98, %96, %99 : vector<16x128xi1>, vector<16x128xf32>
    %101 = arith.addf %57, %100 : vector<16x128xf32>
    %c1_i32_33 = arith.constant 1 : i32
    %102 = vector.broadcast %c1_i32_33 : i32 to vector<16x128xi32>
    %103 = arith.cmpi eq, %93, %102 : vector<16x128xi32>
    %cst_34 = arith.constant 0.000000e+00 : f32
    %104 = vector.broadcast %cst_34 : f32 to vector<16x128xf32>
    %105 = arith.select %103, %96, %104 : vector<16x128xi1>, vector<16x128xf32>
    %106 = arith.addf %62, %105 : vector<16x128xf32>
    %c2_i32_35 = arith.constant 2 : i32
    %107 = vector.broadcast %c2_i32_35 : i32 to vector<16x128xi32>
    %108 = arith.cmpi eq, %93, %107 : vector<16x128xi32>
    %cst_36 = arith.constant 0.000000e+00 : f32
    %109 = vector.broadcast %cst_36 : f32 to vector<16x128xf32>
    %110 = arith.select %108, %96, %109 : vector<16x128xi1>, vector<16x128xf32>
    %111 = arith.addf %67, %110 : vector<16x128xf32>
    %c3_i32_37 = arith.constant 3 : i32
    %112 = vector.broadcast %c3_i32_37 : i32 to vector<16x128xi32>
    %113 = arith.cmpi eq, %93, %112 : vector<16x128xi32>
    %cst_38 = arith.constant 0.000000e+00 : f32
    %114 = vector.broadcast %cst_38 : f32 to vector<16x128xf32>
    %115 = arith.select %113, %96, %114 : vector<16x128xi1>, vector<16x128xf32>
    %116 = arith.addf %72, %115 : vector<16x128xf32>
    %c4_i32_39 = arith.constant 4 : i32
    %117 = vector.broadcast %c4_i32_39 : i32 to vector<16x128xi32>
    %118 = arith.cmpi eq, %93, %117 : vector<16x128xi32>
    %cst_40 = arith.constant 0.000000e+00 : f32
    %119 = vector.broadcast %cst_40 : f32 to vector<16x128xf32>
    %120 = arith.select %118, %96, %119 : vector<16x128xi1>, vector<16x128xf32>
    %121 = arith.addf %77, %120 : vector<16x128xf32>
    %c5_i32_41 = arith.constant 5 : i32
    %122 = vector.broadcast %c5_i32_41 : i32 to vector<16x128xi32>
    %123 = arith.cmpi eq, %93, %122 : vector<16x128xi32>
    %cst_42 = arith.constant 0.000000e+00 : f32
    %124 = vector.broadcast %cst_42 : f32 to vector<16x128xf32>
    %125 = arith.select %123, %96, %124 : vector<16x128xi1>, vector<16x128xf32>
    %126 = arith.addf %82, %125 : vector<16x128xf32>
    %c6_i32_43 = arith.constant 6 : i32
    %127 = vector.broadcast %c6_i32_43 : i32 to vector<16x128xi32>
    %128 = arith.cmpi eq, %93, %127 : vector<16x128xi32>
    %cst_44 = arith.constant 0.000000e+00 : f32
    %129 = vector.broadcast %cst_44 : f32 to vector<16x128xf32>
    %130 = arith.select %128, %96, %129 : vector<16x128xi1>, vector<16x128xf32>
    %131 = arith.addf %87, %130 : vector<16x128xf32>
    %c7_i32_45 = arith.constant 7 : i32
    %132 = vector.broadcast %c7_i32_45 : i32 to vector<16x128xi32>
    %133 = arith.cmpi eq, %93, %132 : vector<16x128xi32>
    %cst_46 = arith.constant 0.000000e+00 : f32
    %134 = vector.broadcast %cst_46 : f32 to vector<16x128xf32>
    %135 = arith.select %133, %96, %134 : vector<16x128xi1>, vector<16x128xf32>
    %136 = arith.addf %92, %135 : vector<16x128xf32>
    %137 = vector.extract_strided_slice %1 {offsets = [1, 0], sizes = [16, 128], strides = [1, 1]} : vector<18x256xi32> to vector<16x128xi32>
    %c3 = arith.constant 3 : index
    %c0_47 = arith.constant 0 : index
    %138 = vector.load %arg2[%c3, %c0_47] : memref<9x128xf32, #tpu.memory_space<vmem>>, vector<1x128xf32>
    %139 = vector.shape_cast %138 : vector<1x128xf32> to vector<1x128xf32>
    %140 = vector.broadcast %139 : vector<1x128xf32> to vector<16x128xf32>
    %c0_i32_48 = arith.constant 0 : i32
    %141 = vector.broadcast %c0_i32_48 : i32 to vector<16x128xi32>
    %142 = arith.cmpi eq, %137, %141 : vector<16x128xi32>
    %cst_49 = arith.constant 0.000000e+00 : f32
    %143 = vector.broadcast %cst_49 : f32 to vector<16x128xf32>
    %144 = arith.select %142, %140, %143 : vector<16x128xi1>, vector<16x128xf32>
    %145 = arith.addf %101, %144 : vector<16x128xf32>
    %c1_i32_50 = arith.constant 1 : i32
    %146 = vector.broadcast %c1_i32_50 : i32 to vector<16x128xi32>
    %147 = arith.cmpi eq, %137, %146 : vector<16x128xi32>
    %cst_51 = arith.constant 0.000000e+00 : f32
    %148 = vector.broadcast %cst_51 : f32 to vector<16x128xf32>
    %149 = arith.select %147, %140, %148 : vector<16x128xi1>, vector<16x128xf32>
    %150 = arith.addf %106, %149 : vector<16x128xf32>
    %c2_i32_52 = arith.constant 2 : i32
    %151 = vector.broadcast %c2_i32_52 : i32 to vector<16x128xi32>
    %152 = arith.cmpi eq, %137, %151 : vector<16x128xi32>
    %cst_53 = arith.constant 0.000000e+00 : f32
    %153 = vector.broadcast %cst_53 : f32 to vector<16x128xf32>
    %154 = arith.select %152, %140, %153 : vector<16x128xi1>, vector<16x128xf32>
    %155 = arith.addf %111, %154 : vector<16x128xf32>
    %c3_i32_54 = arith.constant 3 : i32
    %156 = vector.broadcast %c3_i32_54 : i32 to vector<16x128xi32>
    %157 = arith.cmpi eq, %137, %156 : vector<16x128xi32>
    %cst_55 = arith.constant 0.000000e+00 : f32
    %158 = vector.broadcast %cst_55 : f32 to vector<16x128xf32>
    %159 = arith.select %157, %140, %158 : vector<16x128xi1>, vector<16x128xf32>
    %160 = arith.addf %116, %159 : vector<16x128xf32>
    %c4_i32_56 = arith.constant 4 : i32
    %161 = vector.broadcast %c4_i32_56 : i32 to vector<16x128xi32>
    %162 = arith.cmpi eq, %137, %161 : vector<16x128xi32>
    %cst_57 = arith.constant 0.000000e+00 : f32
    %163 = vector.broadcast %cst_57 : f32 to vector<16x128xf32>
    %164 = arith.select %162, %140, %163 : vector<16x128xi1>, vector<16x128xf32>
    %165 = arith.addf %121, %164 : vector<16x128xf32>
    %c5_i32_58 = arith.constant 5 : i32
    %166 = vector.broadcast %c5_i32_58 : i32 to vector<16x128xi32>
    %167 = arith.cmpi eq, %137, %166 : vector<16x128xi32>
    %cst_59 = arith.constant 0.000000e+00 : f32
    %168 = vector.broadcast %cst_59 : f32 to vector<16x128xf32>
    %169 = arith.select %167, %140, %168 : vector<16x128xi1>, vector<16x128xf32>
    %170 = arith.addf %126, %169 : vector<16x128xf32>
    %c6_i32_60 = arith.constant 6 : i32
    %171 = vector.broadcast %c6_i32_60 : i32 to vector<16x128xi32>
    %172 = arith.cmpi eq, %137, %171 : vector<16x128xi32>
    %cst_61 = arith.constant 0.000000e+00 : f32
    %173 = vector.broadcast %cst_61 : f32 to vector<16x128xf32>
    %174 = arith.select %172, %140, %173 : vector<16x128xi1>, vector<16x128xf32>
    %175 = arith.addf %131, %174 : vector<16x128xf32>
    %c7_i32_62 = arith.constant 7 : i32
    %176 = vector.broadcast %c7_i32_62 : i32 to vector<16x128xi32>
    %177 = arith.cmpi eq, %137, %176 : vector<16x128xi32>
    %cst_63 = arith.constant 0.000000e+00 : f32
    %178 = vector.broadcast %cst_63 : f32 to vector<16x128xf32>
    %179 = arith.select %177, %140, %178 : vector<16x128xi1>, vector<16x128xf32>
    %180 = arith.addf %136, %179 : vector<16x128xf32>
    %181 = vector.extract_strided_slice %1 {offsets = [1, 8], sizes = [16, 128], strides = [1, 1]} : vector<18x256xi32> to vector<16x128xi32>
    %c4 = arith.constant 4 : index
    %c0_64 = arith.constant 0 : index
    %182 = vector.load %arg2[%c4, %c0_64] : memref<9x128xf32, #tpu.memory_space<vmem>>, vector<1x128xf32>
    %183 = vector.shape_cast %182 : vector<1x128xf32> to vector<1x128xf32>
    %184 = vector.broadcast %183 : vector<1x128xf32> to vector<16x128xf32>
    %c0_i32_65 = arith.constant 0 : i32
    %185 = vector.broadcast %c0_i32_65 : i32 to vector<16x128xi32>
    %186 = arith.cmpi eq, %181, %185 : vector<16x128xi32>
    %cst_66 = arith.constant 0.000000e+00 : f32
    %187 = vector.broadcast %cst_66 : f32 to vector<16x128xf32>
    %188 = arith.select %186, %184, %187 : vector<16x128xi1>, vector<16x128xf32>
    %189 = arith.addf %145, %188 : vector<16x128xf32>
    %c1_i32_67 = arith.constant 1 : i32
    %190 = vector.broadcast %c1_i32_67 : i32 to vector<16x128xi32>
    %191 = arith.cmpi eq, %181, %190 : vector<16x128xi32>
    %cst_68 = arith.constant 0.000000e+00 : f32
    %192 = vector.broadcast %cst_68 : f32 to vector<16x128xf32>
    %193 = arith.select %191, %184, %192 : vector<16x128xi1>, vector<16x128xf32>
    %194 = arith.addf %150, %193 : vector<16x128xf32>
    %c2_i32_69 = arith.constant 2 : i32
    %195 = vector.broadcast %c2_i32_69 : i32 to vector<16x128xi32>
    %196 = arith.cmpi eq, %181, %195 : vector<16x128xi32>
    %cst_70 = arith.constant 0.000000e+00 : f32
    %197 = vector.broadcast %cst_70 : f32 to vector<16x128xf32>
    %198 = arith.select %196, %184, %197 : vector<16x128xi1>, vector<16x128xf32>
    %199 = arith.addf %155, %198 : vector<16x128xf32>
    %c3_i32_71 = arith.constant 3 : i32
    %200 = vector.broadcast %c3_i32_71 : i32 to vector<16x128xi32>
    %201 = arith.cmpi eq, %181, %200 : vector<16x128xi32>
    %cst_72 = arith.constant 0.000000e+00 : f32
    %202 = vector.broadcast %cst_72 : f32 to vector<16x128xf32>
    %203 = arith.select %201, %184, %202 : vector<16x128xi1>, vector<16x128xf32>
    %204 = arith.addf %160, %203 : vector<16x128xf32>
    %c4_i32_73 = arith.constant 4 : i32
    %205 = vector.broadcast %c4_i32_73 : i32 to vector<16x128xi32>
    %206 = arith.cmpi eq, %181, %205 : vector<16x128xi32>
    %cst_74 = arith.constant 0.000000e+00 : f32
    %207 = vector.broadcast %cst_74 : f32 to vector<16x128xf32>
    %208 = arith.select %206, %184, %207 : vector<16x128xi1>, vector<16x128xf32>
    %209 = arith.addf %165, %208 : vector<16x128xf32>
    %c5_i32_75 = arith.constant 5 : i32
    %210 = vector.broadcast %c5_i32_75 : i32 to vector<16x128xi32>
    %211 = arith.cmpi eq, %181, %210 : vector<16x128xi32>
    %cst_76 = arith.constant 0.000000e+00 : f32
    %212 = vector.broadcast %cst_76 : f32 to vector<16x128xf32>
    %213 = arith.select %211, %184, %212 : vector<16x128xi1>, vector<16x128xf32>
    %214 = arith.addf %170, %213 : vector<16x128xf32>
    %c6_i32_77 = arith.constant 6 : i32
    %215 = vector.broadcast %c6_i32_77 : i32 to vector<16x128xi32>
    %216 = arith.cmpi eq, %181, %215 : vector<16x128xi32>
    %cst_78 = arith.constant 0.000000e+00 : f32
    %217 = vector.broadcast %cst_78 : f32 to vector<16x128xf32>
    %218 = arith.select %216, %184, %217 : vector<16x128xi1>, vector<16x128xf32>
    %219 = arith.addf %175, %218 : vector<16x128xf32>
    %c7_i32_79 = arith.constant 7 : i32
    %220 = vector.broadcast %c7_i32_79 : i32 to vector<16x128xi32>
    %221 = arith.cmpi eq, %181, %220 : vector<16x128xi32>
    %cst_80 = arith.constant 0.000000e+00 : f32
    %222 = vector.broadcast %cst_80 : f32 to vector<16x128xf32>
    %223 = arith.select %221, %184, %222 : vector<16x128xi1>, vector<16x128xf32>
    %224 = arith.addf %180, %223 : vector<16x128xf32>
    %225 = vector.extract_strided_slice %1 {offsets = [1, 16], sizes = [16, 128], strides = [1, 1]} : vector<18x256xi32> to vector<16x128xi32>
    %c5 = arith.constant 5 : index
    %c0_81 = arith.constant 0 : index
    %226 = vector.load %arg2[%c5, %c0_81] : memref<9x128xf32, #tpu.memory_space<vmem>>, vector<1x128xf32>
    %227 = vector.shape_cast %226 : vector<1x128xf32> to vector<1x128xf32>
    %228 = vector.broadcast %227 : vector<1x128xf32> to vector<16x128xf32>
    %c0_i32_82 = arith.constant 0 : i32
    %229 = vector.broadcast %c0_i32_82 : i32 to vector<16x128xi32>
    %230 = arith.cmpi eq, %225, %229 : vector<16x128xi32>
    %cst_83 = arith.constant 0.000000e+00 : f32
    %231 = vector.broadcast %cst_83 : f32 to vector<16x128xf32>
    %232 = arith.select %230, %228, %231 : vector<16x128xi1>, vector<16x128xf32>
    %233 = arith.addf %189, %232 : vector<16x128xf32>
    %c1_i32_84 = arith.constant 1 : i32
    %234 = vector.broadcast %c1_i32_84 : i32 to vector<16x128xi32>
    %235 = arith.cmpi eq, %225, %234 : vector<16x128xi32>
    %cst_85 = arith.constant 0.000000e+00 : f32
    %236 = vector.broadcast %cst_85 : f32 to vector<16x128xf32>
    %237 = arith.select %235, %228, %236 : vector<16x128xi1>, vector<16x128xf32>
    %238 = arith.addf %194, %237 : vector<16x128xf32>
    %c2_i32_86 = arith.constant 2 : i32
    %239 = vector.broadcast %c2_i32_86 : i32 to vector<16x128xi32>
    %240 = arith.cmpi eq, %225, %239 : vector<16x128xi32>
    %cst_87 = arith.constant 0.000000e+00 : f32
    %241 = vector.broadcast %cst_87 : f32 to vector<16x128xf32>
    %242 = arith.select %240, %228, %241 : vector<16x128xi1>, vector<16x128xf32>
    %243 = arith.addf %199, %242 : vector<16x128xf32>
    %c3_i32_88 = arith.constant 3 : i32
    %244 = vector.broadcast %c3_i32_88 : i32 to vector<16x128xi32>
    %245 = arith.cmpi eq, %225, %244 : vector<16x128xi32>
    %cst_89 = arith.constant 0.000000e+00 : f32
    %246 = vector.broadcast %cst_89 : f32 to vector<16x128xf32>
    %247 = arith.select %245, %228, %246 : vector<16x128xi1>, vector<16x128xf32>
    %248 = arith.addf %204, %247 : vector<16x128xf32>
    %c4_i32_90 = arith.constant 4 : i32
    %249 = vector.broadcast %c4_i32_90 : i32 to vector<16x128xi32>
    %250 = arith.cmpi eq, %225, %249 : vector<16x128xi32>
    %cst_91 = arith.constant 0.000000e+00 : f32
    %251 = vector.broadcast %cst_91 : f32 to vector<16x128xf32>
    %252 = arith.select %250, %228, %251 : vector<16x128xi1>, vector<16x128xf32>
    %253 = arith.addf %209, %252 : vector<16x128xf32>
    %c5_i32_92 = arith.constant 5 : i32
    %254 = vector.broadcast %c5_i32_92 : i32 to vector<16x128xi32>
    %255 = arith.cmpi eq, %225, %254 : vector<16x128xi32>
    %cst_93 = arith.constant 0.000000e+00 : f32
    %256 = vector.broadcast %cst_93 : f32 to vector<16x128xf32>
    %257 = arith.select %255, %228, %256 : vector<16x128xi1>, vector<16x128xf32>
    %258 = arith.addf %214, %257 : vector<16x128xf32>
    %c6_i32_94 = arith.constant 6 : i32
    %259 = vector.broadcast %c6_i32_94 : i32 to vector<16x128xi32>
    %260 = arith.cmpi eq, %225, %259 : vector<16x128xi32>
    %cst_95 = arith.constant 0.000000e+00 : f32
    %261 = vector.broadcast %cst_95 : f32 to vector<16x128xf32>
    %262 = arith.select %260, %228, %261 : vector<16x128xi1>, vector<16x128xf32>
    %263 = arith.addf %219, %262 : vector<16x128xf32>
    %c7_i32_96 = arith.constant 7 : i32
    %264 = vector.broadcast %c7_i32_96 : i32 to vector<16x128xi32>
    %265 = arith.cmpi eq, %225, %264 : vector<16x128xi32>
    %cst_97 = arith.constant 0.000000e+00 : f32
    %266 = vector.broadcast %cst_97 : f32 to vector<16x128xf32>
    %267 = arith.select %265, %228, %266 : vector<16x128xi1>, vector<16x128xf32>
    %268 = arith.addf %224, %267 : vector<16x128xf32>
    %269 = vector.extract_strided_slice %1 {offsets = [2, 0], sizes = [16, 128], strides = [1, 1]} : vector<18x256xi32> to vector<16x128xi32>
    %c6 = arith.constant 6 : index
    %c0_98 = arith.constant 0 : index
    %270 = vector.load %arg2[%c6, %c0_98] : memref<9x128xf32, #tpu.memory_space<vmem>>, vector<1x128xf32>
    %271 = vector.shape_cast %270 : vector<1x128xf32> to vector<1x128xf32>
    %272 = vector.broadcast %271 : vector<1x128xf32> to vector<16x128xf32>
    %c0_i32_99 = arith.constant 0 : i32
    %273 = vector.broadcast %c0_i32_99 : i32 to vector<16x128xi32>
    %274 = arith.cmpi eq, %269, %273 : vector<16x128xi32>
    %cst_100 = arith.constant 0.000000e+00 : f32
    %275 = vector.broadcast %cst_100 : f32 to vector<16x128xf32>
    %276 = arith.select %274, %272, %275 : vector<16x128xi1>, vector<16x128xf32>
    %277 = arith.addf %233, %276 : vector<16x128xf32>
    %c1_i32_101 = arith.constant 1 : i32
    %278 = vector.broadcast %c1_i32_101 : i32 to vector<16x128xi32>
    %279 = arith.cmpi eq, %269, %278 : vector<16x128xi32>
    %cst_102 = arith.constant 0.000000e+00 : f32
    %280 = vector.broadcast %cst_102 : f32 to vector<16x128xf32>
    %281 = arith.select %279, %272, %280 : vector<16x128xi1>, vector<16x128xf32>
    %282 = arith.addf %238, %281 : vector<16x128xf32>
    %c2_i32_103 = arith.constant 2 : i32
    %283 = vector.broadcast %c2_i32_103 : i32 to vector<16x128xi32>
    %284 = arith.cmpi eq, %269, %283 : vector<16x128xi32>
    %cst_104 = arith.constant 0.000000e+00 : f32
    %285 = vector.broadcast %cst_104 : f32 to vector<16x128xf32>
    %286 = arith.select %284, %272, %285 : vector<16x128xi1>, vector<16x128xf32>
    %287 = arith.addf %243, %286 : vector<16x128xf32>
    %c3_i32_105 = arith.constant 3 : i32
    %288 = vector.broadcast %c3_i32_105 : i32 to vector<16x128xi32>
    %289 = arith.cmpi eq, %269, %288 : vector<16x128xi32>
    %cst_106 = arith.constant 0.000000e+00 : f32
    %290 = vector.broadcast %cst_106 : f32 to vector<16x128xf32>
    %291 = arith.select %289, %272, %290 : vector<16x128xi1>, vector<16x128xf32>
    %292 = arith.addf %248, %291 : vector<16x128xf32>
    %c4_i32_107 = arith.constant 4 : i32
    %293 = vector.broadcast %c4_i32_107 : i32 to vector<16x128xi32>
    %294 = arith.cmpi eq, %269, %293 : vector<16x128xi32>
    %cst_108 = arith.constant 0.000000e+00 : f32
    %295 = vector.broadcast %cst_108 : f32 to vector<16x128xf32>
    %296 = arith.select %294, %272, %295 : vector<16x128xi1>, vector<16x128xf32>
    %297 = arith.addf %253, %296 : vector<16x128xf32>
    %c5_i32_109 = arith.constant 5 : i32
    %298 = vector.broadcast %c5_i32_109 : i32 to vector<16x128xi32>
    %299 = arith.cmpi eq, %269, %298 : vector<16x128xi32>
    %cst_110 = arith.constant 0.000000e+00 : f32
    %300 = vector.broadcast %cst_110 : f32 to vector<16x128xf32>
    %301 = arith.select %299, %272, %300 : vector<16x128xi1>, vector<16x128xf32>
    %302 = arith.addf %258, %301 : vector<16x128xf32>
    %c6_i32_111 = arith.constant 6 : i32
    %303 = vector.broadcast %c6_i32_111 : i32 to vector<16x128xi32>
    %304 = arith.cmpi eq, %269, %303 : vector<16x128xi32>
    %cst_112 = arith.constant 0.000000e+00 : f32
    %305 = vector.broadcast %cst_112 : f32 to vector<16x128xf32>
    %306 = arith.select %304, %272, %305 : vector<16x128xi1>, vector<16x128xf32>
    %307 = arith.addf %263, %306 : vector<16x128xf32>
    %c7_i32_113 = arith.constant 7 : i32
    %308 = vector.broadcast %c7_i32_113 : i32 to vector<16x128xi32>
    %309 = arith.cmpi eq, %269, %308 : vector<16x128xi32>
    %cst_114 = arith.constant 0.000000e+00 : f32
    %310 = vector.broadcast %cst_114 : f32 to vector<16x128xf32>
    %311 = arith.select %309, %272, %310 : vector<16x128xi1>, vector<16x128xf32>
    %312 = arith.addf %268, %311 : vector<16x128xf32>
    %313 = vector.extract_strided_slice %1 {offsets = [2, 8], sizes = [16, 128], strides = [1, 1]} : vector<18x256xi32> to vector<16x128xi32>
    %c7 = arith.constant 7 : index
    %c0_115 = arith.constant 0 : index
    %314 = vector.load %arg2[%c7, %c0_115] : memref<9x128xf32, #tpu.memory_space<vmem>>, vector<1x128xf32>
    %315 = vector.shape_cast %314 : vector<1x128xf32> to vector<1x128xf32>
    %316 = vector.broadcast %315 : vector<1x128xf32> to vector<16x128xf32>
    %c0_i32_116 = arith.constant 0 : i32
    %317 = vector.broadcast %c0_i32_116 : i32 to vector<16x128xi32>
    %318 = arith.cmpi eq, %313, %317 : vector<16x128xi32>
    %cst_117 = arith.constant 0.000000e+00 : f32
    %319 = vector.broadcast %cst_117 : f32 to vector<16x128xf32>
    %320 = arith.select %318, %316, %319 : vector<16x128xi1>, vector<16x128xf32>
    %321 = arith.addf %277, %320 : vector<16x128xf32>
    %c1_i32_118 = arith.constant 1 : i32
    %322 = vector.broadcast %c1_i32_118 : i32 to vector<16x128xi32>
    %323 = arith.cmpi eq, %313, %322 : vector<16x128xi32>
    %cst_119 = arith.constant 0.000000e+00 : f32
    %324 = vector.broadcast %cst_119 : f32 to vector<16x128xf32>
    %325 = arith.select %323, %316, %324 : vector<16x128xi1>, vector<16x128xf32>
    %326 = arith.addf %282, %325 : vector<16x128xf32>
    %c2_i32_120 = arith.constant 2 : i32
    %327 = vector.broadcast %c2_i32_120 : i32 to vector<16x128xi32>
    %328 = arith.cmpi eq, %313, %327 : vector<16x128xi32>
    %cst_121 = arith.constant 0.000000e+00 : f32
    %329 = vector.broadcast %cst_121 : f32 to vector<16x128xf32>
    %330 = arith.select %328, %316, %329 : vector<16x128xi1>, vector<16x128xf32>
    %331 = arith.addf %287, %330 : vector<16x128xf32>
    %c3_i32_122 = arith.constant 3 : i32
    %332 = vector.broadcast %c3_i32_122 : i32 to vector<16x128xi32>
    %333 = arith.cmpi eq, %313, %332 : vector<16x128xi32>
    %cst_123 = arith.constant 0.000000e+00 : f32
    %334 = vector.broadcast %cst_123 : f32 to vector<16x128xf32>
    %335 = arith.select %333, %316, %334 : vector<16x128xi1>, vector<16x128xf32>
    %336 = arith.addf %292, %335 : vector<16x128xf32>
    %c4_i32_124 = arith.constant 4 : i32
    %337 = vector.broadcast %c4_i32_124 : i32 to vector<16x128xi32>
    %338 = arith.cmpi eq, %313, %337 : vector<16x128xi32>
    %cst_125 = arith.constant 0.000000e+00 : f32
    %339 = vector.broadcast %cst_125 : f32 to vector<16x128xf32>
    %340 = arith.select %338, %316, %339 : vector<16x128xi1>, vector<16x128xf32>
    %341 = arith.addf %297, %340 : vector<16x128xf32>
    %c5_i32_126 = arith.constant 5 : i32
    %342 = vector.broadcast %c5_i32_126 : i32 to vector<16x128xi32>
    %343 = arith.cmpi eq, %313, %342 : vector<16x128xi32>
    %cst_127 = arith.constant 0.000000e+00 : f32
    %344 = vector.broadcast %cst_127 : f32 to vector<16x128xf32>
    %345 = arith.select %343, %316, %344 : vector<16x128xi1>, vector<16x128xf32>
    %346 = arith.addf %302, %345 : vector<16x128xf32>
    %c6_i32_128 = arith.constant 6 : i32
    %347 = vector.broadcast %c6_i32_128 : i32 to vector<16x128xi32>
    %348 = arith.cmpi eq, %313, %347 : vector<16x128xi32>
    %cst_129 = arith.constant 0.000000e+00 : f32
    %349 = vector.broadcast %cst_129 : f32 to vector<16x128xf32>
    %350 = arith.select %348, %316, %349 : vector<16x128xi1>, vector<16x128xf32>
    %351 = arith.addf %307, %350 : vector<16x128xf32>
    %c7_i32_130 = arith.constant 7 : i32
    %352 = vector.broadcast %c7_i32_130 : i32 to vector<16x128xi32>
    %353 = arith.cmpi eq, %313, %352 : vector<16x128xi32>
    %cst_131 = arith.constant 0.000000e+00 : f32
    %354 = vector.broadcast %cst_131 : f32 to vector<16x128xf32>
    %355 = arith.select %353, %316, %354 : vector<16x128xi1>, vector<16x128xf32>
    %356 = arith.addf %312, %355 : vector<16x128xf32>
    %357 = vector.extract_strided_slice %1 {offsets = [2, 16], sizes = [16, 128], strides = [1, 1]} : vector<18x256xi32> to vector<16x128xi32>
    %c8 = arith.constant 8 : index
    %c0_132 = arith.constant 0 : index
    %358 = vector.load %arg2[%c8, %c0_132] : memref<9x128xf32, #tpu.memory_space<vmem>>, vector<1x128xf32>
    %359 = vector.shape_cast %358 : vector<1x128xf32> to vector<1x128xf32>
    %360 = vector.broadcast %359 : vector<1x128xf32> to vector<16x128xf32>
    %c0_i32_133 = arith.constant 0 : i32
    %361 = vector.broadcast %c0_i32_133 : i32 to vector<16x128xi32>
    %362 = arith.cmpi eq, %357, %361 : vector<16x128xi32>
    %cst_134 = arith.constant 0.000000e+00 : f32
    %363 = vector.broadcast %cst_134 : f32 to vector<16x128xf32>
    %364 = arith.select %362, %360, %363 : vector<16x128xi1>, vector<16x128xf32>
    %365 = arith.addf %321, %364 : vector<16x128xf32>
    %c1_i32_135 = arith.constant 1 : i32
    %366 = vector.broadcast %c1_i32_135 : i32 to vector<16x128xi32>
    %367 = arith.cmpi eq, %357, %366 : vector<16x128xi32>
    %cst_136 = arith.constant 0.000000e+00 : f32
    %368 = vector.broadcast %cst_136 : f32 to vector<16x128xf32>
    %369 = arith.select %367, %360, %368 : vector<16x128xi1>, vector<16x128xf32>
    %370 = arith.addf %326, %369 : vector<16x128xf32>
    %c2_i32_137 = arith.constant 2 : i32
    %371 = vector.broadcast %c2_i32_137 : i32 to vector<16x128xi32>
    %372 = arith.cmpi eq, %357, %371 : vector<16x128xi32>
    %cst_138 = arith.constant 0.000000e+00 : f32
    %373 = vector.broadcast %cst_138 : f32 to vector<16x128xf32>
    %374 = arith.select %372, %360, %373 : vector<16x128xi1>, vector<16x128xf32>
    %375 = arith.addf %331, %374 : vector<16x128xf32>
    %c3_i32_139 = arith.constant 3 : i32
    %376 = vector.broadcast %c3_i32_139 : i32 to vector<16x128xi32>
    %377 = arith.cmpi eq, %357, %376 : vector<16x128xi32>
    %cst_140 = arith.constant 0.000000e+00 : f32
    %378 = vector.broadcast %cst_140 : f32 to vector<16x128xf32>
    %379 = arith.select %377, %360, %378 : vector<16x128xi1>, vector<16x128xf32>
    %380 = arith.addf %336, %379 : vector<16x128xf32>
    %c4_i32_141 = arith.constant 4 : i32
    %381 = vector.broadcast %c4_i32_141 : i32 to vector<16x128xi32>
    %382 = arith.cmpi eq, %357, %381 : vector<16x128xi32>
    %cst_142 = arith.constant 0.000000e+00 : f32
    %383 = vector.broadcast %cst_142 : f32 to vector<16x128xf32>
    %384 = arith.select %382, %360, %383 : vector<16x128xi1>, vector<16x128xf32>
    %385 = arith.addf %341, %384 : vector<16x128xf32>
    %c5_i32_143 = arith.constant 5 : i32
    %386 = vector.broadcast %c5_i32_143 : i32 to vector<16x128xi32>
    %387 = arith.cmpi eq, %357, %386 : vector<16x128xi32>
    %cst_144 = arith.constant 0.000000e+00 : f32
    %388 = vector.broadcast %cst_144 : f32 to vector<16x128xf32>
    %389 = arith.select %387, %360, %388 : vector<16x128xi1>, vector<16x128xf32>
    %390 = arith.addf %346, %389 : vector<16x128xf32>
    %c6_i32_145 = arith.constant 6 : i32
    %391 = vector.broadcast %c6_i32_145 : i32 to vector<16x128xi32>
    %392 = arith.cmpi eq, %357, %391 : vector<16x128xi32>
    %cst_146 = arith.constant 0.000000e+00 : f32
    %393 = vector.broadcast %cst_146 : f32 to vector<16x128xf32>
    %394 = arith.select %392, %360, %393 : vector<16x128xi1>, vector<16x128xf32>
    %395 = arith.addf %351, %394 : vector<16x128xf32>
    %c7_i32_147 = arith.constant 7 : i32
    %396 = vector.broadcast %c7_i32_147 : i32 to vector<16x128xi32>
    %397 = arith.cmpi eq, %357, %396 : vector<16x128xi32>
    %cst_148 = arith.constant 0.000000e+00 : f32
    %398 = vector.broadcast %cst_148 : f32 to vector<16x128xf32>
    %399 = arith.select %397, %360, %398 : vector<16x128xi1>, vector<16x128xf32>
    %400 = arith.addf %356, %399 : vector<16x128xf32>
    %cst_149 = arith.constant 0.000000e+00 : f32
    %401 = vector.broadcast %cst_149 : f32 to vector<16x128xf32>
    %402 = arith.maximumf %365, %401 : vector<16x128xf32>
    %c0_150 = arith.constant 0 : index
    %c0_151 = arith.constant 0 : index
    %c0_152 = arith.constant 0 : index
    %c0_153 = arith.constant 0 : index
    %403 = vector.load %arg4[%c0_150, %c0_151, %c0_152, %c0_153] : memref<1x8x16x128xf32, #tpu.memory_space<vmem>>, vector<1x1x16x128xf32>
    %404 = vector.shape_cast %403 : vector<1x1x16x128xf32> to vector<16x128xf32>
    %405 = vector.shape_cast %402 : vector<16x128xf32> to vector<1x1x16x128xf32>
    tpu.vector_store %arg4[%c0_150, %c0_151, %c0_152, %c0_153], %405 {strides = array<i32>} : memref<1x8x16x128xf32, #tpu.memory_space<vmem>>, vector<1x1x16x128xf32>,
    %cst_154 = arith.constant 0.000000e+00 : f32
    %406 = vector.broadcast %cst_154 : f32 to vector<16x128xf32>
    %407 = arith.maximumf %370, %406 : vector<16x128xf32>
    %c0_155 = arith.constant 0 : index
    %c1_156 = arith.constant 1 : index
    %c0_157 = arith.constant 0 : index
    %c0_158 = arith.constant 0 : index
    %408 = vector.load %arg4[%c0_155, %c1_156, %c0_157, %c0_158] : memref<1x8x16x128xf32, #tpu.memory_space<vmem>>, vector<1x1x16x128xf32>
    %409 = vector.shape_cast %408 : vector<1x1x16x128xf32> to vector<16x128xf32>
    %410 = vector.shape_cast %407 : vector<16x128xf32> to vector<1x1x16x128xf32>
    tpu.vector_store %arg4[%c0_155, %c1_156, %c0_157, %c0_158], %410 {strides = array<i32>} : memref<1x8x16x128xf32, #tpu.memory_space<vmem>>, vector<1x1x16x128xf32>,
    %cst_159 = arith.constant 0.000000e+00 : f32
    %411 = vector.broadcast %cst_159 : f32 to vector<16x128xf32>
    %412 = arith.maximumf %375, %411 : vector<16x128xf32>
    %c0_160 = arith.constant 0 : index
    %c2_161 = arith.constant 2 : index
    %c0_162 = arith.constant 0 : index
    %c0_163 = arith.constant 0 : index
    %413 = vector.load %arg4[%c0_160, %c2_161, %c0_162, %c0_163] : memref<1x8x16x128xf32, #tpu.memory_space<vmem>>, vector<1x1x16x128xf32>
    %414 = vector.shape_cast %413 : vector<1x1x16x128xf32> to vector<16x128xf32>
    %415 = vector.shape_cast %412 : vector<16x128xf32> to vector<1x1x16x128xf32>
    tpu.vector_store %arg4[%c0_160, %c2_161, %c0_162, %c0_163], %415 {strides = array<i32>} : memref<1x8x16x128xf32, #tpu.memory_space<vmem>>, vector<1x1x16x128xf32>,
    %cst_164 = arith.constant 0.000000e+00 : f32
    %416 = vector.broadcast %cst_164 : f32 to vector<16x128xf32>
    %417 = arith.maximumf %380, %416 : vector<16x128xf32>
    %c0_165 = arith.constant 0 : index
    %c3_166 = arith.constant 3 : index
    %c0_167 = arith.constant 0 : index
    %c0_168 = arith.constant 0 : index
    %418 = vector.load %arg4[%c0_165, %c3_166, %c0_167, %c0_168] : memref<1x8x16x128xf32, #tpu.memory_space<vmem>>, vector<1x1x16x128xf32>
    %419 = vector.shape_cast %418 : vector<1x1x16x128xf32> to vector<16x128xf32>
    %420 = vector.shape_cast %417 : vector<16x128xf32> to vector<1x1x16x128xf32>
    tpu.vector_store %arg4[%c0_165, %c3_166, %c0_167, %c0_168], %420 {strides = array<i32>} : memref<1x8x16x128xf32, #tpu.memory_space<vmem>>, vector<1x1x16x128xf32>,
    %cst_169 = arith.constant 0.000000e+00 : f32
    %421 = vector.broadcast %cst_169 : f32 to vector<16x128xf32>
    %422 = arith.maximumf %385, %421 : vector<16x128xf32>
    %c0_170 = arith.constant 0 : index
    %c4_171 = arith.constant 4 : index
    %c0_172 = arith.constant 0 : index
    %c0_173 = arith.constant 0 : index
    %423 = vector.load %arg4[%c0_170, %c4_171, %c0_172, %c0_173] : memref<1x8x16x128xf32, #tpu.memory_space<vmem>>, vector<1x1x16x128xf32>
    %424 = vector.shape_cast %423 : vector<1x1x16x128xf32> to vector<16x128xf32>
    %425 = vector.shape_cast %422 : vector<16x128xf32> to vector<1x1x16x128xf32>
    tpu.vector_store %arg4[%c0_170, %c4_171, %c0_172, %c0_173], %425 {strides = array<i32>} : memref<1x8x16x128xf32, #tpu.memory_space<vmem>>, vector<1x1x16x128xf32>,
    %cst_174 = arith.constant 0.000000e+00 : f32
    %426 = vector.broadcast %cst_174 : f32 to vector<16x128xf32>
    %427 = arith.maximumf %390, %426 : vector<16x128xf32>
    %c0_175 = arith.constant 0 : index
    %c5_176 = arith.constant 5 : index
    %c0_177 = arith.constant 0 : index
    %c0_178 = arith.constant 0 : index
    %428 = vector.load %arg4[%c0_175, %c5_176, %c0_177, %c0_178] : memref<1x8x16x128xf32, #tpu.memory_space<vmem>>, vector<1x1x16x128xf32>
    %429 = vector.shape_cast %428 : vector<1x1x16x128xf32> to vector<16x128xf32>
    %430 = vector.shape_cast %427 : vector<16x128xf32> to vector<1x1x16x128xf32>
    tpu.vector_store %arg4[%c0_175, %c5_176, %c0_177, %c0_178], %430 {strides = array<i32>} : memref<1x8x16x128xf32, #tpu.memory_space<vmem>>, vector<1x1x16x128xf32>,
    %cst_179 = arith.constant 0.000000e+00 : f32
    %431 = vector.broadcast %cst_179 : f32 to vector<16x128xf32>
    %432 = arith.maximumf %395, %431 : vector<16x128xf32>
    %c0_180 = arith.constant 0 : index
    %c6_181 = arith.constant 6 : index
    %c0_182 = arith.constant 0 : index
    %c0_183 = arith.constant 0 : index
    %433 = vector.load %arg4[%c0_180, %c6_181, %c0_182, %c0_183] : memref<1x8x16x128xf32, #tpu.memory_space<vmem>>, vector<1x1x16x128xf32>
    %434 = vector.shape_cast %433 : vector<1x1x16x128xf32> to vector<16x128xf32>
    %435 = vector.shape_cast %432 : vector<16x128xf32> to vector<1x1x16x128xf32>
    tpu.vector_store %arg4[%c0_180, %c6_181, %c0_182, %c0_183], %435 {strides = array<i32>} : memref<1x8x16x128xf32, #tpu.memory_space<vmem>>, vector<1x1x16x128xf32>,
    %cst_184 = arith.constant 0.000000e+00 : f32
    %436 = vector.broadcast %cst_184 : f32 to vector<16x128xf32>
    %437 = arith.maximumf %400, %436 : vector<16x128xf32>
    %c0_185 = arith.constant 0 : index
    %c7_186 = arith.constant 7 : index
    %c0_187 = arith.constant 0 : index
    %c0_188 = arith.constant 0 : index
    %438 = vector.load %arg4[%c0_185, %c7_186, %c0_187, %c0_188] : memref<1x8x16x128xf32, #tpu.memory_space<vmem>>, vector<1x1x16x128xf32>
    %439 = vector.shape_cast %438 : vector<1x1x16x128xf32> to vector<16x128xf32>
    %440 = vector.shape_cast %437 : vector<16x128xf32> to vector<1x1x16x128xf32>
    tpu.vector_store %arg4[%c0_185, %c7_186, %c0_187, %c0_188], %440 {strides = array<i32>} : memref<1x8x16x128xf32, #tpu.memory_space<vmem>>, vector<1x1x16x128xf32>,
    return
  }
  func.func @transform_0(%arg0: i32) -> (i32, i32, i32) {
    %c0_i32 = arith.constant 0 : i32
    %c0_i32_0 = arith.constant 0 : i32
    %c0_i32_1 = arith.constant 0 : i32
    return %arg0, %c0_i32, %c0_i32_0 : i32, i32, i32
  }
  func.func @transform_1(%arg0: i32) -> (i32, i32) {
    %c0_i32 = arith.constant 0 : i32
    %c0_i32_0 = arith.constant 0 : i32
    %c0_i32_1 = arith.constant 0 : i32
    return %c0_i32, %c0_i32_0 : i32, i32
  }
  func.func @transform_2(%arg0: i32) -> (i32, i32) {
    %c0_i32 = arith.constant 0 : i32
    %c0_i32_0 = arith.constant 0 : i32
    %c0_i32_1 = arith.constant 0 : i32
    return %c0_i32, %c0_i32_0 : i32, i32
  }
  func.func @transform_3(%arg0: i32) -> (i32, i32, i32, i32) {
    %c0_i32 = arith.constant 0 : i32
    %c0_i32_0 = arith.constant 0 : i32
    %c0_i32_1 = arith.constant 0 : i32
    %c0_i32_2 = arith.constant 0 : i32
    return %arg0, %c0_i32, %c0_i32_0, %c0_i32_1 : i32, i32, i32, i32
  }
}

</mosaic_0001>

<bundles_post_ra>
// kernel: tpu_custom_call.1
= control target key start
LH: loop header
LB: loop body
LE: loop exit
PB: predicated region body
PF: predicated region fallthrough
CT: control target
= control target key end

     0   :  { %8 = vsyncpa [#allocation3], 0  ;;  %s4343_s0 = inlined_call_operand.vmem [shape: s32[2,18,256], index: 0, kind: input, shape index: {}]   ;;  %s4344_s1 = inlined_call_operand.vmem [shape: f32[9,128], index: 1, kind: input, shape index: {}]   ;;  %s4345_s2 = inlined_call_operand.vmem [shape: f32[1,128], index: 2, kind: input, shape index: {}]   ;;  %s4346_s3 = inlined_call_operand.hbm [shape: f32[2,8,16,128], index: 3, kind: output, shape index: {}]  }
   0x1   :  { %10 = vsyncpa [#allocation3 + $0x1], 0  ;;  %s2339_s12 = smov 0   ;;  %s2341_s13 = smov 0  }
   0x2   :  { %s2343_s14 = smov 0   ;;  %s2345_s15 = smov 0  }
   0x3 LB: > { %s2360_s16 = sadd.s32 4294967295, %s2312_s15   ;;  %s2166_s17 = sadd.s32 4294967294, %s2312_s15   ;;  %s2312_s15 = sphi %s2345_s15, %s4698_s15   ;;  %s2308_s14 = sphi %s2343_s14, %s4697_s14   ;;  %s2304_s13 = sphi %s2341_s13, %s4696_s13   ;;  %s2300_s12 = sphi %s2339_s12, %s4695_s12  }
   0x4   : > { %s2364_s18 = sadd.s32 1, %s2312_s15   ;;  %s91_s19 = sadd.s32 1, %s2308_s14 }
   0x5   : > { %s88_s20 = ssub.s32 %s2312_s15, %s2364_s18  ;;  %p101_p0 = scmp.ne.s32.totalorder %s2308_s14, %s2304_s13 }
   0x6   : > { %p89_p1 = scmp.eq.s32.totalorder %s88_s20, 0  ;;  %p102_p2 = scmp.eq.s32.totalorder %s2360_s16, 1 }
   0x7   : > { %p107_p3 = scmp.ne.s32.totalorder %s2304_s13, %s2300_s12  ;;  %p108_p4 = scmp.eq.s32.totalorder %s2166_s17, 1 }
   0x8   : > { %s2375_s21 = scalar_select %p89_p1, %s2308_s14, %s91_s19  }
   0x9   : > { %p2377_p5 = por %p102_p2, %p101_p0  ;;  %p2381_p6 = por %p108_p4, %p107_p3 }
   0xa   : > { %p2169_p7 = scmp.ge.s32.totalorder %s2312_s15, 1  ;;  %p140_p8 = scmp.lt.s32.totalorder %s2312_s15, 3 }
   0xc   : > { %p141_p9 = pnand %p2169_p7, %p140_p8 }
   0xe   : > { %144 = sbr.rel (%p141_p9) target bundleno = 1219 (0x4c3), region = 32 }
  0x13   : > { %v2237_v0 = vld [vmem:[%s4344_s1 + $0x1] ss:$0 sm:$0xff]  ;;  %s2314_s26 = smov 8   ;;  %v2238_v1 = vld [vmem:[%s4344_s1 + $0x2] ss:$0 sm:$0xff]  ;;  %s2315_s29 = smov 16  }
  0x14   : > { %234 = vrot.lane.b32.xlu0 %v2237_v0, %s2314_s26  ;;  %p164_p10 = scmp.lt.s32.totalorder %s2360_s16, 1  ;;  %s2316_s8 = smov 120  }
  0x15   : > { %s2317_s9 = smov 112   ;;  %s2191_s28 = sshll.u32 %s2360_s16, 7 }
  0x16   : > { %s165_s30 = scalar_select %p164_p10, %s2360_s16, 1 }
  0x17   : > { %s2100_s5 = scalar_lea.hbm %s4346_s3, %s2191_s28  ;;  %s2270_s19 = scalar_lea.hbm %s4346_s3, 256 }
  0x18   : > { %s2192_s4 = smul.u32 48, %s165_s30  ;;  %s2103_s16 = sshll.u32 %s2100_s5, 4  ;;  %s2104_s16 = int_to_ptr.hbm [resolvable:$true] %s2103_s16 }
  0x19   : > { %s2264_s10 = sshra.s32 %s2104_s16, 4  ;;  %s2265_s10 = int_to_ptr.hbm [resolvable:$true] %s2264_s10 }
  0x1a   : > { %s2400_s7 = scalar_lea.vmem %s4343_s0, %s2192_s4  ;;  %s2266_s11 = scalar_lea.hbm %s2265_s10, 128 }
  0x1b   : > { %v2403_v2 = vld [vmem:[%s2400_s7 + $0x18] sm:$0xff]  ;;  %v2406_v3 = vld [vmem:[%s2400_s7 + $0x8] sm:$0xff]  ;;  %v2409_v4 = vld [vmem:[%s2400_s7] sm:$0xff]  ;;  %p2267_p11 = scmp.ne.s32.totalorder %s2265_s10, %s2266_s11  ;;  %p2271_p0 = scmp.lt.s32.totalorder %s2265_s10, %s4346_s3 }
  0x1c   : > { %431 = vrot.lane.b32.xlu0 %v2238_v1, %s2315_s29  ;;  %vm4381_vm0 = vcmp.eq.s32.totalorder %v2403_v2, 0  ;;  %vm4366_vm1 = vcmp.eq.s32.totalorder %v2406_v3, 0  ;;  %vm4367_vm2 = vcmp.eq.s32.totalorder %v2409_v4, 0  ;;  %v2429_v9 = vld [vmem:[%s2400_s7 + $0x10] sm:$0xff]  ;;  %vm4376_vm4 = vcmp.eq.s32.totalorder %v2409_v4, 1  ;;  %p2272_p1 = scmp.lt.s32.totalorder %s2270_s19, %s2266_s11 }
  0x1d   : > { %vm182_vm3 = vcmp.eq.s32.totalorder %v2429_v9, 0  ;;  %vm4380_vm5 = vcmp.eq.s32.totalorder %v2406_v3, 1  ;;  %vm4364_vm6 = vcmp.eq.s32.totalorder %v2429_v9, 1  ;;  %vm4368_vm7 = vcmp.eq.s32.totalorder %v2403_v2, 1  ;;  %p2268_p12 = pnand %p2267_p11, %p2377_p5 }
  0x1e   : > { %vm4363_vm8 = vcmp.eq.s32.totalorder %v2409_v4, 2  ;;  %vm4347_vm9 = vcmp.eq.s32.totalorder %v2406_v3, 2  ;;  %vm4372_vm10 = vcmp.eq.s32.totalorder %v2429_v9, 2  ;;  %vm4365_vm11 = vcmp.eq.s32.totalorder %v2403_v2, 2  ;;  %p2273_p2 = por %p2272_p1, %p2271_p0 }
  0x1f   : > { %vm4348_vm12 = vcmp.eq.s32.totalorder %v2409_v4, 3  ;;  %vm4349_vm13 = vcmp.eq.s32.totalorder %v2406_v3, 3  ;;  %vm4350_vm14 = vcmp.eq.s32.totalorder %v2429_v9, 3  ;;  %vm4351_vm15 = vcmp.eq.s32.totalorder %v2403_v2, 3  ;;  %p2269_p13 = pneg %p2268_p12 }
  0x21   : > { %p2274_p3 = pnand %p2273_p2, %p2269_p13 }
  0x86   : > { %v2414_v5 = vpop.permute.xlu0 %234 }
  0x87   : > { %v240_v6 = vsel %vm4381_vm0, %v2414_v5, 0.0  ;;  %v238_v7 = vsel %vm4366_vm1, %v2414_v5, 0.0  ;;  %v237_v8 = vsel %vm4367_vm2, %v2414_v5, 0.0  ;;  %v239_v10 = vsel %vm182_vm3, %v2414_v5, 0.0 }
  0x88   : > { %251 = vrot.lane.b32.xlu2 %v240_v6, %s2316_s8  ;;  %247 = vrot.lane.b32.xlu1 %v238_v7, %s2316_s8  ;;  %v262_v11 = vsel %vm4376_vm4, %v2414_v5, 0.0  ;;  %v263_v12 = vsel %vm4380_vm5, %v2414_v5, 0.0  ;;  %v264_v13 = vsel %vm4364_vm6, %v2414_v5, 0.0  ;;  %v265_v14 = vsel %vm4368_vm7, %v2414_v5, 0.0 }
  0x89   : > { %245 = vrot.lane.b32.xlu0 %v237_v8, %s2316_s8  ;;  %v286_v15 = vsel %vm4363_vm8, %v2414_v5, 0.0  ;;  %v287_v16 = vsel %vm4347_vm9, %v2414_v5, 0.0  ;;  %v288_v17 = vsel %vm4372_vm10, %v2414_v5, 0.0  ;;  %v289_v18 = vsel %vm4365_vm11, %v2414_v5, 0.0 }
  0x8a   : > { %v310_v19 = vsel %vm4348_vm12, %v2414_v5, 0.0  ;;  %v311_v20 = vsel %vm4349_vm13, %v2414_v5, 0.0  ;;  %v312_v21 = vsel %vm4350_vm14, %v2414_v5, 0.0  ;;  %vm4352_vm9 = vcmp.eq.s32.totalorder %v2409_v4, 4 }
  0x8b   : > { %vm4353_vm12 = vcmp.eq.s32.totalorder %v2406_v3, 4  ;;  %v313_v22 = vsel %vm4351_vm15, %v2414_v5, 0.0  ;;  %v334_v23 = vsel %vm4352_vm9, %v2414_v5, 0.0  ;;  %vm4354_vm13 = vcmp.eq.s32.totalorder %v2429_v9, 4 }
  0x8c   : > { %v335_v24 = vsel %vm4353_vm12, %v2414_v5, 0.0  ;;  %vm4355_vm14 = vcmp.eq.s32.totalorder %v2403_v2, 4  ;;  %vm4356_vm15 = vcmp.eq.s32.totalorder %v2409_v4, 5  ;;  %v336_v25 = vsel %vm4354_vm13, %v2414_v5, 0.0 }
  0x8d   : > { %v337_v26 = vsel %vm4355_vm14, %v2414_v5, 0.0  ;;  %v358_v27 = vsel %vm4356_vm15, %v2414_v5, 0.0  ;;  %vm4357_vm9 = vcmp.eq.s32.totalorder %v2406_v3, 5  ;;  %vm4358_vm12 = vcmp.eq.s32.totalorder %v2429_v9, 5 }
  0x8e   : > { %vm4359_vm13 = vcmp.eq.s32.totalorder %v2403_v2, 5  ;;  %v359_v28 = vsel %vm4357_vm9, %v2414_v5, 0.0  ;;  %v360_v29 = vsel %vm4358_vm12, %v2414_v5, 0.0  ;;  %vm4360_vm14 = vcmp.eq.s32.totalorder %v2409_v4, 6  ;;  %v2566_v37 = vpop.permute.xlu0 %431 }
  0x8f   : > { %v361_v30 = vsel %vm4359_vm13, %v2414_v5, 0.0  ;;  %vm4361_vm15 = vcmp.eq.s32.totalorder %v2406_v3, 6  ;;  %vm218_vm9 = vcmp.eq.s32.totalorder %v2429_v9, 6  ;;  %v382_v31 = vsel %vm4360_vm14, %v2414_v5, 0.0 }
  0x90   : > { %249 = vrot.lane.b32.xlu1 %v239_v10, %s2316_s8  ;;  %270 = vrot.lane.b32.xlu2 %v262_v11, %s2316_s8  ;;  %v383_v32 = vsel %vm4361_vm15, %v2414_v5, 0.0  ;;  %v384_v33 = vsel %vm218_vm9, %v2414_v5, 0.0  ;;  %vm4362_vm12 = vcmp.eq.s32.totalorder %v2403_v2, 6  ;;  %vm223_vm13 = vcmp.eq.s32.totalorder %v2409_v4, 7 }
  0x91   : > { %272 = vrot.lane.b32.xlu0 %v263_v12, %s2316_s8  ;;  %vm404_vm14 = vcmp.eq.s32.totalorder %v2406_v3, 7  ;;  %v385_v34 = vsel %vm4362_vm12, %v2414_v5, 0.0  ;;  %v406_v35 = vsel %vm223_vm13, %v2414_v5, 0.0  ;;  %vm224_vm15 = vcmp.eq.s32.totalorder %v2429_v9, 7 }
  0x92   : > { %v407_v36 = vsel %vm404_vm14, %v2414_v5, 0.0  ;;  %vm405_vm12 = vcmp.eq.s32.totalorder %v2403_v2, 7  ;;  %v436_v38 = vsel %vm182_vm3, %v2566_v37, 0.0  ;;  %v408_v39 = vsel %vm224_vm15, %v2414_v5, 0.0 }
  0x93   : > { %v409_v40 = vsel %vm405_vm12, %v2414_v5, 0.0  ;;  %v435_v41 = vsel %vm4366_vm1, %v2566_v37, 0.0  ;;  %v434_v42 = vsel %vm4367_vm2, %v2566_v37, 0.0  ;;  %v458_v43 = vsel %vm4380_vm5, %v2566_v37, 0.0 }
  0x94   : > { %v457_v45 = vsel %vm4376_vm4, %v2566_v37, 0.0  ;;  %v437_v46 = vsel %vm4381_vm0, %v2566_v37, 0.0  ;;  %v479_v47 = vsel %vm4363_vm8, %v2566_v37, 0.0  ;;  %v460_v49 = vsel %vm4368_vm7, %v2566_v37, 0.0 }
  0x95   : > { %v459_v50 = vsel %vm4364_vm6, %v2566_v37, 0.0  ;;  %v482_v51 = vsel %vm4365_vm11, %v2566_v37, 0.0  ;;  %v481_v53 = vsel %vm4372_vm10, %v2566_v37, 0.0  ;;  %vm4390_vm8 = vcmp.eq.s32.totalorder %v2406_v3, 2 }
  0x96   : > { %v480_v54 = vsel %vm4390_vm8, %v2566_v37, 0.0  ;;  %vm4391_vm6 = vcmp.eq.s32.totalorder %v2429_v9, 3  ;;  %vm4393_vm11 = vcmp.eq.s32.totalorder %v2406_v3, 3  ;;  %vm4394_vm8 = vcmp.eq.s32.totalorder %v2409_v4, 3 }
  0x97   : > { %v503_v55 = vsel %vm4391_vm6, %v2566_v37, 0.0  ;;  %v502_v59 = vsel %vm4393_vm11, %v2566_v37, 0.0  ;;  %v501_v60 = vsel %vm4394_vm8, %v2566_v37, 0.0  ;;  %vm4395_vm6 = vcmp.eq.s32.totalorder %v2406_v3, 4 }
  0x98   : > { %274 = vrot.lane.b32.xlu1 %v264_v13, %s2316_s8  ;;  %276 = vrot.lane.b32.xlu2 %v265_v14, %s2316_s8  ;;  %v524_v61 = vsel %vm4395_vm6, %v2566_v37, 0.0  ;;  %vm4397_vm11 = vcmp.eq.s32.totalorder %v2409_v4, 4  ;;  %vm4398_vm8 = vcmp.eq.s32.totalorder %v2403_v2, 3  ;;  %vm4399_vm6 = vcmp.eq.s32.totalorder %v2409_v4, 5 }
  0x99   : > { %294 = vrot.lane.b32.xlu0 %v286_v15, %s2316_s8  ;;  %v523_v1 = vsel %vm4397_vm11, %v2566_v37, 0.0  ;;  %v504_v5 = vsel %vm4398_vm8, %v2566_v37, 0.0  ;;  %v545_v6 = vsel %vm4399_vm6, %v2566_v37, 0.0  ;;  %vm4401_vm11 = vcmp.eq.s32.totalorder %v2403_v2, 4 }
  0x9a   : > { %v526_v11 = vsel %vm4401_vm11, %v2566_v37, 0.0  ;;  %vm4402_vm8 = vcmp.eq.s32.totalorder %v2429_v9, 4  ;;  %vm4403_vm6 = vcmp.eq.s32.totalorder %v2403_v2, 5  ;;  %vm4406_vm11 = vcmp.eq.s32.totalorder %v2429_v9, 5 }
  0x9b   : > { %v525_v12 = vsel %vm4402_vm8, %v2566_v37, 0.0  ;;  %v548_v13 = vsel %vm4403_vm6, %v2566_v37, 0.0  ;;  %vm4407_vm8 = vcmp.eq.s32.totalorder %v2406_v3, 5  ;;  %vm4410_vm6 = vcmp.eq.s32.totalorder %v2406_v3, 6 }
  0xa0   : > { %296 = vrot.lane.b32.xlu1 %v287_v16, %s2316_s8  ;;  %298 = vrot.lane.b32.xlu2 %v288_v17, %s2316_s8  ;;  %v547_v17 = vsel %vm4406_vm11, %v2566_v37, 0.0  ;;  %vm4411_vm11 = vcmp.eq.s32.totalorder %v2409_v4, 6 }
  0xa1   : > { %300 = vrot.lane.b32.xlu0 %v289_v18, %s2316_s8  ;;  %v546_v18 = vsel %vm4407_vm8, %v2566_v37, 0.0  ;;  %vm4413_vm8 = vcmp.eq.s32.totalorder %v2403_v2, 6 }
  0xa8   : > { %318 = vrot.lane.b32.xlu1 %v310_v19, %s2316_s8  ;;  %320 = vrot.lane.b32.xlu2 %v311_v20, %s2316_s8  ;;  %v569_v19 = vsel %vm218_vm9, %v2566_v37, 0.0 }
  0xa9   : > { %322 = vrot.lane.b32.xlu0 %v312_v21, %s2316_s8 }
  0xb0   : > { %324 = vrot.lane.b32.xlu1 %v313_v22, %s2316_s8  ;;  %342 = vrot.lane.b32.xlu2 %v334_v23, %s2316_s8  ;;  %v568_v23 = vsel %vm4410_vm6, %v2566_v37, 0.0  ;;  %vm4384_vm6 = vcmask 916480  }
  0xb1   : > { %344 = vrot.lane.b32.xlu0 %v335_v24, %s2316_s8  ;;  %v567_v24 = vsel %vm4411_vm11, %v2566_v37, 0.0 }
  0xb8   : > { %346 = vrot.lane.b32.xlu1 %v336_v25, %s2316_s8  ;;  %348 = vrot.lane.b32.xlu2 %v337_v26, %s2316_s8  ;;  %v590_v25 = vsel %vm404_vm14, %v2566_v37, 0.0 }
  0xb9   : > { %366 = vrot.lane.b32.xlu0 %v358_v27, %s2316_s8 }
  0xc0   : > { %368 = vrot.lane.b32.xlu1 %v359_v28, %s2316_s8  ;;  %370 = vrot.lane.b32.xlu2 %v360_v29, %s2316_s8  ;;  %v2241_v29 = vld [vmem:[%s4344_s1 + $0x4] ss:$0 sm:$0xff] }
  0xc1   : > { %372 = vrot.lane.b32.xlu0 %v361_v30, %s2316_s8  ;;  %v589_v30 = vsel %vm223_vm13, %v2566_v37, 0.0 }
  0xc8   : > { %390 = vrot.lane.b32.xlu1 %v382_v31, %s2316_s8  ;;  %392 = vrot.lane.b32.xlu2 %v383_v32, %s2316_s8  ;;  %v570_v31 = vsel %vm4413_vm8, %v2566_v37, 0.0  ;;  %vm4387_vm8 = vcmask 1046528  }
  0xc9   : > { %394 = vrot.lane.b32.xlu0 %v384_v33, %s2316_s8 }
  0xd0   : > { %396 = vrot.lane.b32.xlu1 %v385_v34, %s2316_s8  ;;  %414 = vrot.lane.b32.xlu2 %v406_v35, %s2316_s8  ;;  %v592_v35 = vsel %vm405_vm12, %v2566_v37, 0.0 }
  0xd1   : > { %416 = vrot.lane.b32.xlu0 %v407_v36, %s2316_s8  ;;  %v591_v36 = vsel %vm224_vm15, %v2566_v37, 0.0 }
  0xd8   : > { %418 = vrot.lane.b32.xlu1 %v408_v39, %s2316_s8  ;;  %420 = vrot.lane.b32.xlu2 %v409_v40, %s2316_s8 }
  0xd9   : > { %446 = vrot.lane.b32.xlu0 %v436_v38, %s2317_s9 }
  0xe0   : > { %444 = vrot.lane.b32.xlu2 %v435_v41, %s2317_s9  ;;  %442 = vrot.lane.b32.xlu1 %v434_v42, %s2317_s9 }
  0xe1   : > { %467 = vrot.lane.b32.xlu0 %v458_v43, %s2317_s9 }
  0xe2   : > { %v2594_v44 = vpop.permute.xlu2 %251 }
  0xe8   : > { %465 = vrot.lane.b32.xlu2 %v457_v45, %s2317_s9  ;;  %448 = vrot.lane.b32.xlu1 %v437_v46, %s2317_s9 }
  0xe9   : > { %487 = vrot.lane.b32.xlu0 %v479_v47, %s2317_s9 }
  0xea   : > { %v2608_v48 = vpop.permute.xlu2 %270 }
  0xf0   : > { %471 = vrot.lane.b32.xlu2 %v460_v49, %s2317_s9  ;;  %469 = vrot.lane.b32.xlu1 %v459_v50, %s2317_s9 }
  0xf1   : > { %493 = vrot.lane.b32.xlu0 %v482_v51, %s2317_s9 }
  0xf2   : > { %v2622_v52 = vpop.permute.xlu2 %276 }
  0xf8   : > { %491 = vrot.lane.b32.xlu2 %v481_v53, %s2317_s9  ;;  %489 = vrot.lane.b32.xlu1 %v480_v54, %s2317_s9 }
  0xf9   : > { %513 = vrot.lane.b32.xlu0 %v503_v55, %s2317_s9 }
  0xfa   : > { %v2636_v56 = vpop.permute.xlu1 %247  ;;  %v2638_v57 = vpop.permute.xlu2 %298 }
  0xfb   : > { %4392 = vst [vmem:[#allocation5_spill] sm:$0xff] %v2638_v57  ;;  %v2640_v58 = vpop.permute.xlu0 %245 }
 0x100   : > { %511 = vrot.lane.b32.xlu2 %v502_v59, %s2317_s9  ;;  %509 = vrot.lane.b32.xlu1 %v501_v60, %s2317_s9 }
 0x101   : > { %533 = vrot.lane.b32.xlu0 %v524_v61, %s2317_s9 }
 0x102   : > { %v2654_v62 = vpop.permute.xlu1 %249  ;;  %v2656_v63 = vpop.permute.xlu2 %320 }
 0x103   : > { %4396 = vst [vmem:[#allocation6_spill] sm:$0xff] %v2656_v63  ;;  %v2658_v0 = vpop.permute.xlu0 %272 }
 0x108   : > { %531 = vrot.lane.b32.xlu2 %v523_v1, %s2317_s9  ;;  %515 = vrot.lane.b32.xlu1 %v504_v5, %s2317_s9 }
 0x109   : > { %553 = vrot.lane.b32.xlu0 %v545_v6, %s2317_s9 }
 0x10a   : > { %v2672_v7 = vpop.permute.xlu1 %274  ;;  %v2674_v8 = vpop.permute.xlu2 %342 }
 0x10b   : > { %v2676_v10 = vpop.permute.xlu0 %294 }
 0x10c   : > { %4400 = vst [vmem:[#allocation7_spill] sm:$0xff] %v2676_v10 }
 0x110   : > { %537 = vrot.lane.b32.xlu2 %v526_v11, %s2317_s9  ;;  %535 = vrot.lane.b32.xlu1 %v525_v12, %s2317_s9 }
 0x111   : > { %559 = vrot.lane.b32.xlu0 %v548_v13, %s2317_s9 }
 0x112   : > { %v2690_v14 = vpop.permute.xlu1 %296  ;;  %v2692_v15 = vpop.permute.xlu2 %348 }
 0x113   : > { %4404 = vst [vmem:[#allocation8_spill] sm:$0xff] %v2690_v14  ;;  %v2694_v16 = vpop.permute.xlu0 %300 }
 0x114   : > { %4405 = vst [vmem:[#allocation9_spill] sm:$0xff] %v2694_v16 }
 0x118   : > { %557 = vrot.lane.b32.xlu2 %v547_v17, %s2317_s9  ;;  %555 = vrot.lane.b32.xlu1 %v546_v18, %s2317_s9 }
 0x119   : > { %579 = vrot.lane.b32.xlu0 %v569_v19, %s2317_s9 }
 0x11a   : > { %v2708_v20 = vpop.permute.xlu1 %318  ;;  %v2710_v21 = vpop.permute.xlu2 %370 }
 0x11b   : > { %4408 = vst [vmem:[#allocation10_spill] sm:$0xff] %v2708_v20  ;;  %v2712_v22 = vpop.permute.xlu0 %322 }
 0x11c   : > { %4409 = vst [vmem:[#allocation11_spill] sm:$0xff] %v2712_v22 }
 0x120   : > { %577 = vrot.lane.b32.xlu2 %v568_v23, %s2317_s9  ;;  %575 = vrot.lane.b32.xlu1 %v567_v24, %s2317_s9 }
 0x121   : > { %599 = vrot.lane.b32.xlu0 %v590_v25, %s2317_s9 }
 0x122   : > { %v2726_v26 = vpop.permute.xlu1 %324  ;;  %v2728_v27 = vpop.permute.xlu2 %392 }
 0x123   : > { %4412 = vst [vmem:[#allocation12_spill] sm:$0xff] %v2726_v26  ;;  %v2730_v28 = vpop.permute.xlu0 %344 }
 0x128   : > { %597 = vrot.lane.b32.xlu2 %v589_v30, %s2317_s9  ;;  %581 = vrot.lane.b32.xlu1 %v570_v31, %s2317_s9 }
 0x129   : > { %746 = vrot.lane.b32.xlu0 %v2241_v29, %s2314_s26 }
 0x12a   : > { %v2744_v32 = vpop.permute.xlu1 %346  ;;  %v2746_v33 = vpop.permute.xlu2 %414 }
 0x12b   : > { %v2748_v34 = vpop.permute.xlu0 %366 }
 0x130   : > { %603 = vrot.lane.b32.xlu2 %v592_v35, %s2317_s9  ;;  %601 = vrot.lane.b32.xlu1 %v591_v36, %s2317_s9 }
 0x132   : > { %v2758_v38 = vpop.permute.xlu1 %368  ;;  %v2760_v39 = vpop.permute.xlu2 %420 }
 0x133   : > { %4414 = vst [vmem:[#allocation13_spill] sm:$0xff] %v2760_v39  ;;  %v2762_v40 = vpop.permute.xlu0 %372 }
 0x13a   : > { %v2764_v41 = vpop.permute.xlu1 %390  ;;  %v2766_v42 = vpop.permute.xlu2 %444 }
 0x13b   : > { %v2768_v43 = vpop.permute.xlu0 %394 }
 0x142   : > { %v2770_v45 = vpop.permute.xlu1 %396  ;;  %v2772_v46 = vpop.permute.xlu2 %465 }
 0x143   : > { %v2774_v37 = vpop.permute.xlu0 %416 }
 0x14a   : > { %v2776_v47 = vpop.permute.xlu1 %418  ;;  %v2780_v50 = vpop.permute.xlu2 %471 }
 0x14b   : > { %4415 = vst [vmem:[#allocation14_spill] sm:$0xff] %v2776_v47  ;;  %v2778_v49 = vpop.permute.xlu0 %446 }
 0x14c   : > { %4416 = vst [vmem:[#allocation15_spill] sm:$0xff] %v2780_v50 }
 0x152   : > { %v2782_v51 = vpop.permute.xlu1 %442  ;;  %v2786_v54 = vpop.permute.xlu2 %491 }
 0x153   : > { %v2784_v53 = vpop.permute.xlu0 %467  ;;  %4417 = vst [vmem:[#allocation16_spill] sm:$0xff] %v2786_v54 }
 0x15a   : > { %v2788_v55 = vpop.permute.xlu1 %448  ;;  %v2792_v60 = vpop.permute.xlu2 %511 }
 0x15b   : > { %v2790_v59 = vpop.permute.xlu0 %487  ;;  %4419 = vst [vmem:[#allocation18_spill] sm:$0xff] %v2792_v60 }
 0x15c   : > { %4418 = vst [vmem:[#allocation17_spill] sm:$0xff] %v2790_v59 }
 0x162   : > { %v2794_v61 = vpop.permute.xlu1 %469  ;;  %v2800_v6 = vpop.permute.xlu2 %531 }
 0x163   : > { %4420 = vst [vmem:[#allocation19_spill] sm:$0xff] %v2794_v61  ;;  %v2796_v1 = vpop.permute.xlu0 %493 }
 0x164   : > { %4421 = vst [vmem:[#allocation20_spill] sm:$0xff] %v2796_v1 }
 0x16a   : > { %v2798_v5 = vpop.permute.xlu1 %489  ;;  %v538_v17 = vpop.permute.xlu2 %537 }
 0x16b   : > { %4422 = vst [vmem:[#allocation21_spill] sm:$0xff] %v2798_v5  ;;  %v2802_v11 = vpop.permute.xlu0 %513 }
 0x16c   : > { %4423 = vst [vmem:[#allocation22_spill] sm:$0xff] %v2802_v11 }
 0x172   : > { %v2804_v12 = vpop.permute.xlu1 %509  ;;  %v558_v23 = vpop.permute.xlu2 %557 }
 0x173   : > { %4424 = vst [vmem:[#allocation23_spill] sm:$0xff] %v2804_v12  ;;  %v2806_v13 = vpop.permute.xlu0 %533 }
 0x17a   : > { %v2808_v18 = vpop.permute.xlu1 %515  ;;  %v578_v31 = vpop.permute.xlu2 %577 }
 0x17b   : > { %4425 = vst [vmem:[#allocation24_spill] sm:$0xff] %v2808_v18  ;;  %v554_v19 = vpop.permute.xlu0 %553 }
 0x182   : > { %v536_v24 = vpop.permute.xlu1 %535  ;;  %v598_v11 = vpop.permute.xlu2 %597 }
 0x183   : > { %v2811_v25 = vsel %vm4384_vm6, %v536_v24, %v538_v17  ;;  %v560_v29 = vpop.permute.xlu0 %559  ;;  %v2826_v24 = vld [vmem:[%s2400_s7 + $0x20] sm:$0x3] }
 0x184   : > { %v2814_v30 = vsel %vm4384_vm6, %v558_v23, %v560_v29  ;;  %vm4385_vm11 = vcmp.eq.s32.totalorder %v2826_v24, 0 }
 0x18a   : > { %v556_v35 = vpop.permute.xlu1 %555 }
 0x18b   : > { %v2817_v36 = vsel %vm4384_vm6, %v554_v19, %v556_v35  ;;  %v580_v47 = vpop.permute.xlu0 %579 }
 0x192   : > { %v576_v39 = vpop.permute.xlu1 %575 }
 0x193   : > { %v2820_v18 = vsel %vm4384_vm6, %v576_v39, %v578_v31  ;;  %v600_v22 = vpop.permute.xlu0 %599 }
 0x194   : > { %v2823_v17 = vsel %vm4384_vm6, %v598_v11, %v600_v22  ;;  %v2844_v11 = vld [vmem:[%s2400_s7 + $0x28] sm:$0x3] }
 0x19a   : > { %v582_v23 = vpop.permute.xlu1 %581 }
 0x19b   : > { %v2829_v29 = vsel %vm4384_vm6, %v580_v47, %v582_v23  ;;  %v2831_v26 = vpop.permute.xlu0 %746 }
 0x19c   : > { %v751_v19 = vsel %vm182_vm3, %v2831_v26, 0.0  ;;  %v753_v39 = vsel %vm4385_vm11, %v2831_v26, 0.0  ;;  %v750_v22 = vsel %vm4366_vm1, %v2831_v26, 0.0  ;;  %v752_v35 = vsel %vm4381_vm0, %v2831_v26, 0.0 }
 0x19d   : > { %v762_v47 = vrot.slane %v751_v19, 1  ;;  %v767_v31 = vrot.slane %v753_v39, 1  ;;  %v764_v23 = vrot.slane %v750_v22, 1  ;;  %v765_v12 = vrot.slane %v752_v35, 1 }
 0x19e   : > { %v749_v60 = vsel %vm4367_vm2, %v2831_v26, 0.0  ;;  %vm4369_vm1 = vcmp.eq.s32.totalorder %v2844_v11, 0  ;;  %v787_v39 = vsel %vm4380_vm5, %v2831_v26, 0.0  ;;  %v789_v22 = vsel %vm4368_vm7, %v2831_v26, 0.0 }
 0x19f   : > { %v768_v20 = vsel %vm4387_vm8, %v762_v47, %v767_v31  ;;  %v761_v63 = vrot.slane %v749_v60, 1  ;;  %v766_v19 = vsel %vm4387_vm8, %v764_v23, %v765_v12  ;;  %v786_v60 = vsel %vm4376_vm4, %v2831_v26, 0.0 }
 0x1a0   : > { %775 = vrot.lane.b32.xlu0 %v768_v20, %s2316_s8  ;;  %773 = vrot.lane.b32.xlu2 %v766_v19, %s2316_s8  ;;  %vm4426_vm2 = vcmp.eq.s32.totalorder %v2429_v9, 1  ;;  %v754_v31 = vsel %vm4369_vm1, %v2831_v26, 0.0  ;;  %v801_v23 = vrot.slane %v787_v39, 1  ;;  %v802_v59 = vrot.slane %v789_v22, 1 }
 0x1a1   : > { %v763_v35 = vsel %vm4387_vm8, %v761_v63, %v762_v47  ;;  %v788_v20 = vsel %vm4426_vm2, %v2831_v26, 0.0  ;;  %v798_v5 = vrot.slane %v786_v60, 1  ;;  %v769_v54 = vrot.slane %v754_v31, 1 }
 0x1a2   : > { %771 = vrot.lane.b32.xlu1 %v763_v35, %s2316_s8  ;;  %v799_v19 = vrot.slane %v788_v20, 1  ;;  %vm4370_vm7 = vcmp.eq.s32.totalorder %v2844_v11, 1  ;;  %v803_v63 = vsel %vm4387_vm8, %v801_v23, %v802_v59  ;;  %vm4427_vm2 = vcmp.eq.s32.totalorder %v2409_v4, 2 }
 0x1a3   : > { %v823_v35 = vsel %vm4427_vm2, %v2831_v26, 0.0  ;;  %v825_v39 = vsel %vm4372_vm10, %v2831_v26, 0.0  ;;  %v770_v22 = vsel %vm4387_vm8, %v765_v12, %v769_v54  ;;  %v791_v60 = vsel %vm4370_vm7, %v2831_v26, 0.0 }
 0x1a4   : > { %v800_v47 = vsel %vm4387_vm8, %v798_v5, %v799_v19  ;;  %vm4371_vm1 = vcmp.eq.s32.totalorder %v2826_v24, 1  ;;  %v835_v20 = vrot.slane %v823_v35, 1  ;;  %v836_v31 = vrot.slane %v825_v39, 1 }
 0x1a5   : > { %v790_v5 = vsel %vm4371_vm1, %v2831_v26, 0.0  ;;  %v806_v23 = vrot.slane %v791_v60, 1  ;;  %vm4374_vm2 = vcmp.eq.s32.totalorder %v2844_v11, 2  ;;  %vm4428_vm7 = vcmp.eq.s32.totalorder %v2403_v2, 2 }
 0x1a6   : > { %v837_v54 = vsel %vm4387_vm8, %v835_v20, %v836_v31  ;;  %vm4373_vm1 = vcmp.eq.s32.totalorder %v2826_v24, 2  ;;  %vm4429_vm10 = vcmp.eq.s32.totalorder %v2406_v3, 2  ;;  %vm4437_vm4 = vcmp.eq.s32.totalorder %v2429_v9, 4 }
 0x1a7   : > { %v807_v12 = vsel %vm4387_vm8, %v802_v59, %v806_v23  ;;  %v827_v39 = vsel %vm4373_vm1, %v2831_v26, 0.0  ;;  %v824_v59 = vsel %vm4429_vm10, %v2831_v26, 0.0  ;;  %vm4430_vm1 = vcmp.eq.s32.totalorder %v2429_v9, 3 }
 0x1a8   : > { %810 = vrot.lane.b32.xlu0 %v803_v63, %s2316_s8  ;;  %808 = vrot.lane.b32.xlu2 %v800_v47, %s2316_s8  ;;  %v804_v63 = vrot.slane %v790_v5, 1  ;;  %v826_v47 = vsel %vm4428_vm7, %v2831_v26, 0.0  ;;  %v841_v20 = vrot.slane %v827_v39, 1  ;;  %v838_v23 = vrot.slane %v824_v59, 1 }
 0x1a9   : > { %v839_v60 = vrot.slane %v826_v47, 1  ;;  %vm4375_vm7 = vcmp.eq.s32.totalorder %v2826_v24, 3  ;;  %vm4431_vm10 = vcmp.eq.s32.totalorder %v2406_v3, 3  ;;  %vm4444_vm5 = vcmp.eq.s32.totalorder %v2409_v4, 6 }
 0x1aa   : > { %777 = vrot.lane.b32.xlu1 %v770_v22, %s2316_s8  ;;  %v828_v22 = vsel %vm4374_vm2, %v2831_v26, 0.0  ;;  %v805_v35 = vsel %vm4387_vm8, %v799_v19, %v804_v63  ;;  %v842_v19 = vsel %vm4387_vm8, %v836_v31, %v841_v20  ;;  %v862_v63 = vsel %vm4430_vm1, %v2831_v26, 0.0 }
 0x1ab   : > { %v843_v5 = vrot.slane %v828_v22, 1  ;;  %v840_v47 = vsel %vm4387_vm8, %v838_v23, %v839_v60  ;;  %v861_v22 = vsel %vm4431_vm10, %v2831_v26, 0.0  ;;  %vm4432_vm2 = vcmp.eq.s32.totalorder %v2403_v2, 3 }
 0x1ac   : > { %v863_v31 = vsel %vm4432_vm2, %v2831_v26, 0.0  ;;  %vm4433_vm1 = vcmp.eq.s32.totalorder %v2409_v4, 3  ;;  %v873_v39 = vrot.slane %v862_v63, 1  ;;  %vm4434_vm2 = vcmp.eq.s32.totalorder %v2406_v3, 4 }
 0x1ad   : > { %v876_v20 = vrot.slane %v863_v31, 1  ;;  %vm4435_vm10 = vcmp.eq.s32.totalorder %v2403_v2, 4  ;;  %vm970_vm0 = vcmp.eq.s32.totalorder %v2844_v11, 6 }
 0x1ae   : > { %v900_v63 = vsel %vm4435_vm10, %v2831_v26, 0.0  ;;  %vm4439_vm10 = vcmp.eq.s32.totalorder %v2429_v9, 5 }
 0x1b0   : > { %845 = vrot.lane.b32.xlu0 %v837_v54, %s2316_s8  ;;  %814 = vrot.lane.b32.xlu2 %v807_v12, %s2316_s8  ;;  %v844_v54 = vsel %vm4387_vm8, %v839_v60, %v843_v5  ;;  %v864_v12 = vsel %vm4375_vm7, %v2831_v26, 0.0  ;;  %v875_v5 = vrot.slane %v861_v22, 1  ;;  %vm4378_vm7 = vcmp.eq.s32.totalorder %v2844_v11, 3 }
 0x1b1   : > { %v878_v59 = vrot.slane %v864_v12, 1  ;;  %v899_v22 = vsel %vm4437_vm4, %v2831_v26, 0.0  ;;  %v865_v31 = vsel %vm4378_vm7, %v2831_v26, 0.0  ;;  %vm4438_vm4 = vcmp.eq.s32.totalorder %v2409_v4, 5 }
 0x1b2   : > { %812 = vrot.lane.b32.xlu1 %v805_v35, %s2316_s8  ;;  %v860_v35 = vsel %vm4433_vm1, %v2831_v26, 0.0  ;;  %v877_v23 = vsel %vm4387_vm8, %v875_v5, %v876_v20  ;;  %vm4436_vm1 = vcmp.eq.s32.totalorder %v2409_v4, 4  ;;  %vm4441_vm7 = vcmp.eq.s32.totalorder %v2406_v3, 5 }
 0x1b3   : > { %v879_v60 = vsel %vm4387_vm8, %v873_v39, %v878_v59  ;;  %v913_v59 = vrot.slane %v900_v63, 1 }
 0x1b8   : > { %851 = vrot.lane.b32.xlu0 %v844_v54, %s2316_s8  ;;  %849 = vrot.lane.b32.xlu2 %v842_v19, %s2316_s8  ;;  %v872_v54 = vrot.slane %v860_v35, 1  ;;  %v898_v19 = vsel %vm4434_vm2, %v2831_v26, 0.0  ;;  %vm4377_vm2 = vcmp.eq.s32.totalorder %v2844_v11, 4 }
 0x1b9   : > { %v912_v35 = vrot.slane %v898_v19, 1  ;;  %v936_v19 = vsel %vm4439_vm10, %v2831_v26, 0.0  ;;  %vm4440_vm10 = vcmp.eq.s32.totalorder %v2403_v2, 5 }
 0x1ba   : > { %847 = vrot.lane.b32.xlu1 %v840_v47, %s2316_s8  ;;  %v874_v12 = vsel %vm4387_vm8, %v872_v54, %v873_v39  ;;  %v897_v47 = vsel %vm4436_vm1, %v2831_v26, 0.0  ;;  %vm678_vm1 = vcmp.eq.s32.totalorder %v2826_v24, 4 }
 0x1bb   : > { %v909_v5 = vrot.slane %v897_v47, 1  ;;  %v914_v39 = vsel %vm4387_vm8, %v912_v35, %v913_v59  ;;  %v902_v47 = vsel %vm4377_vm2, %v2831_v26, 0.0  ;;  %v947_v35 = vrot.slane %v936_v19, 1 }
 0x1bc   : > { %vm694_vm2 = vcmp.eq.s32.totalorder %v2826_v24, 5 }
 0x1bd   : > { %v938_v19 = vsel %vm694_vm2, %v2831_v26, 0.0 }
 0x1c0   : > { %886 = vrot.lane.b32.xlu0 %v879_v60, %s2316_s8  ;;  %884 = vrot.lane.b32.xlu2 %v877_v23, %s2316_s8  ;;  %v910_v60 = vrot.slane %v899_v22, 1  ;;  %v880_v23 = vrot.slane %v865_v31, 1  ;;  %v901_v22 = vsel %vm678_vm1, %v2831_v26, 0.0 }
 0x1c2   : > { %882 = vrot.lane.b32.xlu1 %v874_v12, %s2316_s8  ;;  %v911_v54 = vsel %vm4387_vm8, %v909_v5, %v910_v60  ;;  %v934_v12 = vsel %vm4438_vm4, %v2831_v26, 0.0  ;;  %v881_v63 = vsel %vm4387_vm8, %v876_v20, %v880_v23  ;;  %v917_v5 = vrot.slane %v902_v47, 1 }
 0x1c3   : > { %v946_v31 = vrot.slane %v934_v12, 1  ;;  %vm4379_vm4 = vcmp.eq.s32.totalorder %v2844_v11, 5 }
 0x1c4   : > { %v918_v23 = vsel %vm4387_vm8, %v913_v59, %v917_v5  ;;  %v935_v59 = vsel %vm4441_vm7, %v2831_v26, 0.0  ;;  %vm4442_vm7 = vcmp.eq.s32.totalorder %v2406_v3, 6 }
 0x1c5   : > { %v948_v20 = vsel %vm4387_vm8, %v946_v31, %v947_v35  ;;  %v952_v31 = vrot.slane %v938_v19, 1  ;;  %v949_v5 = vrot.slane %v935_v59, 1 }
 0x1c8   : > { %921 = vrot.lane.b32.xlu0 %v914_v39, %s2316_s8  ;;  %919 = vrot.lane.b32.xlu2 %v911_v54, %s2316_s8  ;;  %v915_v39 = vrot.slane %v901_v22, 1  ;;  %v937_v54 = vsel %vm4440_vm10, %v2831_v26, 0.0  ;;  %vm710_vm10 = vcmp.eq.s32.totalorder %v2826_v24, 6 }
 0x1c9   : > { %v950_v47 = vrot.slane %v937_v54, 1 }
 0x1ca   : > { %888 = vrot.lane.b32.xlu1 %v881_v63, %s2316_s8  ;;  %v939_v63 = vsel %vm4379_vm4, %v2831_v26, 0.0  ;;  %v916_v12 = vsel %vm4387_vm8, %v910_v60, %v915_v39  ;;  %v953_v60 = vsel %vm4387_vm8, %v947_v35, %v952_v31  ;;  %v973_v39 = vsel %vm218_vm9, %v2831_v26, 0.0 }
 0x1cb   : > { %v954_v22 = vrot.slane %v939_v63, 1  ;;  %v951_v54 = vsel %vm4387_vm8, %v949_v5, %v950_v47  ;;  %v972_v63 = vsel %vm4442_vm7, %v2831_v26, 0.0  ;;  %vm4443_vm4 = vcmp.eq.s32.totalorder %v2403_v2, 6 }
 0x1cc   : > { %v974_v35 = vsel %vm4443_vm4, %v2831_v26, 0.0  ;;  %v984_v19 = vrot.slane %v973_v39, 1  ;;  %v1011_v39 = vsel %vm405_vm12, %v2831_v26, 0.0  ;;  %vm4382_vm4 = vcmp.eq.s32.totalorder %v2826_v24, 7 }
 0x1cd   : > { %v987_v31 = vrot.slane %v974_v35, 1  ;;  %v976_v35 = vsel %vm970_vm0, %v2831_v26, 0.0  ;;  %vm4386_vm7 = vcmask 982016  }
 0x1d0   : > { %956 = vrot.lane.b32.xlu0 %v948_v20, %s2316_s8  ;;  %925 = vrot.lane.b32.xlu2 %v918_v23, %s2316_s8  ;;  %v955_v20 = vsel %vm4387_vm8, %v950_v47, %v954_v22  ;;  %v975_v23 = vsel %vm710_vm10, %v2831_v26, 0.0  ;;  %v986_v22 = vrot.slane %v972_v63, 1  ;;  %v1010_v63 = vsel %vm224_vm15, %v2831_v26, 0.0 }
 0x1d1   : > { %v989_v59 = vrot.slane %v975_v23, 1 }
 0x1d2   : > { %923 = vrot.lane.b32.xlu1 %v916_v12, %s2316_s8  ;;  %v971_v12 = vsel %vm4444_vm5, %v2831_v26, 0.0  ;;  %v988_v5 = vsel %vm4387_vm8, %v986_v22, %v987_v31  ;;  %vm4383_vm5 = vcmp.eq.s32.totalorder %v2844_v11, 7 }
 0x1d3   : > { %v990_v47 = vsel %vm4387_vm8, %v984_v19, %v989_v59  ;;  %v1024_v59 = vrot.slane %v1011_v39, 1  ;;  %v1012_v39 = vsel %vm4382_vm4, %v2831_v26, 0.0  ;;  %vm4450_vm4 = vcmp.eq.s32.totalorder %v2409_v4, 4 }
 0x1d8   : > { %962 = vrot.lane.b32.xlu0 %v955_v20, %s2316_s8  ;;  %960 = vrot.lane.b32.xlu2 %v953_v60, %s2316_s8  ;;  %v983_v20 = vrot.slane %v971_v12, 1  ;;  %v1009_v60 = vsel %vm404_vm14, %v2831_v26, 0.0 }
 0x1d9   : > { %v1023_v12 = vrot.slane %v1009_v60, 1  ;;  %v1013_v60 = vsel %vm4383_vm5, %v2831_v26, 0.0  ;;  %vm4452_vm5 = vmmov %vm4450_vm4 }
 0x1da   : > { %958 = vrot.lane.b32.xlu1 %v951_v54, %s2316_s8  ;;  %v985_v23 = vsel %vm4387_vm8, %v983_v20, %v984_v19  ;;  %v1008_v54 = vsel %vm223_vm13, %v2831_v26, 0.0 }
 0x1db   : > { %v1020_v22 = vrot.slane %v1008_v54, 1  ;;  %v1025_v19 = vsel %vm4387_vm8, %v1023_v12, %v1024_v59  ;;  %v2242_v54 = vld [vmem:[%s4344_s1 + $0x5] ss:$0 sm:$0xff] }
 0x1e0   : > { %997 = vrot.lane.b32.xlu0 %v990_v47, %s2316_s8  ;;  %995 = vrot.lane.b32.xlu2 %v988_v5, %s2316_s8  ;;  %v1021_v47 = vrot.slane %v1010_v63, 1  ;;  %v991_v5 = vrot.slane %v976_v35, 1  ;;  %v1028_v63 = vrot.slane %v1013_v60, 1  ;;  %v1026_v35 = vrot.slane %v1012_v39, 1 }
 0x1e2   : > { %993 = vrot.lane.b32.xlu1 %v985_v23, %s2316_s8  ;;  %v1022_v20 = vsel %vm4387_vm8, %v1020_v22, %v1021_v47  ;;  %v992_v23 = vsel %vm4387_vm8, %v987_v31, %v991_v5  ;;  %v1029_v31 = vsel %vm4387_vm8, %v1024_v59, %v1028_v63  ;;  %v1027_v12 = vsel %vm4387_vm8, %v1021_v47, %v1026_v35  ;;  %v3064_v22 = vpop.permute.xlu2 %603 }
 0x1e3   : > { %4445 = vst [vmem:[#allocation25_spill] sm:$0xff] %v3064_v22 }
 0x1e8   : > { %1032 = vrot.lane.b32.xlu0 %v1025_v19, %s2316_s8  ;;  %1030 = vrot.lane.b32.xlu2 %v1022_v20, %s2316_s8  ;;  %v3066_v19 = vpop.permute.xlu1 %601 }
 0x1e9   : > { %4446 = vst [vmem:[#allocation26_spill] sm:$0xff] %v3066_v19 }
 0x1ea   : > { %999 = vrot.lane.b32.xlu1 %v992_v23, %s2316_s8 }
 0x1f0   : > { %1047 = vrot.lane.b32.xlu0 %v2242_v54, %s2315_s29  ;;  %1036 = vrot.lane.b32.xlu2 %v1029_v31, %s2316_s8 }
 0x1f2   : > { %1034 = vrot.lane.b32.xlu1 %v1027_v12, %s2316_s8 }
 0x1fa   : > { %v774_v5 = vpop.permute.xlu2 %773 }
 0x202   : > { %v809_v26 = vpop.permute.xlu2 %808 }
 0x20a   : > { %v815_v23 = vpop.permute.xlu2 %814 }
 0x212   : > { %v776_v20 = vpop.permute.xlu0 %775  ;;  %v850_v35 = vpop.permute.xlu2 %849 }
 0x214   : > { %v772_v60 = vpop.permute.xlu1 %771 }
 0x215   : > { %v3069_v39 = vsel %vm4386_vm7, %v772_v60, %v774_v5  ;;  %v3083_v5 = vld [vmem:[%s4344_s1] ss:$0 sm:$0xff] }
 0x21a   : > { %v811_v59 = vpop.permute.xlu0 %810  ;;  %v885_v22 = vpop.permute.xlu2 %884 }
 0x21b   : > { %v3072_v54 = vsel %vm4386_vm7, %v809_v26, %v811_v59 }
 0x21c   : > { %v778_v47 = vpop.permute.xlu1 %777 }
 0x21d   : > { %v3075_v63 = vsel %vm4386_vm7, %v776_v20, %v778_v47  ;;  %v207_v20 = vsel %vm4450_vm4, %v3083_v5, 0.0  ;;  %v3102_v47 = vld [vmem:[%s4344_s1 + $0x3] ss:$0 sm:$0xff]  ;;  %vm4453_vm4 = vcmp.eq.s32.totalorder %v2429_v9, 4 }
 0x21e   : > { %4447 = vst [vmem:[#allocation27_spill] sm:$0xff] %v3075_v63 }
 0x222   : > { %v846_v31 = vpop.permute.xlu0 %845 }
 0x224   : > { %v813_v12 = vpop.permute.xlu1 %812 }
 0x225   : > { %v3078_v19 = vsel %vm4386_vm7, %v813_v12, %v815_v23  ;;  %v3097_v23 = vld [vmem:[%s4345_s2] ss:$0 sm:$0xff]  ;;  %v350_v12 = vsel %vm4386_vm7, %v2674_v8, %v2730_v28 }
 0x226   : > { %4448 = vst [vmem:[#allocation28_spill] sm:$0xff] %v3078_v19 }
 0x22a   : > { %v852_v1 = vpop.permute.xlu0 %851 }
 0x22b   : > { %v3086_v26 = vsel %vm4386_vm7, %v850_v35, %v852_v1  ;;  %v209_v1 = vadd.f32 %v3097_v23, %v207_v20  ;;  %v679_v35 = vsel %vm4452_vm5, %v3102_v47, 0.0  ;;  %vm4454_vm5 = vmmov %vm4453_vm4 }
 0x22c   : > { %4449 = vst [vmem:[#allocation29_spill] sm:$0xff] %v3086_v26  ;;  %v848_v60 = vpop.permute.xlu1 %847  ;;  %v539_v26 = vsel %vm4384_vm6, %v2800_v6, %v2806_v13  ;;  %v685_v19 = vrot.slane %v679_v35, 1  ;;  %v208_v63 = vsel %vm4454_vm5, %v3083_v5, 0.0  ;;  %v681_v6 = vsel %vm678_vm1, %v3102_v47, 0.0 }
 0x22d   : > { %v3092_v59 = vsel %vm4386_vm7, %v846_v31, %v848_v60  ;;  %v680_v31 = vsel %vm4453_vm4, %v3102_v47, 0.0  ;;  %v920_v60 = vpop.permute.xlu2 %919  ;;  %v354_v10 = vadd.f32 %v350_v12, %v209_v1  ;;  %v210_v28 = vadd.f32 %v3097_v23, %v208_v63 }
 0x22e   : > { %4451 = vst [vmem:[#allocation30_spill] sm:$0xff] %v3092_v59  ;;  %v686_v20 = vrot.slane %v680_v31, 1  ;;  %vm4455_vm4 = vcmp.eq.s32.totalorder %v2429_v9, 5  ;;  %v688_v63 = vrot.slane %v681_v6, 1  ;;  %vm4456_vm5 = vcmp.eq.s32.totalorder %v2409_v4, 5 }
 0x22f   : > { %v543_v16 = vadd.f32 %v539_v26, %v354_v10  ;;  %v213_v35 = vsel %vm4456_vm5, %v3083_v5, 0.0  ;;  %vm4457_vm6 = vmmov %vm4455_vm4 }
 0x230   : > { %v687_v8 = vsel %vm4387_vm8, %v685_v19, %v686_v20  ;;  %v214_v19 = vsel %vm4455_vm4, %v3083_v5, 0.0  ;;  %v689_v31 = vsel %vm4387_vm8, %v686_v20, %v688_v63  ;;  %v215_v12 = vadd.f32 %v3097_v23, %v213_v35  ;;  %vm4458_vm4 = vmmov %vm4456_vm5 }
 0x231   : > { %v692_v61 = vadd.f32 %v687_v8, %v543_v16  ;;  %v374_v8 = vsel %vm4386_vm7, %v2748_v34, %v2758_v38 }
 0x232   : > { %v887_v59 = vpop.permute.xlu0 %886  ;;  %v378_v20 = vadd.f32 %v374_v8, %v215_v12  ;;  %v225_v8 = vsel %vm223_vm13, %v3083_v5, 0.0 }
 0x234   : > { %v883_v14 = vpop.permute.xlu1 %882  ;;  %v565_v38 = vadd.f32 %v2817_v36, %v378_v20  ;;  %v727_v20 = vsel %vm223_vm13, %v3102_v47, 0.0 }
 0x235   : > { %v3118_v57 = vsel %vm4386_vm7, %v883_v14, %v885_v22  ;;  %v351_v14 = vsel %vm4386_vm7, %v2744_v32, %v2692_v15  ;;  %v926_v13 = vpop.permute.xlu2 %925  ;;  %v216_v15 = vadd.f32 %v3097_v23, %v214_v19 }
 0x236   : > { %v355_v1 = vadd.f32 %v351_v14, %v210_v28 }
 0x238   : > { %v544_v32 = vadd.f32 %v2811_v25, %v355_v1  ;;  %v695_v25 = vsel %vm4458_vm4, %v3102_v47, 0.0  ;;  %vm4461_vm4 = vcmp.eq.s32.totalorder %v2406_v3, 0 }
 0x23a   : > { %v922_v50 = vpop.permute.xlu0 %921 }
 0x23b   : > { %v927_v10 = vsel %vm4386_vm7, %v920_v60, %v922_v50  ;;  %v696_v50 = vsel %vm4457_vm6, %v3102_v47, 0.0  ;;  %vm4459_vm6 = vcmp.eq.s32.totalorder %v2409_v4, 6 }
 0x23c   : > { %v3132_v22 = vadd.f32 %v927_v10, %v692_v61  ;;  %v889_v26 = vpop.permute.xlu1 %888  ;;  %v697_v61 = vsel %vm694_vm2, %v3102_v47, 0.0  ;;  %v702_v28 = vrot.slane %v696_v50, 1  ;;  %v693_v10 = vadd.f32 %v689_v31, %v544_v32  ;;  %vm4460_vm5 = vmmov %vm4459_vm6 }
 0x23d   : > { %v3138_v16 = vsel %vm4386_vm7, %v887_v59, %v889_v26  ;;  %v375_v59 = vsel %vm4386_vm7, %v2710_v21, %v2762_v40  ;;  %v704_v6 = vrot.slane %v697_v61, 1  ;;  %v701_v40 = vrot.slane %v695_v25, 1  ;;  %v961_v63 = vpop.permute.xlu2 %960 }
 0x23e   : > { %v379_v14 = vadd.f32 %v375_v59, %v216_v15  ;;  %v219_v35 = vsel %vm4459_vm6, %v3083_v5, 0.0  ;;  %v712_v61 = vsel %vm218_vm9, %v3102_v47, 0.0  ;;  %v398_v59 = vsel %vm4386_vm7, %v2764_v41, %v2728_v27 }
 0x23f   : > { %v705_v34 = vsel %vm4387_vm8, %v702_v28, %v704_v6  ;;  %v703_v15 = vsel %vm4387_vm8, %v701_v40, %v702_v28  ;;  %v221_v32 = vadd.f32 %v3097_v23, %v219_v35  ;;  %v220_v27 = vsel %vm218_vm9, %v3083_v5, 0.0 }
 0x240   : > { %v566_v19 = vadd.f32 %v2814_v30, %v379_v14  ;;  %v711_v30 = vsel %vm4460_vm5, %v3102_v47, 0.0  ;;  %v708_v12 = vadd.f32 %v703_v15, %v565_v38  ;;  %v718_v14 = vrot.slane %v712_v61, 1 }
 0x241   : > { %v717_v6 = vrot.slane %v711_v30, 1  ;;  %v227_v41 = vadd.f32 %v3097_v23, %v225_v8  ;;  %v222_v35 = vadd.f32 %v3097_v23, %v220_v27  ;;  %v399_v38 = vsel %vm4386_vm7, %v2768_v43, %v2770_v45 }
 0x242   : > { %v957_v60 = vpop.permute.xlu0 %956  ;;  %v733_v15 = vrot.slane %v727_v20, 1  ;;  %vm4462_vm6 = vcmp.eq.s32.totalorder %v2403_v2, 0  ;;  %vm4463_vm5 = vcmp.eq.s32.totalorder %v2409_v4, 0 }
 0x243   : > { %v403_v61 = vadd.f32 %v399_v38, %v222_v35 }
 0x244   : > { %v924_v26 = vpop.permute.xlu1 %923 }
 0x245   : > { %v928_v21 = vsel %vm4386_vm7, %v924_v26, %v926_v13  ;;  %v709_v13 = vadd.f32 %v705_v34, %v566_v19  ;;  %v996_v40 = vpop.permute.xlu2 %995  ;;  %v422_v19 = vsel %vm4386_vm7, %v2746_v33, %v2774_v37  ;;  %v588_v43 = vadd.f32 %v2829_v29, %v403_v61 }
 0x246   : > { %v3164_v1 = vadd.f32 %v928_v21, %v693_v10  ;;  %v402_v10 = vadd.f32 %v398_v59, %v221_v32 }
 0x248   : > { %v587_v21 = vadd.f32 %v2820_v18, %v402_v10  ;;  %v713_v18 = vsel %vm710_vm10, %v3102_v47, 0.0 }
 0x249   : > { %v720_v37 = vrot.slane %v713_v18, 1 }
 0x24a   : > { %v963_v50 = vpop.permute.xlu0 %962 }
 0x24b   : > { %v965_v36 = vsel %vm4386_vm7, %v961_v63, %v963_v50  ;;  %v719_v63 = vsel %vm4387_vm8, %v717_v6, %v718_v14  ;;  %v721_v45 = vsel %vm4387_vm8, %v718_v14, %v720_v37 }
 0x24c   : > { %v3183_v31 = vadd.f32 %v965_v36, %v709_v13  ;;  %v959_v25 = vpop.permute.xlu1 %958  ;;  %v426_v13 = vadd.f32 %v422_v19, %v227_v41  ;;  %v724_v50 = vadd.f32 %v719_v63, %v587_v21  ;;  %v725_v27 = vadd.f32 %v721_v45, %v588_v43 }
 0x24d   : > { %v964_v28 = vsel %vm4386_vm7, %v957_v60, %v959_v25  ;;  %v3202_v60 = vsel %vm224_vm15, %v3102_v47, 0.0  ;;  %v1031_v25 = vpop.permute.xlu2 %1030 }
 0x24e   : > { %v3189_v26 = vadd.f32 %v964_v28, %v708_v12  ;;  %v734_v32 = vrot.slane %v3202_v60, 1  ;;  %v609_v59 = vadd.f32 %v2823_v17, %v426_v13 }
 0x250   : > { %v735_v12 = vsel %vm4387_vm8, %v733_v15, %v734_v32 }
 0x251   : > { %v740_v8 = vadd.f32 %v735_v12, %v609_v59 }
 0x252   : > { %v998_v34 = vpop.permute.xlu0 %997 }
 0x254   : > { %v994_v30 = vpop.permute.xlu1 %993 }
 0x255   : > { %v1001_v33 = vsel %vm4386_vm7, %v994_v30, %v996_v40 }
 0x256   : > { %v3218_v36 = vadd.f32 %v1001_v33, %v724_v50 }
 0x25a   : > { %v1033_v28 = vpop.permute.xlu0 %1032 }
 0x25b   : > { %v1038_v6 = vsel %vm4386_vm7, %v1031_v25, %v1033_v28 }
 0x25c   : > { %v3226_v10 = vadd.f32 %v1038_v6, %v740_v8  ;;  %v1000_v41 = vpop.permute.xlu1 %999 }
 0x25d   : > { %v1002_v17 = vsel %vm4386_vm7, %v998_v34, %v1000_v41  ;;  %vm4468_vm7 = vcmp.eq.s32.totalorder %v2844_v11, 0 }
 0x25e   : > { %v3229_v21 = vadd.f32 %v1002_v17, %v725_v27 }
 0x262   : > { %v3231_v40 = vpop.permute.xlu0 %1047 }
 0x263   : > { %v1052_v29 = vsel %vm182_vm3, %v3231_v40, 0.0  ;;  %v1054_v14 = vsel %vm4385_vm11, %v3231_v40, 0.0  ;;  %v1051_v20 = vsel %vm4461_vm4, %v3231_v40, 0.0  ;;  %v1053_v19 = vsel %vm4462_vm6, %v3231_v40, 0.0 }
 0x264   : > { %v1063_v63 = vrot.slane %v1052_v29, 1  ;;  %v1068_v35 = vrot.slane %v1054_v14, 1  ;;  %v1065_v34 = vrot.slane %v1051_v20, 1  ;;  %v1066_v18 = vrot.slane %v1053_v19, 1 }
 0x265   : > { %v1050_v38 = vsel %vm4463_vm5, %v3231_v40, 0.0  ;;  %vm4464_vm4 = vcmp.eq.s32.totalorder %v2406_v3, 1  ;;  %vm4465_vm6 = vcmp.eq.s32.totalorder %v2403_v2, 1  ;;  %vm4466_vm5 = vcmp.eq.s32.totalorder %v2409_v4, 1 }
 0x266   : > { %v1069_v15 = vsel %vm4387_vm8, %v1063_v63, %v1068_v35  ;;  %v1067_v13 = vsel %vm4387_vm8, %v1065_v34, %v1066_v18  ;;  %v1062_v50 = vrot.slane %v1050_v38, 1  ;;  %v1087_v30 = vsel %vm4464_vm4, %v3231_v40, 0.0 }
 0x267   : > { %1076 = vrot.lane.b32.xlu0 %v1069_v15, %s2317_s9  ;;  %1074 = vrot.lane.b32.xlu2 %v1067_v13, %s2317_s9  ;;  %v1089_v33 = vsel %vm4465_vm6, %v3231_v40, 0.0  ;;  %v1086_v37 = vsel %vm4466_vm5, %v3231_v40, 0.0  ;;  %vm4467_vm11 = vcmp.eq.s32.totalorder %v2429_v9, 1  ;;  %v1055_v12 = vsel %vm4468_vm7, %v3231_v40, 0.0 }
 0x268   : > { %v1088_v61 = vsel %vm4467_vm11, %v3231_v40, 0.0  ;;  %v1064_v59 = vsel %vm4387_vm8, %v1062_v50, %v1063_v63  ;;  %v1101_v43 = vrot.slane %v1087_v30, 1  ;;  %v1102_v45 = vrot.slane %v1089_v33, 1 }
 0x269   : > { %1072 = vrot.lane.b32.xlu1 %v1064_v59, %s2317_s9  ;;  %v1098_v25 = vrot.slane %v1086_v37, 1  ;;  %v1099_v8 = vrot.slane %v1088_v61, 1  ;;  %v1070_v28 = vrot.slane %v1055_v12, 1  ;;  %vm4469_vm11 = vcmp.eq.s32.totalorder %v2409_v4, 2 }
 0x26a   : > { %v1103_v6 = vsel %vm4387_vm8, %v1101_v43, %v1102_v45  ;;  %v1122_v41 = vsel %vm4469_vm11, %v3231_v40, 0.0  ;;  %vm4470_vm7 = vcmp.eq.s32.totalorder %v2429_v9, 2  ;;  %vm4471_vm4 = vcmp.eq.s32.totalorder %v2844_v11, 1 }
 0x26b   : > { %v1100_v27 = vsel %vm4387_vm8, %v1098_v25, %v1099_v8  ;;  %v1124_v17 = vsel %vm4470_vm7, %v3231_v40, 0.0  ;;  %v1091_v29 = vsel %vm4471_vm4, %v3231_v40, 0.0  ;;  %v1071_v14 = vsel %vm4387_vm8, %v1066_v18, %v1070_v28 }
 0x26c   : > { %vm4472_vm6 = vcmp.eq.s32.totalorder %v2826_v24, 1  ;;  %v1134_v19 = vrot.slane %v1122_v41, 1  ;;  %v1135_v63 = vrot.slane %v1124_v17, 1  ;;  %v1106_v35 = vrot.slane %v1091_v29, 1 }
 0x26d   : > { %v1090_v20 = vsel %vm4472_vm6, %v3231_v40, 0.0  ;;  %vm4473_vm5 = vcmp.eq.s32.totalorder %v2403_v2, 2  ;;  %vm4474_vm11 = vcmp.eq.s32.totalorder %v2844_v11, 2  ;;  %vm4475_vm7 = vcmp.eq.s32.totalorder %v2826_v24, 2 }
 0x26e   : > { %v1104_v34 = vrot.slane %v1090_v20, 1  ;;  %v1136_v38 = vsel %vm4387_vm8, %v1134_v19, %v1135_v63  ;;  %v1107_v15 = vsel %vm4387_vm8, %v1102_v45, %v1106_v35  ;;  %v1125_v18 = vsel %vm4473_vm5, %v3231_v40, 0.0 }
 0x26f   : > { %1110 = vrot.lane.b32.xlu0 %v1103_v6, %s2317_s9  ;;  %1108 = vrot.lane.b32.xlu2 %v1100_v27, %s2317_s9  ;;  %v1127_v13 = vsel %vm4474_vm11, %v3231_v40, 0.0  ;;  %v1126_v50 = vsel %vm4475_vm7, %v3231_v40, 0.0  ;;  %vm4476_vm4 = vcmp.eq.s32.totalorder %v2406_v3, 2  ;;  %v1138_v37 = vrot.slane %v1125_v18, 1 }
 0x270   : > { %v1105_v30 = vsel %vm4387_vm8, %v1099_v8, %v1104_v34  ;;  %v1123_v33 = vsel %vm4476_vm4, %v3231_v40, 0.0  ;;  %v1142_v61 = vrot.slane %v1127_v13, 1  ;;  %v1140_v59 = vrot.slane %v1126_v50, 1 }
 0x271   : > { %1078 = vrot.lane.b32.xlu1 %v1071_v14, %s2317_s9  ;;  %v1137_v12 = vrot.slane %v1123_v33, 1  ;;  %vm4477_vm6 = vcmp.eq.s32.totalorder %v2429_v9, 3  ;;  %vm4478_vm5 = vcmp.eq.s32.totalorder %v2826_v24, 3  ;;  %vm4479_vm11 = vcmp.eq.s32.totalorder %v2406_v3, 3 }
 0x272   : > { %v1143_v43 = vsel %vm4387_vm8, %v1138_v37, %v1142_v61  ;;  %v1141_v45 = vsel %vm4387_vm8, %v1135_v63, %v1140_v59  ;;  %v1160_v25 = vsel %vm4477_vm6, %v3231_v40, 0.0  ;;  %v1162_v8 = vsel %vm4478_vm5, %v3231_v40, 0.0 }
 0x273   : > { %v1159_v28 = vsel %vm4479_vm11, %v3231_v40, 0.0  ;;  %vm4480_vm7 = vcmp.eq.s32.totalorder %v2403_v2, 3  ;;  %v1139_v27 = vsel %vm4387_vm8, %v1137_v12, %v1138_v37  ;;  %vm4481_vm4 = vcmp.eq.s32.totalorder %v2409_v4, 3 }
 0x274   : > { %v1161_v6 = vsel %vm4480_vm7, %v3231_v40, 0.0  ;;  %v1158_v41 = vsel %vm4481_vm4, %v3231_v40, 0.0  ;;  %v1171_v17 = vrot.slane %v1160_v25, 1  ;;  %v1176_v29 = vrot.slane %v1162_v8, 1 }
 0x275   : > { %v1173_v14 = vrot.slane %v1159_v28, 1  ;;  %v1174_v20 = vrot.slane %v1161_v6, 1  ;;  %v1170_v19 = vrot.slane %v1158_v41, 1  ;;  %vm4482_vm6 = vcmp.eq.s32.totalorder %v2406_v3, 4 }
 0x276   : > { %v1177_v63 = vsel %vm4387_vm8, %v1171_v17, %v1176_v29  ;;  %v1195_v34 = vsel %vm4482_vm6, %v3231_v40, 0.0  ;;  %vm4483_vm5 = vcmp.eq.s32.totalorder %v2403_v2, 4  ;;  %vm4484_vm11 = vcmp.eq.s32.totalorder %v2409_v4, 4 }
 0x277   : > { %1144 = vrot.lane.b32.xlu0 %v1136_v38, %s2317_s9  ;;  %1114 = vrot.lane.b32.xlu2 %v1107_v15, %s2317_s9  ;;  %v1175_v35 = vsel %vm4387_vm8, %v1173_v14, %v1174_v20  ;;  %v1197_v38 = vsel %vm4483_vm5, %v3231_v40, 0.0  ;;  %v1194_v15 = vsel %vm4484_vm11, %v3231_v40, 0.0  ;;  %vm4485_vm7 = vcmp.eq.s32.totalorder %v2429_v9, 4 }
 0x278   : > { %v1196_v18 = vsel %vm4485_vm7, %v3231_v40, 0.0  ;;  %v1172_v13 = vsel %vm4387_vm8, %v1170_v19, %v1171_v17  ;;  %vm4486_vm4 = vcmp.eq.s32.totalorder %v2844_v11, 3  ;;  %v1210_v33 = vrot.slane %v1197_v38, 1 }
 0x279   : > { %1112 = vrot.lane.b32.xlu1 %v1105_v30, %s2317_s9  ;;  %v1163_v50 = vsel %vm4486_vm4, %v3231_v40, 0.0  ;;  %v1209_v30 = vrot.slane %v1195_v34, 1  ;;  %v1206_v37 = vrot.slane %v1194_v15, 1  ;;  %v1207_v61 = vrot.slane %v1196_v18, 1 }
 0x27a   : > { %v1178_v59 = vrot.slane %v1163_v50, 1  ;;  %vm4487_vm6 = vcmp.eq.s32.totalorder %v2409_v4, 5  ;;  %vm4488_vm5 = vcmp.eq.s32.totalorder %v2429_v9, 5  ;;  %vm4489_vm11 = vcmp.eq.s32.totalorder %v2844_v11, 4 }
 0x27b   : > { %v1211_v12 = vsel %vm4387_vm8, %v1209_v30, %v1210_v33  ;;  %v1232_v25 = vsel %vm4488_vm5, %v3231_v40, 0.0  ;;  %v1199_v8 = vsel %vm4489_vm11, %v3231_v40, 0.0  ;;  %v1198_v6 = vsel %vm678_vm1, %v3231_v40, 0.0 }
 0x27c   : > { %v1179_v28 = vsel %vm4387_vm8, %v1174_v20, %v1178_v59  ;;  %v1243_v41 = vrot.slane %v1232_v25, 1  ;;  %v1214_v17 = vrot.slane %v1199_v8, 1  ;;  %v1212_v29 = vrot.slane %v1198_v6, 1 }
 0x27d   : > { %vm4490_vm7 = vcmp.eq.s32.totalorder %v2403_v2, 5  ;;  %vm4491_vm4 = vcmp.eq.s32.totalorder %v2844_v11, 5  ;;  %vm4493_vm5 = vcmp.eq.s32.totalorder %v2406_v3, 6  ;;  %vm4494_vm11 = vcmp.eq.s32.totalorder %v2403_v2, 6 }
 0x27e   : > { %v1215_v19 = vsel %vm4387_vm8, %v1210_v33, %v1214_v17  ;;  %v1233_v20 = vsel %vm4490_vm7, %v3231_v40, 0.0  ;;  %v1213_v34 = vsel %vm4387_vm8, %v1207_v61, %v1212_v29  ;;  %v1267_v59 = vsel %vm4493_vm5, %v3231_v40, 0.0 }
 0x27f   : > { %1150 = vrot.lane.b32.xlu0 %v1143_v43, %s2317_s9  ;;  %1148 = vrot.lane.b32.xlu2 %v1141_v45, %s2317_s9  ;;  %v1208_v43 = vsel %vm4387_vm8, %v1206_v37, %v1207_v61  ;;  %v1230_v45 = vsel %vm4487_vm6, %v3231_v40, 0.0  ;;  %vm4492_vm6 = vcmp.eq.s32.totalorder %v2406_v3, 5  ;;  %v1246_v15 = vrot.slane %v1233_v20, 1 }
 0x280   : > { %v1231_v38 = vsel %vm4492_vm6, %v3231_v40, 0.0  ;;  %v1268_v37 = vsel %vm218_vm9, %v3231_v40, 0.0  ;;  %v1270_v61 = vsel %vm710_vm10, %v3231_v40, 0.0  ;;  %vm4495_vm7 = vcmp.eq.s32.totalorder %v2409_v4, 6 }
 0x281   : > { %1146 = vrot.lane.b32.xlu1 %v1139_v27, %s2317_s9  ;;  %v1242_v27 = vrot.slane %v1230_v45, 1  ;;  %v1245_v50 = vrot.slane %v1231_v38, 1  ;;  %v1266_v45 = vsel %vm4495_vm7, %v3231_v40, 0.0  ;;  %v1279_v25 = vrot.slane %v1268_v37, 1 }
 0x282   : > { %v1284_v8 = vrot.slane %v1270_v61, 1  ;;  %v1303_v29 = vsel %vm404_vm14, %v3231_v40, 0.0  ;;  %v1304_v20 = vsel %vm224_vm15, %v3231_v40, 0.0  ;;  %vm4497_vm6 = vcmp.eq.s32.totalorder %v2826_v24, 7 }
 0x283   : > { %v1244_v14 = vsel %vm4387_vm8, %v1242_v27, %v1243_v41  ;;  %v1278_v27 = vrot.slane %v1266_v45, 1  ;;  %v1306_v61 = vsel %vm4497_vm6, %v3231_v40, 0.0  ;;  %vm4498_vm5 = vcmp.eq.s32.totalorder %v2409_v4, 0 }
 0x284   : > { %vm4500_vm7 = vcmask 982016   ;;  %vm4502_vm6 = vcmask 916480  }
 0x287   : > { %1184 = vrot.lane.b32.xlu0 %v1177_v63, %s2317_s9  ;;  %1182 = vrot.lane.b32.xlu2 %v1175_v35, %s2317_s9  ;;  %v1235_v63 = vsel %vm4491_vm4, %v3231_v40, 0.0  ;;  %v1234_v35 = vsel %vm694_vm2, %v3231_v40, 0.0  ;;  %vm4496_vm4 = vcmp.eq.s32.totalorder %v2844_v11, 7 }
 0x288   : > { %v1250_v18 = vrot.slane %v1235_v63, 1  ;;  %v1280_v63 = vsel %vm4387_vm8, %v1278_v27, %v1279_v25 }
 0x289   : > { %1180 = vrot.lane.b32.xlu1 %v1172_v13, %s2317_s9  ;;  %v1248_v13 = vrot.slane %v1234_v35, 1  ;;  %v1271_v35 = vsel %vm970_vm0, %v3231_v40, 0.0 }
 0x28a   : > { %v1251_v30 = vsel %vm4387_vm8, %v1246_v15, %v1250_v18  ;;  %v1315_v18 = vrot.slane %v1304_v20, 1 }
 0x28b   : > { %v1249_v33 = vsel %vm4387_vm8, %v1243_v41, %v1248_v13  ;;  %v1285_v41 = vsel %vm4387_vm8, %v1279_v25, %v1284_v8  ;;  %v1286_v13 = vrot.slane %v1271_v35, 1  ;;  %v3445_v8 = vpop.permute.xlu2 %1036 }
 0x28f   : > { %1218 = vrot.lane.b32.xlu0 %v1211_v12, %s2317_s9  ;;  %1216 = vrot.lane.b32.xlu2 %v1208_v43, %s2317_s9  ;;  %v1269_v12 = vsel %vm4494_vm11, %v3231_v40, 0.0  ;;  %v1247_v43 = vsel %vm4387_vm8, %v1245_v50, %v1246_v15  ;;  %vm4499_vm11 = vmmov %vm4498_vm5 }
 0x290   : > { %v1282_v6 = vrot.slane %v1269_v12, 1  ;;  %v2244_v12 = vld [vmem:[%s4344_s1 + $0x7] ss:$0 sm:$0xff]  ;;  %v614_v27 = vsel %vm4499_vm11, %v3102_v47, 0.0  ;;  %vm4504_vm11 = vcmp.eq.s32.totalorder %v2429_v9, 1 }
 0x291   : > { %1186 = vrot.lane.b32.xlu1 %v1179_v28, %s2317_s9  ;;  %v1281_v28 = vrot.slane %v1267_v59, 1  ;;  %v621_v20 = vrot.slane %v614_v27, 1 }
 0x292   : > { %v1287_v37 = vsel %vm4387_vm8, %v1282_v6, %v1286_v13 }
 0x293   : > { %v1283_v17 = vsel %vm4387_vm8, %v1281_v28, %v1282_v6 }
 0x297   : > { %1252 = vrot.lane.b32.xlu0 %v1244_v14, %s2317_s9  ;;  %1222 = vrot.lane.b32.xlu2 %v1215_v19, %s2317_s9  ;;  %v1305_v14 = vsel %vm405_vm12, %v3231_v40, 0.0  ;;  %v1302_v19 = vsel %vm223_vm13, %v3231_v40, 0.0 }
 0x298   : > { %v1318_v38 = vrot.slane %v1305_v14, 1  ;;  %v1314_v15 = vrot.slane %v1302_v19, 1  ;;  %v451_v19 = vsel %vm4502_vm6, %v2782_v51, %v2766_v42  ;;  %v632_v42 = vsel %vm4504_vm11, %v3102_v47, 0.0  ;;  %vm4506_vm6 = vmmov %vm4500_vm7 }
 0x299   : > { %1220 = vrot.lane.b32.xlu1 %v1213_v34, %s2317_s9  ;;  %v1317_v34 = vrot.slane %v1303_v29, 1  ;;  %v278_v51 = vsel %vm4500_vm7, %v2608_v48, %v2658_v0 }
 0x29b   : > { %v1319_v50 = vsel %vm4387_vm8, %v1317_v34, %v1318_v38  ;;  %v3466_v34 = vpop.permute.xlu1 %1034 }
 0x29f   : > { %1258 = vrot.lane.b32.xlu0 %v1251_v30, %s2317_s9  ;;  %1256 = vrot.lane.b32.xlu2 %v1249_v33, %s2317_s9  ;;  %v1316_v30 = vsel %vm4387_vm8, %v1314_v15, %v1315_v18  ;;  %v1307_v33 = vsel %vm4496_vm4, %v3231_v40, 0.0  ;;  %v183_v40 = vsel %vm4498_vm5, %v3083_v5, 0.0  ;;  %vm4501_vm4 = vcmp.eq.s32.totalorder %v2409_v4, 1 }
 0x2a0   : > { %v1322_v59 = vrot.slane %v1307_v33, 1  ;;  %v185_v6 = vadd.f32 %v3097_v23, %v183_v40  ;;  %v189_v14 = vsel %vm4501_vm4, %v3083_v5, 0.0  ;;  %vm4503_vm5 = vmmov %vm4501_vm4  ;;  %vm4505_vm4 = vcmp.eq.s32.totalorder %v2826_v24, 0 }
 0x2a1   : > { %1254 = vrot.lane.b32.xlu1 %v1247_v43, %s2317_s9  ;;  %v1320_v43 = vrot.slane %v1306_v61, 1  ;;  %v631_v15 = vsel %vm4503_vm5, %v3102_v47, 0.0  ;;  %vm4507_vm5 = vcmask 916480   ;;  %v638_v61 = vrot.slane %v632_v42, 1 }
 0x2a2   : > { %v1323_v45 = vsel %vm4387_vm8, %v1318_v38, %v1322_v59  ;;  %v184_v38 = vsel %vm182_vm3, %v3083_v5, 0.0  ;;  %v473_v33 = vsel %vm4507_vm5, %v2772_v46, %v2784_v53  ;;  %vm4508_vm11 = vmmov %vm4507_vm5 }
 0x2a3   : > { %v1321_v25 = vsel %vm4387_vm8, %v1315_v18, %v1320_v43  ;;  %v186_v13 = vadd.f32 %v3097_v23, %v184_v38  ;;  %v4515_v38 = vld [vmem:[#allocation19_spill] sm:$0xff] }
 0x2a7   : > { %1292 = vrot.lane.b32.xlu0 %v1285_v41, %s2317_s9  ;;  %1290 = vrot.lane.b32.xlu2 %v1283_v17, %s2317_s9  ;;  %v615_v41 = vsel %vm182_vm3, %v3102_v47, 0.0  ;;  %v254_v17 = vsel %vm4500_vm7, %v2640_v58, %v2636_v56  ;;  %v191_v56 = vadd.f32 %v3097_v23, %v189_v14  ;;  %vm4509_vm7 = vcmp.eq.s32.totalorder %v2429_v9, 1 }
 0x2a8   : > { %v258_v35 = vadd.f32 %v254_v17, %v185_v6 }
 0x2a9   : > { %1288 = vrot.lane.b32.xlu1 %v1280_v63, %s2317_s9  ;;  %v622_v63 = vrot.slane %v615_v41, 1  ;;  %v282_v59 = vadd.f32 %v278_v51, %v191_v56  ;;  %v4517_v51 = vld [vmem:[#allocation27_spill] sm:$0xff] }
 0x2aa   : > { %v455_v58 = vadd.f32 %v451_v19, %v258_v35 }
 0x2ab   : > { %v623_v18 = vsel %vm4387_vm8, %v621_v20, %v622_v63 }
 0x2ac   : > { %v628_v48 = vadd.f32 %v623_v18, %v455_v58 }
 0x2ae   : > { %v783_v40 = vadd.f32 %v3069_v39, %v628_v48  ;;  %v4521_v48 = vld [vmem:[#allocation9_spill] sm:$0xff] }
 0x2af   : > { %1326 = vrot.lane.b32.xlu0 %v1319_v50, %s2317_s9  ;;  %1324 = vrot.lane.b32.xlu2 %v1316_v30, %s2317_s9  ;;  %v616_v50 = vsel %vm4505_vm4, %v3102_v47, 0.0  ;;  %v255_v30 = vsel %vm4506_vm6, %v2654_v62, %v2594_v44  ;;  %v190_v62 = vsel %vm4509_vm7, %v3083_v5, 0.0  ;;  %vm4510_vm4 = vmmov %vm4507_vm5  ;;  %vm4511_vm6 = vcmp.eq.s32.totalorder %v2826_v24, 1 }
 0x2b0   : > { %v624_v43 = vrot.slane %v616_v50, 1  ;;  %v633_v39 = vsel %vm4511_vm6, %v3102_v47, 0.0  ;;  %vm4512_vm5 = vcmask 982016   ;;  %vm4516_vm7 = vmmov %vm4510_vm4  ;;  %vm4518_vm6 = vcmp.eq.s32.totalorder %v2409_v4, 2 }
 0x2b1   : > { %1294 = vrot.lane.b32.xlu1 %v1287_v37, %s2317_s9  ;;  %v637_v37 = vrot.slane %v631_v15, 1  ;;  %v279_v14 = vsel %vm4512_vm5, %v2672_v7, %v2622_v52  ;;  %v640_v58 = vrot.slane %v633_v39, 1  ;;  %v195_v7 = vsel %vm4518_vm6, %v3083_v5, 0.0  ;;  %vm4519_vm5 = vmmov %vm4510_vm4 }
 0x2b3   : > { %v639_v46 = vsel %vm4387_vm8, %v637_v37, %v638_v61 }
 0x2b7   : > { %1464 = vrot.lane.b32.xlu0 %v2244_v12, %s2314_s26  ;;  %1330 = vrot.lane.b32.xlu2 %v1323_v45, %s2317_s9  ;;  %v452_v12 = vsel %vm4508_vm11, %v2778_v49, %v2788_v55  ;;  %v259_v45 = vadd.f32 %v255_v30, %v186_v13  ;;  %v625_v49 = vsel %vm4387_vm8, %v622_v63, %v624_v43  ;;  %vm4513_vm11 = vcmp.eq.s32.totalorder %v2429_v9, 2  ;;  %v4514_v63 = vld [vmem:[#allocation15_spill] sm:$0xff] }
 0x2b8   : > { %v192_v55 = vadd.f32 %v3097_v23, %v190_v62  ;;  %v474_v56 = vsel %vm4516_vm7, %v4515_v38, %v4514_v63  ;;  %vm4520_vm7 = vcmp.eq.s32.totalorder %v2826_v24, 2  ;;  %v4533_v38 = vld [vmem:[#allocation28_spill] sm:$0xff] }
 0x2b9   : > { %1328 = vrot.lane.b32.xlu1 %v1321_v25, %s2317_s9  ;;  %v477_v25 = vadd.f32 %v473_v33, %v282_v59  ;;  %v456_v27 = vadd.f32 %v452_v12, %v259_v45  ;;  %v648_v33 = vsel %vm4513_vm11, %v3102_v47, 0.0  ;;  %v4522_v12 = vld [vmem:[#allocation5_spill] sm:$0xff]  ;;  %v641_v45 = vsel %vm4387_vm8, %v638_v61, %v640_v58 }
 0x2ba   : > { %v283_v42 = vadd.f32 %v279_v14, %v192_v55  ;;  %v4530_v61 = vld [vmem:[#allocation21_spill] sm:$0xff] }
 0x2bb   : > { %v644_v17 = vadd.f32 %v639_v46, %v477_v25  ;;  %v629_v20 = vadd.f32 %v625_v49, %v456_v27  ;;  %v647_v25 = vsel %vm4518_vm6, %v3102_v47, 0.0  ;;  %v4527_v46 = vld [vmem:[#allocation20_spill] sm:$0xff]  ;;  %v654_v49 = vrot.slane %v648_v33, 1 }
 0x2bc   : > { %v478_v30 = vadd.f32 %v474_v56, %v283_v42 }
 0x2bd   : > { %v820_v19 = vadd.f32 %v3072_v54, %v644_v17  ;;  %v784_v18 = vadd.f32 %v4517_v51, %v629_v20  ;;  %v653_v20 = vrot.slane %v647_v25, 1 }
 0x2be   : > { %v645_v39 = vadd.f32 %v641_v45, %v478_v30 }
 0x2c0   : > { %v821_v56 = vadd.f32 %v4533_v38, %v645_v39 }
 0x2c1   : > { %v1075_v28 = vpop.permute.xlu2 %1074 }
 0x2c9   : > { %v1109_v29 = vpop.permute.xlu2 %1108 }
 0x2d1   : > { %v1115_v6 = vpop.permute.xlu2 %1114 }
 0x2d9   : > { %v1077_v0 = vpop.permute.xlu0 %1076  ;;  %v1149_v37 = vpop.permute.xlu2 %1148 }
 0x2db   : > { %v1073_v44 = vpop.permute.xlu1 %1072 }
 0x2dc   : > { %v1080_v53 = vsel %vm4510_vm4, %v1073_v44, %v1075_v28  ;;  %v196_v28 = vsel %vm4513_vm11, %v3083_v5, 0.0  ;;  %v4525_v44 = vld [vmem:[#allocation7_spill] sm:$0xff]  ;;  %vm4529_vm11 = vcmask 916480  }
 0x2dd   : > { %v3501_v41 = vadd.f32 %v1080_v53, %v783_v40  ;;  %v198_v54 = vadd.f32 %v3097_v23, %v196_v28  ;;  %v4524_v40 = vld [vmem:[#allocation8_spill] sm:$0xff]  ;;  %v4531_v28 = vld [vmem:[#allocation17_spill] sm:$0xff] }
 0x2de   : > { %v4528_v53 = vld [vmem:[#allocation16_spill] sm:$0xff] }
 0x2df   : > { %v496_v27 = vsel %vm4529_vm11, %v4528_v53, %v4527_v46 }
 0x2e1   : > { %v1111_v35 = vpop.permute.xlu0 %1110 }
 0x2e2   : > { %v1116_v15 = vsel %vm4510_vm4, %v1109_v29, %v1111_v35  ;;  %v649_v29 = vsel %vm4520_vm7, %v3102_v47, 0.0  ;;  %vm4523_vm4 = vcmask 982016   ;;  %vm4532_vm7 = vmmov %vm4529_vm11  ;;  %vm4537_vm11 = vcmp.eq.s32.totalorder %v2429_v9, 3 }
 0x2e3   : > { %v3520_v13 = vadd.f32 %v1116_v15, %v820_v19  ;;  %v1079_v52 = vpop.permute.xlu1 %1078  ;;  %v303_v43 = vsel %vm4523_vm4, %v4522_v12, %v4521_v48  ;;  %v656_v55 = vrot.slane %v649_v29, 1  ;;  %v495_v19 = vsel %vm4532_vm7, %v4531_v28, %v4530_v61  ;;  %vm4535_vm6 = vmmov %vm4532_vm7  ;;  %v1183_v29 = vpop.permute.xlu2 %1182  ;;  %v4538_v48 = vld [vmem:[#allocation6_spill] sm:$0xff] }
 0x2e4   : > { %v1081_v50 = vsel %vm4519_vm5, %v1077_v0, %v1079_v52  ;;  %v197_v0 = vadd.f32 %v3097_v23, %v195_v7  ;;  %vm4526_vm5 = vmmov %vm4523_vm4  ;;  %v307_v17 = vadd.f32 %v303_v43, %v198_v54  ;;  %vm4534_vm4 = vcmp.eq.s32.totalorder %v2409_v4, 3  ;;  %v4539_v12 = vld [vmem:[#allocation10_spill] sm:$0xff]  ;;  %v4541_v43 = vld [vmem:[#allocation29_spill] sm:$0xff] }
 0x2e5   : > { %v3533_v59 = vadd.f32 %v1081_v50, %v784_v18  ;;  %v302_v62 = vsel %vm4526_vm5, %v4525_v44, %v4524_v40  ;;  %v201_v15 = vsel %vm4534_vm4, %v3083_v5, 0.0  ;;  %v657_v42 = vsel %vm4387_vm8, %v654_v49, %v656_v55  ;;  %vm4536_vm5 = vmmov %vm4534_vm4  ;;  %v4542_v40 = vld [vmem:[#allocation18_spill] sm:$0xff]  ;;  %v4543_v44 = vld [vmem:[#allocation23_spill] sm:$0xff] }
 0x2e6   : > { %v306_v35 = vadd.f32 %v302_v62, %v197_v0  ;;  %v500_v63 = vadd.f32 %v496_v27, %v307_v17  ;;  %v655_v7 = vsel %vm4387_vm8, %v653_v20, %v654_v49  ;;  %v203_v54 = vadd.f32 %v3097_v23, %v201_v15  ;;  %vm4544_vm4 = vmmov %vm4535_vm6  ;;  %v4546_v55 = vld [vmem:[#allocation30_spill] sm:$0xff] }
 0x2e7   : > { %v663_v30 = vsel %vm4536_vm5, %v3102_v47, 0.0  ;;  %v664_v33 = vsel %vm4537_vm11, %v3102_v47, 0.0  ;;  %vm4540_vm7 = vcmask 982016   ;;  %v517_v62 = vsel %vm4544_vm4, %v4543_v44, %v4542_v40  ;;  %vm4547_vm5 = vmmov %vm4537_vm11 }
 0x2e8   : > { %v499_v18 = vadd.f32 %v495_v19, %v306_v35  ;;  %v661_v50 = vadd.f32 %v657_v42, %v500_v63  ;;  %v669_v46 = vrot.slane %v663_v30, 1  ;;  %v670_v53 = vrot.slane %v664_v33, 1  ;;  %vm4548_vm11 = vmmov %vm4544_vm4 }
 0x2e9   : > { %v1145_v14 = vpop.permute.xlu0 %1144  ;;  %v202_v28 = vsel %vm4547_vm5, %v3083_v5, 0.0 }
 0x2ea   : > { %v858_v45 = vadd.f32 %v4541_v43, %v661_v50  ;;  %v660_v0 = vadd.f32 %v655_v7, %v499_v18  ;;  %v671_v63 = vsel %vm4387_vm8, %v669_v46, %v670_v53  ;;  %v204_v38 = vadd.f32 %v3097_v23, %v202_v28  ;;  %v4553_v18 = vld [vmem:[#allocation24_spill] sm:$0xff] }
 0x2eb   : > { %v1113_v58 = vpop.permute.xlu1 %1112 }
 0x2ec   : > { %v1117_v51 = vsel %vm4535_vm6, %v1113_v58, %v1115_v6  ;;  %v326_v6 = vsel %vm4540_vm7, %v4539_v12, %v4538_v48  ;;  %vm4545_vm6 = vmmov %vm4544_vm4  ;;  %v857_v17 = vadd.f32 %v4546_v55, %v660_v0  ;;  %vm4549_vm7 = vcmp.eq.s32.totalorder %v2826_v24, 3  ;;  %v4551_v58 = vld [vmem:[#allocation11_spill] sm:$0xff] }
 0x2ed   : > { %v3558_v52 = vadd.f32 %v1117_v51, %v821_v56  ;;  %v330_v49 = vadd.f32 %v326_v6, %v203_v54  ;;  %v4550_v56 = vld [vmem:[#allocation12_spill] sm:$0xff]  ;;  %vm4552_vm4 = vcmask 982016   ;;  %v1217_v51 = vpop.permute.xlu2 %1216  ;;  %vm4555_vm5 = vmmov %vm4545_vm6 }
 0x2ee   : > { %v327_v15 = vsel %vm4552_vm4, %v4551_v58, %v4550_v56  ;;  %vm4558_vm4 = vmmov %vm4555_vm5 }
 0x2ef   : > { %v521_v20 = vadd.f32 %v517_v62, %v330_v49  ;;  %v331_v50 = vadd.f32 %v327_v15, %v204_v38 }
 0x2f1   : > { %v1151_v25 = vpop.permute.xlu0 %1150  ;;  %v676_v42 = vadd.f32 %v671_v63, %v521_v20 }
 0x2f2   : > { %v1153_v27 = vsel %vm4545_vm6, %v1149_v37, %v1151_v25  ;;  %v665_v37 = vsel %vm4549_vm7, %v3102_v47, 0.0  ;;  %vm4557_vm7 = vmmov %vm4555_vm5 }
 0x2f3   : > { %v3577_v39 = vadd.f32 %v1153_v27, %v858_v45  ;;  %v1147_v61 = vpop.permute.xlu1 %1146  ;;  %v672_v54 = vrot.slane %v665_v37, 1  ;;  %v894_v30 = vadd.f32 %v3118_v57, %v676_v42 }
 0x2f4   : > { %v1152_v19 = vsel %vm4548_vm11, %v1145_v14, %v1147_v61  ;;  %v4554_v14 = vld [vmem:[#allocation22_spill] sm:$0xff]  ;;  %vm4556_vm11 = vmmov %vm4555_vm5 }
 0x2f5   : > { %v3583_v35 = vadd.f32 %v1152_v19, %v857_v17  ;;  %v518_v7 = vsel %vm4545_vm6, %v4554_v14, %v4553_v18  ;;  %v673_v12 = vsel %vm4387_vm8, %v670_v53, %v672_v54  ;;  %v1223_v25 = vpop.permute.xlu2 %1222  ;;  %vm4559_vm6 = vmmov %vm4558_vm4  ;;  %vm4571_vm8 = vcmp.eq.s32.totalorder %v2844_v11, 0 }
 0x2f6   : > { %v522_v48 = vadd.f32 %v518_v7, %v331_v50 }
 0x2f8   : > { %v677_v6 = vadd.f32 %v673_v12, %v522_v48 }
 0x2f9   : > { %v1185_v5 = vpop.permute.xlu0 %1184 }
 0x2fa   : > { %v895_v0 = vadd.f32 %v3138_v16, %v677_v6 }
 0x2fb   : > { %v1181_v23 = vpop.permute.xlu1 %1180 }
 0x2fc   : > { %v1188_v33 = vsel %vm4555_vm5, %v1181_v23, %v1183_v29  ;;  %vm4560_vm5 = vmmov %vm4558_vm4 }
 0x2fd   : > { %v3598_v47 = vadd.f32 %v1188_v33, %v894_v30  ;;  %v1257_v53 = vpop.permute.xlu2 %1256 }
 0x301   : > { %v1219_v43 = vpop.permute.xlu0 %1218 }
 0x302   : > { %v1224_v45 = vsel %vm4556_vm11, %v1217_v51, %v1219_v43  ;;  %vm4561_vm11 = vmmov %vm4558_vm4 }
 0x303   : > { %v3604_v40 = vadd.f32 %v1224_v45, %v3132_v22  ;;  %v1187_v44 = vpop.permute.xlu1 %1186 }
 0x304   : > { %v1189_v57 = vsel %vm4557_vm7, %v1185_v5, %v1187_v44  ;;  %vm4562_vm7 = vmmov %vm4558_vm4 }
 0x305   : > { %v3607_v62 = vadd.f32 %v1189_v57, %v895_v0  ;;  %v1291_v19 = vpop.permute.xlu2 %1290 }
 0x309   : > { %v1253_v29 = vpop.permute.xlu0 %1252 }
 0x30b   : > { %v1221_v46 = vpop.permute.xlu1 %1220 }
 0x30c   : > { %v1225_v27 = vsel %vm4558_vm4, %v1221_v46, %v1223_v25 }
 0x30d   : > { %v3611_v49 = vadd.f32 %v1225_v27, %v3164_v1  ;;  %v1325_v37 = vpop.permute.xlu2 %1324 }
 0x311   : > { %v1259_v55 = vpop.permute.xlu0 %1258 }
 0x312   : > { %v1261_v16 = vsel %vm4559_vm6, %v1257_v53, %v1259_v55  ;;  %vm4563_vm6 = vcmp.eq.s32.totalorder %v2826_v24, 0 }
 0x313   : > { %v3615_v17 = vadd.f32 %v1261_v16, %v3183_v31  ;;  %v1255_v22 = vpop.permute.xlu1 %1254 }
 0x314   : > { %v1260_v61 = vsel %vm4560_vm5, %v1253_v29, %v1255_v22  ;;  %vm4564_vm5 = vcmp.eq.s32.totalorder %v2406_v3, 0 }
 0x315   : > { %v3619_v28 = vadd.f32 %v1260_v61, %v3189_v26 }
 0x319   : > { %v1293_v20 = vpop.permute.xlu0 %1292 }
 0x31b   : > { %v1289_v63 = vpop.permute.xlu1 %1288 }
 0x31c   : > { %v1296_v38 = vsel %vm4561_vm11, %v1289_v63, %v1291_v19  ;;  %vm4565_vm11 = vcmp.eq.s32.totalorder %v2403_v2, 0 }
 0x31d   : > { %v3623_v1 = vadd.f32 %v1296_v38, %v3218_v36 }
 0x321   : > { %v1327_v56 = vpop.permute.xlu0 %1326 }
 0x322   : > { %v1332_v58 = vsel %vm4562_vm7, %v1325_v37, %v1327_v56  ;;  %vm1346_vm7 = vcmask 1045504  }
 0x323   : > { %v3627_v31 = vadd.f32 %v1332_v58, %v3226_v10  ;;  %v1295_v15 = vpop.permute.xlu1 %1294 }
 0x324   : > { %v1297_v42 = vsel %vm4558_vm4, %v1293_v20, %v1295_v15  ;;  %vm4566_vm4 = vcmp.eq.s32.totalorder %v2409_v4, 0 }
 0x325   : > { %v3631_v26 = vadd.f32 %v1297_v42, %v3229_v21 }
 0x329   : > { %v3633_v51 = vpop.permute.xlu0 %1464 }
 0x32a   : > { %v1469_v36 = vsel %vm182_vm3, %v3633_v51, 0.0  ;;  %v1471_v5 = vsel %vm4563_vm6, %v3633_v51, 0.0  ;;  %v1468_v10 = vsel %vm4564_vm5, %v3633_v51, 0.0  ;;  %v1470_v18 = vsel %vm4565_vm11, %v3633_v51, 0.0 }
 0x32b   : > { %v1480_v21 = vrot.slane %v1469_v36, 2  ;;  %v1485_v14 = vrot.slane %v1471_v5, 2  ;;  %v1482_v7 = vrot.slane %v1468_v10, 2  ;;  %v1483_v54 = vrot.slane %v1470_v18, 2 }
 0x32c   : > { %v1467_v50 = vsel %vm4566_vm4, %v3633_v51, 0.0  ;;  %vm4567_vm6 = vcmp.eq.s32.totalorder %v2406_v3, 1  ;;  %vm4568_vm5 = vcmp.eq.s32.totalorder %v2403_v2, 1  ;;  %vm4569_vm11 = vcmp.eq.s32.totalorder %v2409_v4, 1 }
 0x32d   : > { %v1486_v30 = vsel %vm1346_vm7, %v1480_v21, %v1485_v14  ;;  %v1484_v23 = vsel %vm1346_vm7, %v1482_v7, %v1483_v54  ;;  %v1479_v33 = vrot.slane %v1467_v50, 2  ;;  %v1504_v48 = vsel %vm4567_vm6, %v3633_v51, 0.0 }
 0x32e   : > { %1493 = vrot.lane.b32.xlu0 %v1486_v30, %s2316_s8  ;;  %1491 = vrot.lane.b32.xlu2 %v1484_v23, %s2316_s8  ;;  %v1506_v12 = vsel %vm4568_vm5, %v3633_v51, 0.0  ;;  %v1503_v6 = vsel %vm4569_vm11, %v3633_v51, 0.0  ;;  %vm4570_vm4 = vcmp.eq.s32.totalorder %v2429_v9, 1  ;;  %v1472_v0 = vsel %vm4571_vm8, %v3633_v51, 0.0 }
 0x32f   : > { %v1505_v43 = vsel %vm4570_vm4, %v3633_v51, 0.0  ;;  %v1481_v45 = vsel %vm1346_vm7, %v1479_v33, %v1480_v21  ;;  %v1518_v25 = vrot.slane %v1504_v48, 2  ;;  %v1519_v44 = vrot.slane %v1506_v12, 2 }
 0x330   : > { %1489 = vrot.lane.b32.xlu1 %v1481_v45, %s2316_s8  ;;  %v1515_v57 = vrot.slane %v1503_v6, 2  ;;  %v1516_v29 = vrot.slane %v1505_v43, 2  ;;  %v1487_v46 = vrot.slane %v1472_v0, 2  ;;  %vm4572_vm6 = vcmp.eq.s32.totalorder %v2409_v4, 2 }
 0x331   : > { %v1520_v27 = vsel %vm1346_vm7, %v1518_v25, %v1519_v44  ;;  %v1539_v55 = vsel %vm4572_vm6, %v3633_v51, 0.0  ;;  %vm4573_vm8 = vcmp.eq.s32.totalorder %v2429_v9, 2  ;;  %vm4574_vm5 = vcmp.eq.s32.totalorder %v2844_v11, 1 }
 0x332   : > { %v1517_v53 = vsel %vm1346_vm7, %v1515_v57, %v1516_v29  ;;  %v1541_v16 = vsel %vm4573_vm8, %v3633_v51, 0.0  ;;  %v1508_v22 = vsel %vm4574_vm5, %v3633_v51, 0.0  ;;  %v1488_v61 = vsel %vm1346_vm7, %v1483_v54, %v1487_v46 }
 0x333   : > { %vm4575_vm11 = vcmp.eq.s32.totalorder %v2826_v24, 1  ;;  %v1551_v20 = vrot.slane %v1539_v55, 2  ;;  %v1552_v63 = vrot.slane %v1541_v16, 2  ;;  %v1523_v38 = vrot.slane %v1508_v22, 2 }
 0x334   : > { %v1507_v19 = vsel %vm4575_vm11, %v3633_v51, 0.0  ;;  %vm4576_vm4 = vcmp.eq.s32.totalorder %v2403_v2, 2  ;;  %vm4577_vm6 = vcmp.eq.s32.totalorder %v2844_v11, 2  ;;  %vm4578_vm8 = vcmp.eq.s32.totalorder %v2826_v24, 2 }
 0x335   : > { %v1521_v37 = vrot.slane %v1507_v19, 2  ;;  %v1553_v56 = vsel %vm1346_vm7, %v1551_v20, %v1552_v63  ;;  %v1524_v58 = vsel %vm1346_vm7, %v1519_v44, %v1523_v38  ;;  %v1542_v15 = vsel %vm4576_vm4, %v3633_v51, 0.0 }
 0x336   : > { %1527 = vrot.lane.b32.xlu0 %v1520_v27, %s2316_s8  ;;  %1525 = vrot.lane.b32.xlu2 %v1517_v53, %s2316_s8  ;;  %v1544_v42 = vsel %vm4577_vm6, %v3633_v51, 0.0  ;;  %v1543_v36 = vsel %vm4578_vm8, %v3633_v51, 0.0  ;;  %vm4579_vm5 = vcmp.eq.s32.totalorder %v2406_v3, 2  ;;  %v1555_v18 = vrot.slane %v1542_v15, 2 }
 0x337   : > { %v1522_v5 = vsel %vm1346_vm7, %v1516_v29, %v1521_v37  ;;  %v1540_v10 = vsel %vm4579_vm5, %v3633_v51, 0.0  ;;  %v1559_v21 = vrot.slane %v1544_v42, 2  ;;  %v1557_v14 = vrot.slane %v1543_v36, 2 }
 0x338   : > { %1495 = vrot.lane.b32.xlu1 %v1488_v61, %s2316_s8  ;;  %v1554_v7 = vrot.slane %v1540_v10, 2  ;;  %vm4580_vm11 = vcmp.eq.s32.totalorder %v2429_v9, 3  ;;  %vm4581_vm4 = vcmp.eq.s32.totalorder %v2826_v24, 3  ;;  %vm4582_vm6 = vcmp.eq.s32.totalorder %v2406_v3, 3 }
 0x339   : > { %v1560_v54 = vsel %vm1346_vm7, %v1555_v18, %v1559_v21  ;;  %v1558_v50 = vsel %vm1346_vm7, %v1552_v63, %v1557_v14  ;;  %v1577_v30 = vsel %vm4580_vm11, %v3633_v51, 0.0  ;;  %v1579_v23 = vsel %vm4581_vm4, %v3633_v51, 0.0 }
 0x33a   : > { %v1576_v33 = vsel %vm4582_vm6, %v3633_v51, 0.0  ;;  %vm4583_vm8 = vcmp.eq.s32.totalorder %v2403_v2, 3  ;;  %v1556_v12 = vsel %vm1346_vm7, %v1554_v7, %v1555_v18  ;;  %vm4584_vm5 = vcmp.eq.s32.totalorder %v2409_v4, 3 }
 0x33b   : > { %v1578_v48 = vsel %vm4583_vm8, %v3633_v51, 0.0  ;;  %v1575_v6 = vsel %vm4584_vm5, %v3633_v51, 0.0  ;;  %v1588_v43 = vrot.slane %v1577_v30, 2  ;;  %v1593_v45 = vrot.slane %v1579_v23, 2 }
 0x33c   : > { %v1590_v0 = vrot.slane %v1576_v33, 2  ;;  %v1591_v25 = vrot.slane %v1578_v48, 2  ;;  %v1587_v44 = vrot.slane %v1575_v6, 2  ;;  %vm4585_vm11 = vcmp.eq.s32.totalorder %v2406_v3, 4 }
 0x33d   : > { %v1594_v57 = vsel %vm1346_vm7, %v1588_v43, %v1593_v45  ;;  %v1612_v46 = vsel %vm4585_vm11, %v3633_v51, 0.0  ;;  %vm4586_vm4 = vcmp.eq.s32.totalorder %v2403_v2, 4  ;;  %vm4587_vm6 = vcmp.eq.s32.totalorder %v2409_v4, 4 }
 0x33e   : > { %1561 = vrot.lane.b32.xlu0 %v1553_v56, %s2316_s8  ;;  %1531 = vrot.lane.b32.xlu2 %v1524_v58, %s2316_s8  ;;  %v1592_v29 = vsel %vm1346_vm7, %v1590_v0, %v1591_v25  ;;  %v1614_v27 = vsel %vm4586_vm4, %v3633_v51, 0.0  ;;  %v1611_v53 = vsel %vm4587_vm6, %v3633_v51, 0.0  ;;  %vm4588_vm8 = vcmp.eq.s32.totalorder %v2429_v9, 4 }
 0x33f   : > { %v1613_v55 = vsel %vm4588_vm8, %v3633_v51, 0.0  ;;  %v1589_v16 = vsel %vm1346_vm7, %v1587_v44, %v1588_v43  ;;  %vm4589_vm5 = vcmp.eq.s32.totalorder %v2844_v11, 3  ;;  %v1626_v61 = vrot.slane %v1612_v46, 2 }
 0x340   : > { %1529 = vrot.lane.b32.xlu1 %v1522_v5, %s2316_s8  ;;  %v1580_v22 = vsel %vm4589_vm5, %v3633_v51, 0.0  ;;  %v1627_v19 = vrot.slane %v1614_v27, 2  ;;  %v1623_v20 = vrot.slane %v1611_v53, 2  ;;  %v1624_v63 = vrot.slane %v1613_v55, 2 }
 0x341   : > { %v1595_v38 = vrot.slane %v1580_v22, 2  ;;  %vm4590_vm11 = vcmp.eq.s32.totalorder %v2409_v4, 5  ;;  %vm4591_vm4 = vcmp.eq.s32.totalorder %v2429_v9, 5  ;;  %vm4592_vm6 = vcmp.eq.s32.totalorder %v2844_v11, 4 }
 0x342   : > { %v1628_v37 = vsel %vm1346_vm7, %v1626_v61, %v1627_v19  ;;  %v1625_v56 = vsel %vm1346_vm7, %v1623_v20, %v1624_v63  ;;  %v1647_v58 = vsel %vm4590_vm11, %v3633_v51, 0.0  ;;  %v1649_v15 = vsel %vm4591_vm4, %v3633_v51, 0.0 }
 0x343   : > { %v1616_v42 = vsel %vm4592_vm6, %v3633_v51, 0.0  ;;  %v1596_v36 = vsel %vm1346_vm7, %v1591_v25, %v1595_v38  ;;  %v1615_v5 = vsel %vm678_vm1, %v3633_v51, 0.0  ;;  %v1659_v10 = vrot.slane %v1647_v58, 2 }
 0x344   : > { %v1660_v18 = vrot.slane %v1649_v15, 2  ;;  %v1631_v21 = vrot.slane %v1616_v42, 2  ;;  %v1629_v14 = vrot.slane %v1615_v5, 2  ;;  %vm4593_vm8 = vcmp.eq.s32.totalorder %v2403_v2, 5 }
 0x345   : > { %vm4594_vm5 = vcmp.eq.s32.totalorder %v2844_v11, 5  ;;  %v1651_v23 = vsel %vm694_vm2, %v3633_v51, 0.0  ;;  %vm4595_vm11 = vcmp.eq.s32.totalorder %v2406_v3, 5  ;;  %v1685_v44 = vsel %vm218_vm9, %v3633_v51, 0.0 }
 0x346   : > { %1567 = vrot.lane.b32.xlu0 %v1560_v54, %s2316_s8  ;;  %1565 = vrot.lane.b32.xlu2 %v1558_v50, %s2316_s8  ;;  %v1661_v7 = vsel %vm1346_vm7, %v1659_v10, %v1660_v18  ;;  %v1632_v54 = vsel %vm1346_vm7, %v1627_v19, %v1631_v21  ;;  %v1650_v50 = vsel %vm4593_vm8, %v3633_v51, 0.0  ;;  %v1652_v30 = vsel %vm4594_vm5, %v3633_v51, 0.0 }
 0x347   : > { %v1630_v33 = vsel %vm1346_vm7, %v1624_v63, %v1629_v14  ;;  %v1648_v48 = vsel %vm4595_vm11, %v3633_v51, 0.0  ;;  %v1667_v6 = vrot.slane %v1652_v30, 2  ;;  %v1665_v43 = vrot.slane %v1651_v23, 2 }
 0x348   : > { %1563 = vrot.lane.b32.xlu1 %v1556_v12, %s2316_s8  ;;  %v1663_v12 = vrot.slane %v1650_v50, 2  ;;  %v1662_v45 = vrot.slane %v1648_v48, 2  ;;  %vm4596_vm4 = vcmp.eq.s32.totalorder %v2406_v3, 6  ;;  %vm4597_vm6 = vcmp.eq.s32.totalorder %v2403_v2, 6 }
 0x349   : > { %v1666_v25 = vsel %vm1346_vm7, %v1660_v18, %v1665_v43  ;;  %v1686_v46 = vsel %vm4597_vm6, %v3633_v51, 0.0  ;;  %vm4598_vm8 = vcmp.eq.s32.totalorder %v2409_v4, 6  ;;  %v1696_v55 = vrot.slane %v1685_v44, 2  ;;  %v3847_v43 = vpop.permute.xlu2 %1330 }
 0x34a   : > { %v1668_v0 = vsel %vm1346_vm7, %v1663_v12, %v1667_v6  ;;  %v1664_v27 = vsel %vm1346_vm7, %v1662_v45, %v1663_v12  ;;  %v1683_v53 = vsel %vm4598_vm8, %v3633_v51, 0.0  ;;  %v1699_v61 = vrot.slane %v1686_v46, 2 }
 0x34b   : > { %v1695_v19 = vrot.slane %v1683_v53, 2  ;;  %v1720_v38 = vsel %vm404_vm14, %v3633_v51, 0.0  ;;  %v1721_v58 = vsel %vm224_vm15, %v3633_v51, 0.0  ;;  %v1688_v42 = vsel %vm970_vm0, %v3633_v51, 0.0 }
 0x34c   : > { %v1732_v18 = vrot.slane %v1721_v58, 2  ;;  %v1703_v21 = vrot.slane %v1688_v42, 2  ;;  %vm4599_vm5 = vcmp.eq.s32.totalorder %v2844_v11, 7  ;;  %vm4600_vm11 = vcmp.eq.s32.totalorder %v2826_v24, 7 }
 0x34d   : > { %v1697_v15 = vsel %vm1346_vm7, %v1695_v19, %v1696_v55  ;;  %v1723_v30 = vsel %vm4600_vm11, %v3633_v51, 0.0  ;;  %vm4602_vm6 = vcmp.eq.s32.totalorder %v2409_v4, 1  ;;  %vm4603_vm8 = vcmp.eq.s32.totalorder %v2429_v9, 1 }
 0x34e   : > { %1601 = vrot.lane.b32.xlu0 %v1594_v57, %s2316_s8  ;;  %1599 = vrot.lane.b32.xlu2 %v1592_v29, %s2316_s8  ;;  %v1687_v57 = vsel %vm710_vm10, %v3633_v51, 0.0  ;;  %v1684_v29 = vsel %vm4596_vm4, %v3633_v51, 0.0  ;;  %v1704_v50 = vsel %vm1346_vm7, %v1699_v61, %v1703_v21  ;;  %v1737_v48 = vrot.slane %v1723_v30, 2 }
 0x34f   : > { %v1698_v22 = vrot.slane %v1684_v29, 2  ;;  %vm4601_vm4 = vcmp.eq.s32.totalorder %v2409_v4, 0  ;;  %vm4605_vm11 = vcmask 982016  }
 0x350   : > { %1597 = vrot.lane.b32.xlu1 %v1589_v16, %s2316_s8  ;;  %v1701_v16 = vrot.slane %v1687_v57, 2  ;;  %v1738_v6 = vsel %vm1346_vm7, %v1732_v18, %v1737_v48  ;;  %v3860_v57 = vpop.permute.xlu1 %1328 }
 0x351   : > { %v1700_v63 = vsel %vm1346_vm7, %v1698_v22, %v1699_v61 }
 0x352   : > { %v1702_v20 = vsel %vm1346_vm7, %v1696_v55, %v1701_v16 }
 0x356   : > { %1635 = vrot.lane.b32.xlu0 %v1628_v37, %s2316_s8  ;;  %1633 = vrot.lane.b32.xlu2 %v1625_v56, %s2316_s8  ;;  %v1722_v37 = vsel %vm405_vm12, %v3633_v51, 0.0  ;;  %v1719_v56 = vsel %vm223_vm13, %v3633_v51, 0.0 }
 0x357   : > { %v1735_v5 = vrot.slane %v1722_v37, 2  ;;  %v1731_v10 = vrot.slane %v1719_v56, 2 }
 0x358   : > { %1603 = vrot.lane.b32.xlu1 %v1596_v36, %s2316_s8  ;;  %v1734_v36 = vrot.slane %v1720_v38, 2 }
 0x35a   : > { %v1736_v14 = vsel %vm1346_vm7, %v1734_v36, %v1735_v5 }
 0x35e   : > { %1669 = vrot.lane.b32.xlu0 %v1661_v7, %s2316_s8  ;;  %1639 = vrot.lane.b32.xlu2 %v1632_v54, %s2316_s8  ;;  %v1733_v7 = vsel %vm1346_vm7, %v1731_v10, %v1732_v18  ;;  %v1724_v54 = vsel %vm4599_vm5, %v3633_v51, 0.0  ;;  %v3852_v51 = vld [vmem:[%s4344_s1 + $0x6] ss:$0 sm:$0xff]  ;;  %vm4604_vm5 = vcmp.eq.s32.totalorder %v2826_v24, 0 }
 0x35f   : > { %v1739_v23 = vrot.slane %v1724_v54, 2  ;;  %v1341_v44 = vsel %vm182_vm3, %v3852_v51, 0.0  ;;  %v1357_v53 = vsel %vm4603_vm8, %v3852_v51, 0.0  ;;  %v1342_v22 = vsel %vm4604_vm5, %v3852_v51, 0.0 }
 0x360   : > { %1637 = vrot.lane.b32.xlu1 %v1630_v33, %s2316_s8  ;;  %v2245_v33 = vld [vmem:[%s4344_s1 + $0x8] ss:$0 sm:$0xff]  ;;  %v1348_v46 = vrot.slane %v1341_v44, 2  ;;  %v1363_v19 = vrot.slane %v1357_v53, 2  ;;  %v1350_v56 = vrot.slane %v1342_v22, 2  ;;  %vm4609_vm5 = vcmp.eq.s32.totalorder %v2429_v9, 2 }
 0x361   : > { %v1740_v12 = vsel %vm1346_vm7, %v1735_v5, %v1739_v23 }
 0x362   : > { %v1351_v42 = vsel %vm1346_vm7, %v1348_v46, %v1350_v56 }
 0x366   : > { %1675 = vrot.lane.b32.xlu0 %v1668_v0, %s2316_s8  ;;  %1673 = vrot.lane.b32.xlu2 %v1666_v25, %s2316_s8  ;;  %v1340_v25 = vsel %vm4601_vm4, %v3852_v51, 0.0  ;;  %vm4606_vm4 = vcmp.eq.s32.totalorder %v2826_v24, 1 }
 0x367   : > { %v1347_v29 = vrot.slane %v1340_v25, 2  ;;  %v1358_v10 = vsel %vm4606_vm4, %v3852_v51, 0.0  ;;  %vm4611_vm4 = vcmp.eq.s32.totalorder %v2409_v4, 2 }
 0x368   : > { %1671 = vrot.lane.b32.xlu1 %v1664_v27, %s2316_s8  ;;  %v1356_v27 = vsel %vm4602_vm6, %v3852_v51, 0.0  ;;  %vm4607_vm6 = vmmov %vm4605_vm11  ;;  %v1365_v54 = vrot.slane %v1358_v10, 2 }
 0x369   : > { %v1349_v55 = vsel %vm1346_vm7, %v1347_v29, %v1348_v46  ;;  %v1362_v61 = vrot.slane %v1356_v27, 2  ;;  %vm4608_vm8 = vmmov %vm4607_vm6 }
 0x36a   : > { %v1354_v38 = vadd.f32 %v1349_v55, %v3501_v41  ;;  %v1355_v41 = vadd.f32 %v1351_v42, %v3533_v59  ;;  %v1371_v59 = vsel %vm4611_vm4, %v3852_v51, 0.0  ;;  %vm4615_vm4 = vmmov %vm4607_vm6 }
 0x36b   : > { %v1377_v44 = vrot.slane %v1371_v59, 2 }
 0x36e   : > { %1709 = vrot.lane.b32.xlu0 %v1702_v20, %s2316_s8  ;;  %1707 = vrot.lane.b32.xlu2 %v1700_v63, %s2316_s8 }
 0x370   : > { %1705 = vrot.lane.b32.xlu1 %v1697_v15, %s2316_s8  ;;  %v1364_v15 = vsel %vm1346_vm7, %v1362_v61, %v1363_v19 }
 0x371   : > { %v1369_v5 = vadd.f32 %v1364_v15, %v3520_v13  ;;  %v1372_v13 = vsel %vm4609_vm5, %v3852_v51, 0.0  ;;  %vm4613_vm5 = vcmp.eq.s32.totalorder %v2429_v9, 3 }
 0x376   : > { %1743 = vrot.lane.b32.xlu0 %v1736_v14, %s2316_s8  ;;  %1741 = vrot.lane.b32.xlu2 %v1733_v7, %s2316_s8 }
 0x378   : > { %1711 = vrot.lane.b32.xlu1 %v1704_v50, %s2316_s8 }
 0x37e   : > { %1758 = vrot.lane.b32.xlu0 %v2245_v33, %s2315_s29  ;;  %1747 = vrot.lane.b32.xlu2 %v1740_v12, %s2316_s8  ;;  %v1366_v33 = vsel %vm1346_vm7, %v1363_v19, %v1365_v54  ;;  %v1378_v12 = vrot.slane %v1372_v13, 2  ;;  %s161_s29 = sand.u32 1, %s2304_s13  }
 0x37f   : > { %s2089_s7 = scalar_lea.sflag [#allocation3], %s161_s29 }
 0x380   : > { %1745 = vrot.lane.b32.xlu1 %v1738_v6, %s2316_s8  ;;  %v1379_v53 = vsel %vm1346_vm7, %v1377_v44, %v1378_v12  ;;  %s2170_s8 = sshll.u32 %s161_s29, 7 }
 0x381   : > { %s4224_s17 = scalar_lea.vmem [#allocation2], %s2170_s8 }
 0x382   : > { %s2101_s6 = sshll.u32 %s4224_s17, 4  ;;  %s2102_s6 = int_to_ptr.vmem [resolvable:$true] %s2101_s6 }
 0x388   : > { %v1492_v45 = vpop.permute.xlu2 %1491 }
 0x390   : > { %v1526_v0 = vpop.permute.xlu2 %1525 }
 0x398   : > { %v1532_v20 = vpop.permute.xlu2 %1531 }
 0x3a0   : > { %v1494_v16 = vpop.permute.xlu0 %1493  ;;  %v1566_v50 = vpop.permute.xlu2 %1565 }
 0x3a2   : > { %v1490_v63 = vpop.permute.xlu1 %1489 }
 0x3a3   : > { %v1497_v37 = vsel %vm4605_vm11, %v1490_v63, %v1492_v45  ;;  %vm4610_vm11 = vcmp.eq.s32.totalorder %v2826_v24, 2  ;;  %v1370_v45 = vadd.f32 %v1366_v33, %v3558_v52  ;;  %v1387_v52 = vsel %vm4613_vm5, %v3852_v51, 0.0 }
 0x3a4   : > { %v3874_v58 = vadd.f32 %v1497_v37, %v1354_v38  ;;  %v1373_v23 = vsel %vm4610_vm11, %v3852_v51, 0.0  ;;  %vm4614_vm11 = vmmov %vm4607_vm6  ;;  %v1393_v56 = vrot.slane %v1387_v52, 2  ;;  %vm4618_vm5 = vcmp.eq.s32.totalorder %v2826_v24, 3 }
 0x3a5   : > { %v1380_v6 = vrot.slane %v1373_v23, 2 }
 0x3a7   : > { %v1381_v46 = vsel %vm1346_vm7, %v1378_v12, %v1380_v6  ;;  %v1403_v12 = vsel %vm678_vm1, %v3852_v51, 0.0 }
 0x3a8   : > { %v1528_v36 = vpop.permute.xlu0 %1527  ;;  %v1600_v27 = vpop.permute.xlu2 %1599 }
 0x3a9   : > { %v1533_v18 = vsel %vm4607_vm6, %v1526_v0, %v1528_v36 }
 0x3aa   : > { %v3883_v21 = vadd.f32 %v1533_v18, %v1369_v5  ;;  %v1496_v14 = vpop.permute.xlu1 %1495 }
 0x3ab   : > { %v1498_v7 = vsel %vm4608_vm8, %v1494_v16, %v1496_v14  ;;  %v1385_v16 = vadd.f32 %v1381_v46, %v3577_v39  ;;  %vm4612_vm8 = vcmp.eq.s32.totalorder %v2409_v4, 3  ;;  %v1410_v46 = vrot.slane %v1403_v12, 2 }
 0x3ac   : > { %v3887_v30 = vadd.f32 %v1498_v7, %v1355_v41  ;;  %v1386_v22 = vsel %vm4612_vm8, %v3852_v51, 0.0  ;;  %vm4617_vm8 = vcmp.eq.s32.totalorder %v2429_v9, 4  ;;  %v1433_v12 = vsel %vm710_vm10, %v3852_v51, 0.0 }
 0x3ad   : > { %v1392_v37 = vrot.slane %v1386_v22, 2  ;;  %v1402_v42 = vsel %vm4617_vm8, %v3852_v51, 0.0  ;;  %vm4621_vm8 = vcmp.eq.s32.totalorder %v2429_v9, 5 }
 0x3ae   : > { %v1408_v41 = vrot.slane %v1402_v42, 2 }
 0x3af   : > { %v1394_v36 = vsel %vm1346_vm7, %v1392_v37, %v1393_v56 }
 0x3b0   : > { %v1562_v48 = vpop.permute.xlu0 %1561  ;;  %v1634_v5 = vpop.permute.xlu2 %1633  ;;  %v1399_v14 = vadd.f32 %v1394_v36, %v3598_v47 }
 0x3b2   : > { %v1530_v0 = vpop.permute.xlu1 %1529 }
 0x3b3   : > { %v1534_v25 = vsel %vm4607_vm6, %v1530_v0, %v1532_v20  ;;  %v1384_v20 = vadd.f32 %v1379_v53, %v3583_v35  ;;  %vm4616_vm6 = vcmp.eq.s32.totalorder %v2409_v4, 4  ;;  %v1388_v35 = vsel %vm4618_vm5, %v3852_v51, 0.0 }
 0x3b4   : > { %v3901_v29 = vadd.f32 %v1534_v25, %v1370_v45  ;;  %v1401_v15 = vsel %vm4616_vm6, %v3852_v51, 0.0  ;;  %vm4620_vm6 = vmmov %vm4615_vm4  ;;  %v1418_v53 = vsel %vm694_vm2, %v3852_v51, 0.0  ;;  %vm4622_vm5 = vcmp.eq.s32.totalorder %v2409_v4, 5 }
 0x3b5   : > { %v1407_v18 = vrot.slane %v1401_v15, 2  ;;  %v1425_v52 = vrot.slane %v1418_v53, 2 }
 0x3b7   : > { %v1409_v23 = vsel %vm1346_vm7, %v1407_v18, %v1408_v41 }
 0x3b8   : > { %v1568_v55 = vpop.permute.xlu0 %1567  ;;  %v1414_v59 = vadd.f32 %v1409_v23, %v3604_v40  ;;  %v1640_v47 = vpop.permute.xlu2 %1639  ;;  %v1417_v40 = vsel %vm4621_vm8, %v3852_v51, 0.0  ;;  %vm4625_vm8 = vmmov %vm4620_vm6 }
 0x3b9   : > { %v1570_v61 = vsel %vm4614_vm11, %v1566_v50, %v1568_v55  ;;  %vm4619_vm11 = vmmov %vm4615_vm4  ;;  %v1395_v50 = vrot.slane %v1388_v35, 2  ;;  %v1411_v55 = vsel %vm1346_vm7, %v1408_v41, %v1410_v46  ;;  %v1423_v22 = vrot.slane %v1417_v40, 2 }
 0x3ba   : > { %v3913_v19 = vadd.f32 %v1570_v61, %v1385_v16  ;;  %v1564_v63 = vpop.permute.xlu1 %1563  ;;  %v1415_v61 = vadd.f32 %v1411_v55, %v3611_v49  ;;  %v1432_v49 = vsel %vm218_vm9, %v3852_v51, 0.0  ;;  %v1440_v46 = vrot.slane %v1433_v12, 2 }
 0x3bb   : > { %v1569_v38 = vsel %vm4615_vm4, %v1562_v48, %v1564_v63  ;;  %v1396_v33 = vsel %vm1346_vm7, %v1393_v56, %v1395_v50  ;;  %v1426_v15 = vsel %vm1346_vm7, %v1423_v22, %v1425_v52  ;;  %v1438_v50 = vrot.slane %v1432_v49, 2 }
 0x3bc   : > { %v3917_v39 = vadd.f32 %v1569_v38, %v1384_v20  ;;  %v1400_v0 = vadd.f32 %v1396_v33, %v3607_v62  ;;  %v1416_v62 = vsel %vm4622_vm5, %v3852_v51, 0.0  ;;  %v1446_v33 = vsel %vm223_vm13, %v3852_v51, 0.0  ;;  %vm4626_vm5 = vmmov %vm4620_vm6 }
 0x3bd   : > { %v1422_v38 = vrot.slane %v1416_v62, 2  ;;  %v1441_v55 = vsel %vm1346_vm7, %v1438_v50, %v1440_v46 }
 0x3bf   : > { %v1424_v42 = vsel %vm1346_vm7, %v1422_v38, %v1423_v22 }
 0x3c0   : > { %v1602_v10 = vpop.permute.xlu0 %1601  ;;  %v1674_v37 = vpop.permute.xlu2 %1673  ;;  %v1429_v41 = vadd.f32 %v1424_v42, %v3619_v28 }
 0x3c2   : > { %v1598_v7 = vpop.permute.xlu1 %1597 }
 0x3c3   : > { %v1605_v54 = vsel %vm4619_vm11, %v1598_v7, %v1600_v27  ;;  %vm4623_vm11 = vmmov %vm4615_vm4 }
 0x3c4   : > { %v3931_v13 = vadd.f32 %v1605_v54, %v1399_v14 }
 0x3c8   : > { %v1636_v48 = vpop.permute.xlu0 %1635  ;;  %v1708_v23 = vpop.permute.xlu2 %1707 }
 0x3c9   : > { %v1641_v6 = vsel %vm4615_vm4, %v1634_v5, %v1636_v48  ;;  %v1430_v5 = vadd.f32 %v1426_v15, %v3615_v17  ;;  %vm4624_vm4 = vcmp.eq.s32.totalorder %v2409_v4, 6  ;;  %v3982_v48 = vsel %vm224_vm15, %v3852_v51, 0.0 }
 0x3ca   : > { %v3940_v45 = vadd.f32 %v1641_v6, %v1414_v59  ;;  %v1604_v25 = vpop.permute.xlu1 %1603  ;;  %v1452_v6 = vrot.slane %v1446_v33, 2 }
 0x3cb   : > { %v1606_v44 = vsel %vm4620_vm6, %v1602_v10, %v1604_v25  ;;  %v1431_v10 = vsel %vm4624_vm4, %v3852_v51, 0.0  ;;  %vm4628_vm4 = vmmov %vm4626_vm5 }
 0x3cc   : > { %v3944_v27 = vadd.f32 %v1606_v44, %v1400_v0  ;;  %v1437_v54 = vrot.slane %v1431_v10, 2 }
 0x3ce   : > { %v1439_v59 = vsel %vm1346_vm7, %v1437_v54, %v1438_v50 }
 0x3cf   : > { %v1444_v0 = vadd.f32 %v1439_v59, %v3623_v1  ;;  %v1445_v1 = vadd.f32 %v1441_v55, %v3631_v26 }
 0x3d0   : > { %v1670_v16 = vpop.permute.xlu0 %1669 }
 0x3d2   : > { %v1638_v20 = vpop.permute.xlu1 %1637 }
 0x3d3   : > { %v1642_v63 = vsel %vm4623_vm11, %v1638_v20, %v1640_v47  ;;  %v1453_v47 = vrot.slane %v3982_v48, 2  ;;  %vm4627_vm11 = vmmov %vm4626_vm5 }
 0x3d4   : > { %v3958_v56 = vadd.f32 %v1642_v63, %v1415_v61 }
 0x3d5   : > { %v1454_v53 = vsel %vm1346_vm7, %v1452_v6, %v1453_v47 }
 0x3d6   : > { %v1459_v22 = vadd.f32 %v1454_v53, %v3627_v31 }
 0x3d8   : > { %v1676_v36 = vpop.permute.xlu0 %1675 }
 0x3d9   : > { %v1678_v35 = vsel %vm4620_vm6, %v1674_v37, %v1676_v36  ;;  %vm4629_vm6 = vcmp.eq.s32.totalorder %v2826_v24, 0 }
 0x3da   : > { %v3970_v18 = vadd.f32 %v1678_v35, %v1430_v5  ;;  %v1672_v14 = vpop.permute.xlu1 %1671 }
 0x3db   : > { %v1677_v7 = vsel %vm4625_vm8, %v1670_v16, %v1672_v14  ;;  %v1742_v16 = vpop.permute.xlu2 %1741  ;;  %vm4630_vm8 = vcmp.eq.s32.totalorder %v2406_v3, 0 }
 0x3dc   : > { %v3974_v17 = vadd.f32 %v1677_v7, %v1429_v41 }
 0x3e0   : > { %v1710_v28 = vpop.permute.xlu0 %1709 }
 0x3e2   : > { %v1706_v25 = vpop.permute.xlu1 %1705 }
 0x3e3   : > { %v1713_v44 = vsel %vm4626_vm5, %v1706_v25, %v1708_v23  ;;  %vm4631_vm5 = vcmp.eq.s32.totalorder %v2403_v2, 0 }
 0x3e4   : > { %v3991_v40 = vadd.f32 %v1713_v44, %v1444_v0 }
 0x3e8   : > { %v1744_v62 = vpop.permute.xlu0 %1743 }
 0x3e9   : > { %v1749_v52 = vsel %vm4627_vm11, %v1742_v16, %v1744_v62  ;;  %vm4632_vm11 = vcmp.eq.s32.totalorder %v2409_v4, 0 }
 0x3ea   : > { %v3999_v61 = vadd.f32 %v1749_v52, %v1459_v22  ;;  %v1712_v20 = vpop.permute.xlu1 %1711 }
 0x3eb   : > { %v1714_v63 = vsel %vm4628_vm4, %v1710_v28, %v1712_v20  ;;  %vm4634_vm4 = vcmp.eq.s32.totalorder %v2403_v2, 1 }
 0x3ec   : > { %v4003_v38 = vadd.f32 %v1714_v63, %v1445_v1 }
 0x3f0   : > { %v4005_v37 = vpop.permute.xlu0 %1758 }
 0x3f1   : > { %v1763_v15 = vsel %vm182_vm3, %v4005_v37, 0.0  ;;  %v1765_v31 = vsel %vm4629_vm6, %v4005_v37, 0.0  ;;  %v1762_v42 = vsel %vm4630_vm8, %v4005_v37, 0.0  ;;  %v1764_v26 = vsel %vm4631_vm5, %v4005_v37, 0.0 }
 0x3f2   : > { %v1774_v36 = vrot.slane %v1763_v15, 2  ;;  %v1779_v5 = vrot.slane %v1765_v31, 2  ;;  %v1776_v10 = vrot.slane %v1762_v42, 2  ;;  %v1777_v49 = vrot.slane %v1764_v26, 2 }
 0x3f3   : > { %v1761_v35 = vsel %vm4632_vm11, %v4005_v37, 0.0  ;;  %vm4633_vm3 = vcmp.eq.s32.totalorder %v2406_v3, 1  ;;  %v1800_v50 = vsel %vm4634_vm4, %v4005_v37, 0.0  ;;  %vm4635_vm6 = vcmp.eq.s32.totalorder %v2409_v4, 1 }
 0x3f4   : > { %v1780_v41 = vsel %vm1346_vm7, %v1774_v36, %v1779_v5  ;;  %v1778_v14 = vsel %vm1346_vm7, %v1776_v10, %v1777_v49  ;;  %v1773_v7 = vrot.slane %v1761_v35, 2  ;;  %v1798_v54 = vsel %vm4633_vm3, %v4005_v37, 0.0 }
 0x3f5   : > { %1787 = vrot.lane.b32.xlu0 %v1780_v41, %s2317_s9  ;;  %1785 = vrot.lane.b32.xlu2 %v1778_v14, %s2317_s9  ;;  %v1797_v23 = vsel %vm4635_vm6, %v4005_v37, 0.0  ;;  %vm4636_vm8 = vcmp.eq.s32.totalorder %v2429_v9, 1  ;;  %vm4637_vm5 = vcmp.eq.s32.totalorder %v2844_v11, 0  ;;  %v1812_v12 = vrot.slane %v1798_v54, 2 }
 0x3f6   : > { %v1799_v33 = vsel %vm4636_vm8, %v4005_v37, 0.0  ;;  %v1775_v59 = vsel %vm1346_vm7, %v1773_v7, %v1774_v36  ;;  %v1766_v28 = vsel %vm4637_vm5, %v4005_v37, 0.0  ;;  %v1813_v6 = vrot.slane %v1800_v50, 2 }
 0x3f7   : > { %1783 = vrot.lane.b32.xlu1 %v1775_v59, %s2317_s9  ;;  %v1809_v0 = vrot.slane %v1797_v23, 2  ;;  %v1810_v25 = vrot.slane %v1799_v33, 2  ;;  %v1781_v44 = vrot.slane %v1766_v28, 2  ;;  %vm4638_vm11 = vcmp.eq.s32.totalorder %v2409_v4, 2 }
 0x3f8   : > { %v1814_v46 = vsel %vm1346_vm7, %v1812_v12, %v1813_v6  ;;  %v1833_v55 = vsel %vm4638_vm11, %v4005_v37, 0.0  ;;  %vm4639_vm3 = vcmp.eq.s32.totalorder %v2429_v9, 2  ;;  %vm4640_vm4 = vcmp.eq.s32.totalorder %v2844_v11, 1 }
 0x3f9   : > { %v1811_v53 = vsel %vm1346_vm7, %v1809_v0, %v1810_v25  ;;  %v1835_v16 = vsel %vm4639_vm3, %v4005_v37, 0.0  ;;  %v1802_v62 = vsel %vm4640_vm4, %v4005_v37, 0.0  ;;  %v1782_v22 = vsel %vm1346_vm7, %v1777_v49, %v1781_v44 }
 0x3fa   : > { %vm4641_vm6 = vcmp.eq.s32.totalorder %v2826_v24, 1  ;;  %v1845_v1 = vrot.slane %v1833_v55, 2  ;;  %v1846_v20 = vrot.slane %v1835_v16, 2  ;;  %v1817_v63 = vrot.slane %v1802_v62, 2 }
 0x3fb   : > { %v1801_v52 = vsel %vm4641_vm6, %v4005_v37, 0.0  ;;  %vm4642_vm8 = vcmp.eq.s32.totalorder %v2403_v2, 2  ;;  %vm4643_vm5 = vcmp.eq.s32.totalorder %v2844_v11, 2  ;;  %vm4644_vm11 = vcmp.eq.s32.totalorder %v2826_v24, 2 }
 0x3fc   : > { %v1815_v15 = vrot.slane %v1801_v52, 2  ;;  %v1847_v31 = vsel %vm1346_vm7, %v1845_v1, %v1846_v20  ;;  %v1818_v42 = vsel %vm1346_vm7, %v1813_v6, %v1817_v63  ;;  %v1836_v26 = vsel %vm4642_vm8, %v4005_v37, 0.0 }
 0x3fd   : > { %1821 = vrot.lane.b32.xlu0 %v1814_v46, %s2317_s9  ;;  %1819 = vrot.lane.b32.xlu2 %v1811_v53, %s2317_s9  ;;  %v1838_v36 = vsel %vm4643_vm5, %v4005_v37, 0.0  ;;  %v1837_v5 = vsel %vm4644_vm11, %v4005_v37, 0.0  ;;  %vm4645_vm3 = vcmp.eq.s32.totalorder %v2406_v3, 2  ;;  %v1849_v35 = vrot.slane %v1836_v26, 2 }
 0x3fe   : > { %v1816_v10 = vsel %vm1346_vm7, %v1810_v25, %v1815_v15  ;;  %v1834_v49 = vsel %vm4645_vm3, %v4005_v37, 0.0  ;;  %v1853_v41 = vrot.slane %v1838_v36, 2  ;;  %v1851_v14 = vrot.slane %v1837_v5, 2 }
 0x3ff   : > { %1789 = vrot.lane.b32.xlu1 %v1782_v22, %s2317_s9  ;;  %v1848_v7 = vrot.slane %v1834_v49, 2  ;;  %vm4646_vm4 = vcmp.eq.s32.totalorder %v2429_v9, 3  ;;  %vm4647_vm6 = vcmp.eq.s32.totalorder %v2826_v24, 3  ;;  %vm4648_vm8 = vcmp.eq.s32.totalorder %v2406_v3, 3 }
 0x400   : > { %v1854_v54 = vsel %vm1346_vm7, %v1849_v35, %v1853_v41  ;;  %v1852_v50 = vsel %vm1346_vm7, %v1846_v20, %v1851_v14  ;;  %v1871_v23 = vsel %vm4646_vm4, %v4005_v37, 0.0  ;;  %v1873_v33 = vsel %vm4647_vm6, %v4005_v37, 0.0 }
 0x401   : > { %v1870_v59 = vsel %vm4648_vm8, %v4005_v37, 0.0  ;;  %vm4649_vm5 = vcmp.eq.s32.totalorder %v2403_v2, 3  ;;  %v1850_v12 = vsel %vm1346_vm7, %v1848_v7, %v1849_v35  ;;  %vm4650_vm11 = vcmp.eq.s32.totalorder %v2409_v4, 3 }
 0x402   : > { %v1872_v28 = vsel %vm4649_vm5, %v4005_v37, 0.0  ;;  %v1869_v6 = vsel %vm4650_vm11, %v4005_v37, 0.0  ;;  %v1882_v0 = vrot.slane %v1871_v23, 2  ;;  %v1887_v25 = vrot.slane %v1873_v33, 2 }
 0x403   : > { %v1884_v44 = vrot.slane %v1870_v59, 2  ;;  %v1885_v46 = vrot.slane %v1872_v28, 2  ;;  %v1881_v53 = vrot.slane %v1869_v6, 2  ;;  %vm4651_vm3 = vcmp.eq.s32.totalorder %v2406_v3, 4 }
 0x404   : > { %v1888_v55 = vsel %vm1346_vm7, %v1882_v0, %v1887_v25  ;;  %v1906_v62 = vsel %vm4651_vm3, %v4005_v37, 0.0  ;;  %vm4652_vm4 = vcmp.eq.s32.totalorder %v2403_v2, 4  ;;  %vm4653_vm6 = vcmp.eq.s32.totalorder %v2409_v4, 4 }
 0x405   : > { %1855 = vrot.lane.b32.xlu0 %v1847_v31, %s2317_s9  ;;  %1825 = vrot.lane.b32.xlu2 %v1818_v42, %s2317_s9  ;;  %v1886_v16 = vsel %vm1346_vm7, %v1884_v44, %v1885_v46  ;;  %v1908_v22 = vsel %vm4652_vm4, %v4005_v37, 0.0  ;;  %v1905_v52 = vsel %vm4653_vm6, %v4005_v37, 0.0  ;;  %vm4654_vm8 = vcmp.eq.s32.totalorder %v2429_v9, 4 }
 0x406   : > { %v1907_v1 = vsel %vm4654_vm8, %v4005_v37, 0.0  ;;  %v1883_v20 = vsel %vm1346_vm7, %v1881_v53, %v1882_v0  ;;  %vm4655_vm5 = vcmp.eq.s32.totalorder %v2844_v11, 3  ;;  %v1920_v15 = vrot.slane %v1906_v62, 2 }
 0x407   : > { %1823 = vrot.lane.b32.xlu1 %v1816_v10, %s2317_s9  ;;  %v1874_v63 = vsel %vm4655_vm5, %v4005_v37, 0.0  ;;  %v1921_v31 = vrot.slane %v1908_v22, 2  ;;  %v1917_v42 = vrot.slane %v1905_v52, 2  ;;  %v1918_v26 = vrot.slane %v1907_v1, 2 }
 0x408   : > { %v1889_v36 = vrot.slane %v1874_v63, 2  ;;  %vm4656_vm11 = vcmp.eq.s32.totalorder %v2409_v4, 5  ;;  %vm4657_vm3 = vcmp.eq.s32.totalorder %v2429_v9, 5  ;;  %vm4658_vm4 = vcmp.eq.s32.totalorder %v2844_v11, 4 }
 0x409   : > { %v1922_v5 = vsel %vm1346_vm7, %v1920_v15, %v1921_v31  ;;  %v1919_v10 = vsel %vm1346_vm7, %v1917_v42, %v1918_v26  ;;  %v1941_v49 = vsel %vm4656_vm11, %v4005_v37, 0.0  ;;  %v1943_v35 = vsel %vm4657_vm3, %v4005_v37, 0.0 }
 0x40a   : > { %v1910_v41 = vsel %vm4658_vm4, %v4005_v37, 0.0  ;;  %v1890_v14 = vsel %vm1346_vm7, %v1885_v46, %v1889_v36  ;;  %v1909_v7 = vsel %vm678_vm1, %v4005_v37, 0.0  ;;  %vm4659_vm6 = vcmp.eq.s32.totalorder %v2403_v2, 5 }
 0x40b   : > { %v1925_v23 = vrot.slane %v1910_v41, 2  ;;  %v1923_v33 = vrot.slane %v1909_v7, 2  ;;  %vm4660_vm8 = vcmp.eq.s32.totalorder %v2844_v11, 5  ;;  %v1945_v0 = vsel %vm694_vm2, %v4005_v37, 0.0 }
 0x40c   : > { %v1946_v6 = vsel %vm4660_vm8, %v4005_v37, 0.0  ;;  %vm4661_vm1 = vcmp.eq.s32.totalorder %v2406_v3, 5  ;;  %v1979_v52 = vsel %vm218_vm9, %v4005_v37, 0.0  ;;  %v1981_v1 = vsel %vm710_vm10, %v4005_v37, 0.0 }
 0x40d   : > { %1861 = vrot.lane.b32.xlu0 %v1854_v54, %s2317_s9  ;;  %1859 = vrot.lane.b32.xlu2 %v1852_v50, %s2317_s9  ;;  %v1953_v54 = vrot.slane %v1941_v49, 2  ;;  %v1954_v50 = vrot.slane %v1943_v35, 2  ;;  %v1926_v28 = vsel %vm1346_vm7, %v1921_v31, %v1925_v23  ;;  %v1924_v25 = vsel %vm1346_vm7, %v1918_v26, %v1923_v33 }
 0x40e   : > { %v1942_v44 = vsel %vm4661_vm1, %v4005_v37, 0.0  ;;  %v1961_v53 = vrot.slane %v1946_v6, 2  ;;  %vm4662_vm2 = vcmp.eq.s32.totalorder %v2406_v3, 6  ;;  %vm4663_vm5 = vcmp.eq.s32.totalorder %v2403_v2, 6 }
 0x40f   : > { %1857 = vrot.lane.b32.xlu1 %v1850_v12, %s2317_s9  ;;  %v1955_v59 = vsel %vm1346_vm7, %v1953_v54, %v1954_v50  ;;  %v1944_v12 = vsel %vm4659_vm6, %v4005_v37, 0.0  ;;  %v1980_v63 = vsel %vm4663_vm5, %v4005_v37, 0.0  ;;  %vm4664_vm11 = vcmp.eq.s32.totalorder %v2409_v4, 6 }
 0x410   : > { %v1957_v46 = vrot.slane %v1944_v12, 2  ;;  %v1977_v31 = vsel %vm4664_vm11, %v4005_v37, 0.0  ;;  %v1990_v42 = vrot.slane %v1979_v52, 2  ;;  %v1995_v26 = vrot.slane %v1981_v1, 2 }
 0x411   : > { %v2014_v41 = vsel %vm404_vm14, %v4005_v37, 0.0  ;;  %v2013_v7 = vsel %vm223_vm13, %v4005_v37, 0.0  ;;  %v2015_v54 = vsel %vm224_vm15, %v4005_v37, 0.0  ;;  %v1982_v3 = vsel %vm970_vm0, %v4005_v37, 0.0 }
 0x412   : > { %v1962_v62 = vsel %vm1346_vm7, %v1957_v46, %v1961_v53  ;;  %v1996_v49 = vsel %vm1346_vm7, %v1990_v42, %v1995_v26  ;;  %v2028_v23 = vrot.slane %v2014_v41, 2  ;;  %v2025_v2 = vrot.slane %v2013_v7, 2 }
 0x413   : > { %vm4665_vm9 = vcmp.eq.s32.totalorder %v2844_v11, 7  ;;  %vm4666_vm0 = vcmp.eq.s32.totalorder %v2826_v24, 7  ;;  %v4215_v11 = vpop.permute.xlu2 %1747 }
 0x414   : > { %v2018_v6 = vsel %vm4665_vm9, %v4005_v37, 0.0  ;;  %vm4679_vm9 = vmmov %vm4666_vm0 }
 0x415   : > { %1895 = vrot.lane.b32.xlu0 %v1888_v55, %s2317_s9  ;;  %1893 = vrot.lane.b32.xlu2 %v1886_v16, %s2317_s9  ;;  %v1959_v55 = vrot.slane %v1945_v0, 2  ;;  %v1956_v16 = vrot.slane %v1942_v44, 2  ;;  %v2033_v44 = vrot.slane %v2018_v6, 2 }
 0x417   : > { %1891 = vrot.lane.b32.xlu1 %v1883_v20, %s2317_s9  ;;  %v1960_v22 = vsel %vm1346_vm7, %v1954_v50, %v1959_v55  ;;  %v1978_v20 = vsel %vm4662_vm2, %v4005_v37, 0.0  ;;  %v1958_v15 = vsel %vm1346_vm7, %v1956_v16, %v1957_v46 }
 0x418   : > { %v1992_v36 = vrot.slane %v1978_v20, 2 }
 0x41d   : > { %1929 = vrot.lane.b32.xlu0 %v1922_v5, %s2317_s9  ;;  %1927 = vrot.lane.b32.xlu2 %v1919_v10, %s2317_s9  ;;  %v1993_v5 = vrot.slane %v1980_v63, 2  ;;  %v1989_v10 = vrot.slane %v1977_v31, 2 }
 0x41f   : > { %1897 = vrot.lane.b32.xlu1 %v1890_v14, %s2317_s9  ;;  %v1994_v35 = vsel %vm1346_vm7, %v1992_v36, %v1993_v5  ;;  %v2016_v14 = vsel %vm405_vm12, %v4005_v37, 0.0  ;;  %v1991_v50 = vsel %vm1346_vm7, %v1989_v10, %v1990_v42  ;;  %vm4667_vm12 = vcmask 916480  }
 0x420   : > { %v2029_v33 = vrot.slane %v2016_v14, 2  ;;  %vm4668_vm13 = vmmov %vm4667_vm12 }
 0x421   : > { %vm4669_vm14 = vmmov %vm4667_vm12 }
 0x422   : > { %v2030_v4 = vsel %vm1346_vm7, %v2028_v23, %v2029_v33  ;;  %v2034_v53 = vsel %vm1346_vm7, %v2029_v33, %v2033_v44  ;;  %vm4670_vm10 = vmmov %vm4667_vm12 }
 0x423   : > { %vm4671_vm3 = vmmov %vm4670_vm10 }
 0x424   : > { %vm4672_vm4 = vmmov %vm4671_vm3 }
 0x425   : > { %1963 = vrot.lane.b32.xlu0 %v1955_v59, %s2317_s9  ;;  %1933 = vrot.lane.b32.xlu2 %v1926_v28, %s2317_s9  ;;  %v2026_v59 = vrot.slane %v2015_v54, 2  ;;  %v1997_v28 = vrot.slane %v1982_v3, 2  ;;  %vm4673_vm6 = vmmov %vm4671_vm3 }
 0x426   : > { %vm4674_vm8 = vmmov %vm4671_vm3 }
 0x427   : > { %1931 = vrot.lane.b32.xlu1 %v1924_v25, %s2317_s9  ;;  %v2027_v12 = vsel %vm1346_vm7, %v2025_v2, %v2026_v59  ;;  %v1998_v0 = vsel %vm1346_vm7, %v1993_v5, %v1997_v28  ;;  %v2017_v25 = vsel %vm4666_vm0, %v4005_v37, 0.0  ;;  %vm4675_vm1 = vmmov %vm4671_vm3 }
 0x428   : > { %v2031_v46 = vrot.slane %v2017_v25, 2  ;;  %vm4676_vm2 = vmmov %vm4675_vm1 }
 0x429   : > { %vm4677_vm5 = vmmov %vm4675_vm1 }
 0x42a   : > { %v2032_v55 = vsel %vm1346_vm7, %v2026_v59, %v2031_v46  ;;  %vm4678_vm11 = vmmov %vm4675_vm1 }
 0x42b   : > { %vm4685_vm0 = vmmov %vm4675_vm1 }
 0x42d   : > { %1969 = vrot.lane.b32.xlu0 %v1962_v62, %s2317_s9  ;;  %1967 = vrot.lane.b32.xlu2 %v1960_v22, %s2317_s9  ;;  %v4217_v22 = vpop.permute.xlu1 %1745 }
 0x42f   : > { %1965 = vrot.lane.b32.xlu1 %v1958_v15, %s2317_s9 }
 0x435   : > { %2003 = vrot.lane.b32.xlu0 %v1996_v49, %s2317_s9  ;;  %2001 = vrot.lane.b32.xlu2 %v1994_v35, %s2317_s9 }
 0x437   : > { %1999 = vrot.lane.b32.xlu1 %v1991_v50, %s2317_s9 }
 0x43d   : > { %2037 = vrot.lane.b32.xlu0 %v2030_v4, %s2317_s9  ;;  %2035 = vrot.lane.b32.xlu2 %v2027_v12, %s2317_s9 }
 0x43f   : > { %2005 = vrot.lane.b32.xlu1 %v1998_v0, %s2317_s9 }
 0x445   : > { %2041 = vrot.lane.b32.xlu2 %v2034_v53, %s2317_s9 }
 0x447   : > { %2039 = vrot.lane.b32.xlu1 %v2032_v55, %s2317_s9 }
 0x44f   : > { %v1786_v16 = vpop.permute.xlu2 %1785 }
 0x457   : > { %v1820_v62 = vpop.permute.xlu2 %1819 }
 0x45f   : > { %v1826_v1 = vpop.permute.xlu2 %1825 }
 0x467   : > { %v1788_v52 = vpop.permute.xlu0 %1787  ;;  %v1860_v10 = vpop.permute.xlu2 %1859 }
 0x469   : > { %v1784_v37 = vpop.permute.xlu1 %1783 }
 0x46a   : > { %v1791_v20 = vsel %vm4667_vm12, %v1784_v37, %v1786_v16  ;;  %vm4686_vm12 = vmmov %vm4685_vm0 }
 0x46b   : > { %v1795_v63 = vadd.f32 %v1791_v20, %v3874_v58 }
 0x46d   : > { %v2049_v15 = vmax.f32 %v1795_v63, 0.0 }
 0x46f   : > { %2051 = vst [vmem:[%s4224_s17] sm:$0xff] %v2049_v15  ;;  %v1822_v31 = vpop.permute.xlu0 %1821  ;;  %v1894_v50 = vpop.permute.xlu2 %1893 }
 0x470   : > { %v1827_v42 = vsel %vm4668_vm13, %v1820_v62, %v1822_v31  ;;  %vm4687_vm13 = vcmask 1046528  }
 0x471   : > { %v1831_v26 = vadd.f32 %v1827_v42, %v3883_v21  ;;  %v1790_v36 = vpop.permute.xlu1 %1789 }
 0x472   : > { %v1792_v5 = vsel %vm4669_vm14, %v1788_v52, %v1790_v36  ;;  %v2247_v36 = vld [vmem:[%s4344_s1] ss:$0 sm:$0xff]  ;;  %vm4688_vm14 = vmmov %vm4679_vm9 }
 0x473   : > { %v2053_v49 = vmax.f32 %v1831_v26, 0.0  ;;  %v1796_v58 = vadd.f32 %v1792_v5, %v3887_v30  ;;  %v226_v5 = vsel %vm224_vm15, %v2247_v36, 0.0  ;;  %vm4682_vm15 = vcmask 982016  }
 0x475   : > { %2172 = vst [vmem:[%s4224_s17 + $0x10] sm:$0xff] %v2053_v49  ;;  %v2050_v35 = vmax.f32 %v1796_v58, 0.0  ;;  %v2248_v58 = vld [vmem:[%s4345_s2] ss:$0 sm:$0xff] }
 0x477   : > { %2052 = vst [vmem:[%s4224_s17 + $0x8] sm:$0xff] %v2050_v35  ;;  %v1856_v41 = vpop.permute.xlu0 %1855  ;;  %v1928_v12 = vpop.permute.xlu2 %1927  ;;  %v228_v35 = vadd.f32 %v2248_v58, %v226_v5 }
 0x479   : > { %v1824_v14 = vpop.permute.xlu1 %1823 }
 0x47a   : > { %v1828_v7 = vsel %vm4670_vm10, %v1824_v14, %v1826_v1  ;;  %vm4689_vm10 = vmmov %vm4682_vm15 }
 0x47b   : > { %v1832_v54 = vadd.f32 %v1828_v7, %v3901_v29  ;;  %v4680_v7 = vld [vmem:[#allocation13_spill] sm:$0xff] }
 0x47d   : > { %v2054_v21 = vmax.f32 %v1832_v54, 0.0  ;;  %v4681_v54 = vld [vmem:[#allocation14_spill] sm:$0xff] }
 0x47f   : > { %2173 = vst [vmem:[%s4224_s17 + $0x18] sm:$0xff] %v2054_v21  ;;  %v1862_v3 = vpop.permute.xlu0 %1861  ;;  %v1934_v53 = vpop.permute.xlu2 %1933  ;;  %v4683_v21 = vld [vmem:[#allocation25_spill] sm:$0xff] }
 0x480   : > { %v1864_v23 = vsel %vm4671_vm3, %v1860_v10, %v1862_v3  ;;  %v4684_v3 = vld [vmem:[#allocation26_spill] sm:$0xff]  ;;  %vm4690_vm3 = vmmov %vm4685_vm0 }
 0x481   : > { %v1868_v30 = vadd.f32 %v1864_v23, %v3913_v19  ;;  %v1858_v33 = vpop.permute.xlu1 %1857  ;;  %v606_v23 = vsel %vm4685_vm0, %v4684_v3, %v4683_v21  ;;  %v1333_v60 = vsel %vm4690_vm3, %v3860_v57, %v3847_v43 }
 0x482   : > { %v1863_v2 = vsel %vm4672_vm4, %v1856_v41, %v1858_v33  ;;  %vm4691_vm4 = vmmov %vm4685_vm0 }
 0x483   : > { %v2059_v59 = vmax.f32 %v1868_v30, 0.0  ;;  %v1867_v28 = vadd.f32 %v1863_v2, %v3917_v39 }
 0x485   : > { %2175 = vst [vmem:[%s4224_s17 + $0x28] sm:$0xff] %v2059_v59  ;;  %v2058_v4 = vmax.f32 %v1867_v28, 0.0 }
 0x487   : > { %2174 = vst [vmem:[%s4224_s17 + $0x20] sm:$0xff] %v2058_v4  ;;  %v1896_v29 = vpop.permute.xlu0 %1895  ;;  %v1968_v63 = vpop.permute.xlu2 %1967 }
 0x489   : > { %v1892_v6 = vpop.permute.xlu1 %1891 }
 0x48a   : > { %v1899_v0 = vsel %vm4673_vm6, %v1892_v6, %v1894_v50  ;;  %v423_v50 = vsel %vm4682_vm15, %v4681_v54, %v4680_v7  ;;  %vm4692_vm6 = vmmov %vm4685_vm0 }
 0x48b   : > { %v1903_v25 = vadd.f32 %v1899_v0, %v3931_v13  ;;  %v427_v33 = vadd.f32 %v423_v50, %v228_v35  ;;  %v1039_v0 = vsel %vm4689_vm10, %v3466_v34, %v3445_v8 }
 0x48d   : > { %v2063_v44 = vmax.f32 %v1903_v25, 0.0  ;;  %v610_v28 = vadd.f32 %v606_v23, %v427_v33 }
 0x48f   : > { %2176 = vst [vmem:[%s4224_s17 + $0x30] sm:$0xff] %v2063_v44  ;;  %v1930_v19 = vpop.permute.xlu0 %1929  ;;  %v2002_v14 = vpop.permute.xlu2 %2001 }
 0x490   : > { %v1935_v46 = vsel %vm4674_vm8, %v1928_v12, %v1930_v19  ;;  %vm4693_vm8 = vmmov %vm4689_vm10 }
 0x491   : > { %v1939_v39 = vadd.f32 %v1935_v46, %v3940_v45  ;;  %v1898_v55 = vpop.permute.xlu1 %1897  ;;  %v1750_v57 = vsel %vm4693_vm8, %v4217_v22, %v4215_v11 }
 0x492   : > { %v1900_v16 = vsel %vm4675_vm1, %v1896_v29, %v1898_v55  ;;  %v1448_v29 = vsel %vm4688_vm14, %v3852_v51, 0.0 }
 0x493   : > { %v2068_v62 = vmax.f32 %v1939_v39, 0.0  ;;  %v1904_v52 = vadd.f32 %v1900_v16, %v3944_v27 }
 0x495   : > { %2178 = vst [vmem:[%s4224_s17 + $0x40] sm:$0xff] %v2068_v62  ;;  %v2064_v1 = vmax.f32 %v1904_v52, 0.0 }
 0x497   : > { %2177 = vst [vmem:[%s4224_s17 + $0x38] sm:$0xff] %v2064_v1  ;;  %v1964_v37 = vpop.permute.xlu0 %1963  ;;  %v2036_v44 = vpop.permute.xlu2 %2035 }
 0x499   : > { %v1932_v13 = vpop.permute.xlu1 %1931 }
 0x49a   : > { %v1936_v20 = vsel %vm4676_vm2, %v1932_v13, %v1934_v53 }
 0x49b   : > { %v1940_v15 = vadd.f32 %v1936_v20, %v3958_v56 }
 0x49d   : > { %v2069_v31 = vmax.f32 %v1940_v15, 0.0 }
 0x49f   : > { %2179 = vst [vmem:[%s4224_s17 + $0x48] sm:$0xff] %v2069_v31  ;;  %v1970_v45 = vpop.permute.xlu0 %1969  ;;  %v2042_v48 = vpop.permute.xlu2 %2041 }
 0x4a0   : > { %v1972_v42 = vsel %vm4677_vm5, %v1968_v63, %v1970_v45 }
 0x4a1   : > { %v1976_v26 = vadd.f32 %v1972_v42, %v3970_v18  ;;  %v1966_v27 = vpop.permute.xlu1 %1965  ;;  %v2249_v18 = vld [vmem:[%s4344_s1 + $0x3] ss:$0 sm:$0xff] }
 0x4a2   : > { %v1971_v10 = vsel %vm4678_vm11, %v1964_v37, %v1966_v27  ;;  %v729_v41 = vsel %vm4679_vm9, %v2249_v18, 0.0 }
 0x4a3   : > { %v2074_v56 = vmax.f32 %v1976_v26, 0.0  ;;  %v1975_v49 = vadd.f32 %v1971_v10, %v3974_v17  ;;  %v736_v30 = vrot.slane %v729_v41, 1 }
 0x4a5   : > { %2181 = vst [vmem:[%s4224_s17 + $0x58] sm:$0xff] %v2074_v56  ;;  %v2073_v9 = vmax.f32 %v1975_v49, 0.0  ;;  %v737_v12 = vsel %vm4687_vm13, %v734_v32, %v736_v30  ;;  %v1455_v32 = vrot.slane %v1448_v29, 2 }
 0x4a6   : > { %v741_v25 = vadd.f32 %v737_v12, %v610_v28 }
 0x4a7   : > { %2180 = vst [vmem:[%s4224_s17 + $0x50] sm:$0xff] %v2073_v9  ;;  %v2004_v17 = vpop.permute.xlu0 %2003  ;;  %v1456_v55 = vsel %vm1346_vm7, %v1453_v47, %v1455_v32  ;;  %vm4694_vm7 = vmmov %vm4685_vm0 }
 0x4a8   : > { %v1043_v51 = vadd.f32 %v1039_v0, %v741_v25 }
 0x4a9   : > { %v2000_v2 = vpop.permute.xlu1 %1999 }
 0x4aa   : > { %v2007_v59 = vsel %vm4686_vm12, %v2000_v2, %v2002_v14  ;;  %v1337_v34 = vadd.f32 %v1333_v60, %v1043_v51 }
 0x4ab   : > { %v2011_v4 = vadd.f32 %v2007_v59, %v3991_v40 }
 0x4ad   : > { %v2078_v6 = vmax.f32 %v2011_v4, 0.0 }
 0x4af   : > { %2182 = vst [vmem:[%s4224_s17 + $0x60] sm:$0xff] %v2078_v6  ;;  %v2038_v19 = vpop.permute.xlu0 %2037 }
 0x4b0   : > { %v2043_v24 = vsel %vm4691_vm4, %v2036_v44, %v2038_v19 }
 0x4b1   : > { %v2047_v40 = vadd.f32 %v2043_v24, %v3999_v61  ;;  %v2006_v46 = vpop.permute.xlu1 %2005  ;;  %v1460_v61 = vadd.f32 %v1456_v55, %v1337_v34 }
 0x4b2   : > { %v2008_v8 = vsel %vm4692_vm6, %v2004_v17, %v2006_v46 }
 0x4b3   : > { %v2083_v53 = vmax.f32 %v2047_v40, 0.0  ;;  %v2012_v39 = vadd.f32 %v2008_v8, %v4003_v38  ;;  %v1754_v38 = vadd.f32 %v1750_v57, %v1460_v61 }
 0x4b5   : > { %2184 = vst [vmem:[%s4224_s17 + $0x70] sm:$0xff] %v2083_v53  ;;  %v2079_v43 = vmax.f32 %v2012_v39, 0.0 }
 0x4b7   : > { %2183 = vst [vmem:[%s4224_s17 + $0x68] sm:$0xff] %v2079_v43 }
 0x4b9   : > { %v2040_v16 = vpop.permute.xlu1 %2039 }
 0x4ba   : > { %v2044_v47 = vsel %vm4694_vm7, %v2040_v16, %v2042_v48 }
 0x4bb   : > { %v2048_v62 = vadd.f32 %v2044_v47, %v1754_v38 }
 0x4bd   : > { %v2084_v52 = vmax.f32 %v2048_v62, 0.0 }
 0x4bf   : > { %2185 = vst [vmem:[%s4224_s17 + $0x78] sm:$0xff] %v2084_v52 }
 0x4c0   : > { %2277 = shalt.err (!%p2274_p3)
}
 0x4c1   : > { %s2318_s29 = smov 128  }
 0x4c2   : > { %2193 = dma.vmem_to_hbm [thread:$0]  (%p2377_p5), %s2102_s6, 2048, %s2104_s16, %s2089_s7, %s2318_s29, %s2318_s29, %s2314_s26  }
 0x4c3 PF: > { %p2199_p4 = scmp.ge.s32.totalorder %s2312_s15, 2  ;;  %s2118_s17 = sand.u32 1, %s2300_s12  }
 0x4c4   : > { %s2119_s25 = scalar_lea.sflag [#allocation3], %s2118_s17 }
 0x4c5   : > { %p2196_p7 = pnand %p2199_p4, %p2381_p6 }
 0x4c7   : > { %p2197_p8 = pneg %p2196_p7 }
 0x4c9   : > { %2295 = dma.done.wait (%p2197_p8), %s2119_s25, 2048  }
 0x4ca   : > { %2297 = vsyncadd (%p2197_p8), %s2119_s25, 4294965248  ;;  %p13_p9 = scmp.ge.s32.totalorder %s2364_s18, 4   ;;  %s4695_s12 = smov %s2304_s13 }
 0x4cb   : > { %s4696_s13 = smov %s2308_s14  ;;  %s4697_s14 = smov %s2375_s21 }
 0x4cc   : > { %s4698_s15 = smov %s2364_s18  ;;  %15 = sbr.rel (!%p13_p9) target bundleno = 3 (0x3), region = 74 }
 0x4d1   :  { %2125 = vsyncpa [#allocation3], 1 }
 0x4d2   :  { %2127 = vsyncpa [#allocation3 + $0x1], 1 }

</bundles_post_ra>
